<compile_context>
chip_gen: v5e
topology: v5e:2x2
jax: 0.10.0
libtpu: 0.0.40
codegen_flags: <defaults>
</compile_context>

<pallas_src>
import functools

import numpy as np
import jax
import jax.numpy as jnp
from jax.experimental import pallas as pl
from jax.experimental.pallas import tpu as pltpu

N_QUBITS = 4
N_LAYERS = 3
ENTANGLEMENT = "all2all"            # value chosen for args.entanglement
DIM = 2 ** N_QUBITS                 # 16


# ----------------------- static numpy constants -------------------------------
_H1_NP = (1.0 / np.sqrt(2.0)) * np.array([[1, 1], [1, -1]], dtype=np.complex128)


def _np_kron_all(mats):
    out = mats[0]
    for m in mats[1:]:
        out = np.kron(out, m)
    return out


def _np_ry(theta):
    c, s = np.cos(theta / 2.0), np.sin(theta / 2.0)
    return np.array([[c, -s], [s, c]], dtype=np.complex128)


def _np_rz(theta):
    return np.array([[np.exp(-1j * theta / 2.0), 0.0],
                     [0.0, np.exp(1j * theta / 2.0)]], dtype=np.complex128)


def _np_cnot(control, target):
    m = np.zeros((DIM, DIM), dtype=np.complex128)
    for s in range(DIM):
        bits = [(s >> (N_QUBITS - 1 - q)) & 1 for q in range(N_QUBITS)]
        if bits[control] == 1:
            bits[target] ^= 1
        ns = 0
        for q in range(N_QUBITS):
            ns = (ns << 1) | bits[q]
        m[ns, s] = 1.0
    return m


_H_ALL_NP = _np_kron_all([_H1_NP] * N_QUBITS)                 # (16,16) complex

_ENT_NP = np.eye(DIM, dtype=np.complex128)
if ENTANGLEMENT == "all2all":
    for _q1 in range(N_QUBITS - 1):
        for _q2 in range(_q1 + 1, N_QUBITS):
            _ENT_NP = _np_cnot(_q1, _q2) @ _ENT_NP            # program order

# bit masks merged into one (8,16) plane:
#   rows 0..3 : P(q_i = 0) selectors, rows 4..7 : P(q_i = 1) selectors
MASK_NP = np.zeros((2 * N_QUBITS, DIM), dtype=np.float32)
for _q in range(N_QUBITS):
    for _s in range(DIM):
        _bit = (_s >> (N_QUBITS - 1 - _q)) & 1
        MASK_NP[_bit * N_QUBITS + _q, _s] = 1.0

# bit-flip (Pauli-X on qubit q) permutation matrices, shared across the batch
PERM_NP = np.zeros((N_QUBITS, DIM, DIM), dtype=np.float32)
for _q in range(N_QUBITS):
    _m = 1 << (N_QUBITS - 1 - _q)
    for _s in range(DIM):
        PERM_NP[_q, _s, _s ^ _m] = 1.0


# ----------------------- traced (jnp) shared-gate construction ----------------
def _jry(theta):
    t = theta * 0.5
    c = jnp.cos(t)
    s = jnp.sin(t)
    return jnp.stack([jnp.stack([c, -s]), jnp.stack([s, c])]).astype(jnp.complex64)


def _jrz(theta):
    e0 = jnp.exp(-0.5j * theta)
    e1 = jnp.exp(0.5j * theta)
    z = jnp.zeros((), jnp.complex64)
    return jnp.stack([jnp.stack([e0, z]), jnp.stack([z, e1])]).astype(jnp.complex64)


def _jkron_all(mats):
    return functools.reduce(jnp.kron, mats)


def _shared_circuit_tensors(weights0):
    """Batch-independent circuit pieces (depend only on weights0).

    Returns:
      v0_ri : (2, 16) f32     re/im of  ENT @ Rot0 @ H^{x4} |0000>
      gates : (L-1, 2, 16, 16) f32  pre-folded shared gates applied after each
              embedding layer:  ENT @ Rot_{l+1}  (last one is just Rot_{L-1}).
    """
    ent = jnp.asarray(_ENT_NP.astype(np.complex64))
    h_all = jnp.asarray(_H_ALL_NP.astype(np.complex64))
    rots = []
    for l in range(N_LAYERS):
        sq = [_jry(weights0[l, q, 1]) @ _jrz(weights0[l, q, 0])
              for q in range(N_QUBITS)]
        rots.append(_jkron_all(sq))
    e0 = jnp.zeros((DIM,), jnp.complex64).at[0].set(1.0 + 0.0j)
    v0 = ent @ (rots[0] @ (h_all @ e0))
    gmats = []
    for l in range(1, N_LAYERS):
        g = rots[l] if l == N_LAYERS - 1 else ent @ rots[l]
        gmats.append(jnp.stack([jnp.real(g), jnp.imag(g)]).astype(jnp.float32))
    gates = jnp.stack(gmats)                                   # (L-1, 2, 16, 16)
    v0_ri = jnp.stack([jnp.real(v0), jnp.imag(v0)]).astype(jnp.float32)
    return v0_ri, gates


# ------------------------------- Pallas kernel --------------------------------
def _policy_kernel(ang_ref, u_ref, v0_ref, g_ref, x_ref, mask_ref, out_ref):
    bb = ang_ref.shape[1]          # batch lanes in this block
    n_emb = g_ref.shape[0]         # number of embedding layers (= N_LAYERS - 1)

    # Whole batch block of state vectors, real/imag planes (16, bb).
    re = v0_ref[0]
    im = v0_ref[1]

    # Per-qubit bit-sign planes: +1 where bit_q(state)=1, -1 where it is 0.
    row = jax.lax.broadcasted_iota(jnp.int32, (DIM, bb), 0)
    signs = [(2 * ((row >> (N_QUBITS - 1 - q)) & 1) - 1).astype(jnp.float32)
             for q in range(N_QUBITS)]

    for l in range(n_emb):
        # ---- angle-embedding layer l: per qubit  RZ(th_z) @ RY(th_y) ----
        for q in range(N_QUBITS):
            hy = 0.5 * ang_ref[8 * l + q: 8 * l + q + 1, :]           # (1, bb)
            hz = 0.5 * ang_ref[8 * l + 4 + q: 8 * l + 5 + q, :]       # (1, bb)
            cy, sy = jnp.cos(hy), jnp.sin(hy)
            cz, sz = jnp.cos(hz), jnp.sin(hz)
            # Bit-flip permutation on qubit q (shared matrix, one small dot).
            xre = jnp.dot(x_ref[q], re, preferred_element_type=jnp.float32)
            xim = jnp.dot(x_ref[q], im, preferred_element_type=jnp.float32)
            # U = RZ@RY entries; per state s: psi <- coefA*psi + coefB*(X_q psi)
            a_re = cz * cy                    # (1, bb)  same for both bit values
            b_im = sz * sy                    # (1, bb)
            a_im = signs[q] * (sz * cy)       # (16, bb) sign flips with bit_q
            b_re = signs[q] * (cz * sy)       # (16, bb)
            new_re = a_re * re - a_im * im + b_re * xre - b_im * xim
            new_im = a_re * im + a_im * re + b_re * xim + b_im * xre
            re, im = new_re, new_im

        # ---- shared pre-folded gate (ENT @ Rot_{l+1}, last is Rot_{L-1}) ----
        gre = g_ref[l, 0]
        gim = g_ref[l, 1]
        nre = (jnp.dot(gre, re, preferred_element_type=jnp.float32)
               - jnp.dot(gim, im, preferred_element_type=jnp.float32))
        nim = (jnp.dot(gre, im, preferred_element_type=jnp.float32)
               + jnp.dot(gim, re, preferred_element_type=jnp.float32))
        re, im = nre, nim

    probs = re * re + im * im                                        # (16, bb)
    # Per-wire marginals: rows 0..3 -> P(q=0), rows 4..7 -> P(q=1).
    marg = jnp.dot(mask_ref[...], probs,
                   preferred_element_type=jnp.float32)               # (8, bb)
    p0 = marg[0:1] * marg[1:2] * marg[2:3] * marg[3:4]               # (1, bb)
    p1 = marg[4:5] * marg[5:6] * marg[6:7] * marg[7:8]               # (1, bb)

    total = jnp.maximum(p0 + p1, 1e-30)
    inv = pl.reciprocal(total, approx=True)
    inv = inv * (2.0 - total * inv)                 # one Newton step -> ~f32 exact
    p0n = p0 * inv
    p1n = p1 * inv

    # Categorical sampling via inverse CDF with supplied uniforms u ~ U[0,1).
    u = u_ref[0:1, :]
    take0 = u < p0n
    action = jnp.where(take0, 0.0, 1.0)
    log_p = jnp.where(take0,
                      jnp.log(jnp.maximum(p0n, 1e-30)),
                      jnp.log(jnp.maximum(p1n, 1e-30)))

    # Lane-dense output block: rows = [p0n, p1n, action, log_p, pad...]
    out_ref[0:1, :] = p0n
    out_ref[1:2, :] = p1n
    out_ref[2:3, :] = action
    out_ref[3:4, :] = log_p
    out_ref[4:8, :] = jnp.zeros((4, bb), jnp.float32)


# ------------------------------- public wrapper --------------------------------
@functools.partial(jax.jit, static_argnames=("block_b",))
def policy_forward_batch(states, weights0, input_scaling, u_samples, block_b=128):
    """Batched Pallas-backed equivalent of policy_estimator_q.forward(state, w_copy)
    (w_copy is unused in the quantum branch).  Returns (action, log_p, action_probs)
    for every row of `states`.  block_b (multiple of 128) is the batch-lane tile;
    128 matches the v5e MXU tile, 256 is preferred on v6e/v7x for large batches."""
    assert block_b % 128 == 0
    B = states.shape[0]
    b_pad = ((B + block_b - 1) // block_b) * block_b
    n_blocks = b_pad // block_b
    n_emb = N_LAYERS - 1

    # Batch-independent circuit tensors (tiny; built once per call, no vmap).
    v0_ri, gates = _shared_circuit_tensors(weights0.astype(jnp.float32))
    v0_b = jnp.broadcast_to(v0_ri[:, :, None], (2, DIM, block_b))

    # Per-element embedding angles, lane-major:
    #   rows [8l+0 .. 8l+3] = state[q]*input_scaling[l,0]  (RY angles)
    #   rows [8l+4 .. 8l+7] = state[q]*input_scaling[l,1]  (RZ angles)
    s_t = states.astype(jnp.float32).T                        # (4, B)
    isc = input_scaling.astype(jnp.float32)
    ang_rows = []
    for l in range(n_emb):
        ang_rows.append(isc[l, 0] * s_t)
        ang_rows.append(isc[l, 1] * s_t)
    ang = jnp.concatenate(ang_rows, axis=0)                   # (8*(L-1), B)
    ang = jnp.pad(ang, ((0, 0), (0, b_pad - B)))

    u = u_samples.astype(jnp.float32).reshape(1, B)
    u = jnp.pad(u, ((0, 0), (0, b_pad - B)), constant_values=0.5)

    perms = jnp.asarray(PERM_NP)                              # (4, 16, 16)
    mask = jnp.asarray(MASK_NP)                               # (8, 16)

    out = pl.pallas_call(
        _policy_kernel,
        out_shape=jax.ShapeDtypeStruct((8, b_pad), jnp.float32),
        grid=(n_blocks,),
        in_specs=[
            pl.BlockSpec((8 * n_emb, block_b), lambda b: (0, b)),       # angles
            pl.BlockSpec((1, block_b), lambda b: (0, b)),               # uniforms
            pl.BlockSpec((2, DIM, block_b), lambda b: (0, 0, 0)),       # initial state
            pl.BlockSpec((n_emb, 2, DIM, DIM), lambda b: (0, 0, 0, 0)),  # shared gates
            pl.BlockSpec((N_QUBITS, DIM, DIM), lambda b: (0, 0, 0)),    # bit-flip perms
            pl.BlockSpec((2 * N_QUBITS, DIM), lambda b: (0, 0)),        # marginal masks
        ],
        out_specs=pl.BlockSpec((8, block_b), lambda b: (0, b)),
        compiler_params=pltpu.CompilerParams(
            dimension_semantics=("parallel",)),               # 2 TCs on v7x when n_blocks>1
    )(ang, u, v0_b, gates, perms, mask)

    p0n = out[0, :B]
    p1n = out[1, :B]
    action = out[2, :B].astype(jnp.int32)
    log_p = out[3, :B]
    action_probs = jnp.stack([p0n, p1n], axis=1)              # normalized Categorical probs
    return action, log_p, action_probs


# --------------------------- numpy reference (check) ---------------------------
def _reference_probs(state, weights0, input_scaling):
    state = np.asarray(state, np.float64)
    w = np.asarray(weights0, np.float64)
    isc = np.asarray(input_scaling, np.float64)
    psi = np.zeros(DIM, dtype=np.complex128)
    psi[0] = 1.0
    psi = _H_ALL_NP @ psi
    for l in range(N_LAYERS):
        psi = _np_kron_all([_np_ry(w[l, q, 1]) @ _np_rz(w[l, q, 0])
                            for q in range(N_QUBITS)]) @ psi
        if l < N_LAYERS - 1:
            psi = _ENT_NP @ psi
            psi = _np_kron_all([_np_ry(state[q] * isc[l, 0]) for q in range(N_QUBITS)]) @ psi
            psi = _np_kron_all([_np_rz(state[q] * isc[l, 1]) for q in range(N_QUBITS)]) @ psi
    probs = np.abs(psi) ** 2
    m = MASK_NP.astype(np.float64) @ probs
    p0, p1 = np.prod(m[:N_QUBITS]), np.prod(m[N_QUBITS:])
    t = p0 + p1
    return np.array([p0 / t, p1 / t])


if __name__ == "__main__":
    key = jax.random.PRNGKey(0)
    k1, k2, k3, k4 = jax.random.split(key, 4)

    B = 8  # batch of env states / timesteps per call

    # init == 'random_0_2pi' for both trainable tensors of the TorchLayer
    weights0 = jax.random.uniform(k1, (N_LAYERS, N_QUBITS, 2),
                                  minval=0.0, maxval=2.0 * np.pi, dtype=jnp.float32)
    input_scaling = jax.random.uniform(k2, (N_LAYERS - 1, 2),
                                       minval=0.0, maxval=2.0 * np.pi, dtype=jnp.float32)
    # CartPole-like 4-dim observations
    states = jax.random.normal(k3, (B, N_QUBITS), dtype=jnp.float32) * 0.1
    # TODO(synk): torch Categorical's internal RNG has no direct equivalent; we
    # sample via inverse CDF from externally supplied uniforms.
    u_samples = jax.random.uniform(k4, (B,), dtype=jnp.float32)

    actions, log_ps, action_probs = policy_forward_batch(
        states, weights0, input_scaling, u_samples)
    jax.block_until_ready((actions, log_ps, action_probs))

    acts = np.asarray(actions)
    lps = np.asarray(log_ps)
    aps = np.asarray(action_probs)
    us = np.asarray(u_samples)
    st_np = np.asarray(states)
    w_np = np.asarray(weights0)
    is_np = np.asarray(input_scaling)

    for b in range(B):
        ref = _reference_probs(st_np[b], w_np, is_np)
        assert np.allclose(aps[b], ref, atol=1e-3), (b, aps[b], ref)
        a = int(acts[b])
        assert a in (0, 1)
        expected_a = 0 if us[b] < aps[b, 0] else 1
        assert a == expected_a, (b, a, expected_a, us[b], aps[b])
        assert np.isclose(float(lps[b]), float(np.log(ref[a])), atol=1e-3), \
            (b, lps[b], np.log(ref[a]))

    print("KERNEL_OK")
</pallas_src>

<mosaic_0001>
module attributes {stable_mosaic.version = 11 : i64} {
  func.func @_policy_kernel(%arg0: i32, %arg1: memref<16x128xf32, #tpu.memory_space<vmem>>, %arg2: memref<1x128xf32, #tpu.memory_space<vmem>>, %arg3: memref<2x16x128xf32, #tpu.memory_space<vmem>>, %arg4: memref<2x2x16x16xf32, #tpu.memory_space<vmem>>, %arg5: memref<4x16x16xf32, #tpu.memory_space<vmem>>, %arg6: memref<8x16xf32, #tpu.memory_space<vmem>>, %arg7: memref<8x128xf32, #tpu.memory_space<vmem>>) attributes {dimension_semantics = [#tpu.dimension_semantics<parallel>], iteration_bounds = array<i64: 1>, scalar_prefetch = 0 : i64, scratch_operands = 0 : i64, tpu.core_type = #tpu.core_type<tc>, window_params = [{transform_indices = @transform_0, window_bounds = array<i64: 16, 128>}, {transform_indices = @transform_1, window_bounds = array<i64: 1, 128>}, {pipeline_mode = #tpu.pipeline_mode<synchronous>, transform_indices = @transform_2, window_bounds = array<i64: 2, 16, 128>}, {pipeline_mode = #tpu.pipeline_mode<synchronous>, transform_indices = @transform_3, window_bounds = array<i64: 2, 2, 16, 16>}, {pipeline_mode = #tpu.pipeline_mode<synchronous>, transform_indices = @transform_4, window_bounds = array<i64: 4, 16, 16>}, {pipeline_mode = #tpu.pipeline_mode<synchronous>, transform_indices = @transform_5, window_bounds = array<i64: 8, 16>}, {transform_indices = @transform_6, window_bounds = array<i64: 8, 128>}]} {
    %c0 = arith.constant 0 : index
    %c0_0 = arith.constant 0 : index
    %c0_1 = arith.constant 0 : index
    %0 = vector.load %arg3[%c0, %c0_0, %c0_1] : memref<2x16x128xf32, #tpu.memory_space<vmem>>, vector<1x16x128xf32>
    %1 = vector.shape_cast %0 : vector<1x16x128xf32> to vector<16x128xf32>
    %c1 = arith.constant 1 : index
    %c0_2 = arith.constant 0 : index
    %c0_3 = arith.constant 0 : index
    %2 = vector.load %arg3[%c1, %c0_2, %c0_3] : memref<2x16x128xf32, #tpu.memory_space<vmem>>, vector<1x16x128xf32>
    %3 = vector.shape_cast %2 : vector<1x16x128xf32> to vector<16x128xf32>
    %4 = tpu.iota {dimensions = array<i32: 0>} : vector<16x128xi32>
    %c3_i32 = arith.constant 3 : i32
    %5 = vector.broadcast %c3_i32 : i32 to vector<16x128xi32>
    %6 = arith.shrsi %4, %5 : vector<16x128xi32>
    %c1_i32 = arith.constant 1 : i32
    %7 = vector.broadcast %c1_i32 : i32 to vector<16x128xi32>
    %8 = arith.andi %6, %7 : vector<16x128xi32>
    %c2_i32 = arith.constant 2 : i32
    %9 = vector.broadcast %c2_i32 : i32 to vector<16x128xi32>
    %10 = arith.muli %9, %8 : vector<16x128xi32>
    %c1_i32_4 = arith.constant 1 : i32
    %11 = vector.broadcast %c1_i32_4 : i32 to vector<16x128xi32>
    %12 = arith.subi %10, %11 : vector<16x128xi32>
    %13 = arith.sitofp %12 : vector<16x128xi32> to vector<16x128xf32>
    %c2_i32_5 = arith.constant 2 : i32
    %14 = vector.broadcast %c2_i32_5 : i32 to vector<16x128xi32>
    %15 = arith.shrsi %4, %14 : vector<16x128xi32>
    %c1_i32_6 = arith.constant 1 : i32
    %16 = vector.broadcast %c1_i32_6 : i32 to vector<16x128xi32>
    %17 = arith.andi %15, %16 : vector<16x128xi32>
    %c2_i32_7 = arith.constant 2 : i32
    %18 = vector.broadcast %c2_i32_7 : i32 to vector<16x128xi32>
    %19 = arith.muli %18, %17 : vector<16x128xi32>
    %c1_i32_8 = arith.constant 1 : i32
    %20 = vector.broadcast %c1_i32_8 : i32 to vector<16x128xi32>
    %21 = arith.subi %19, %20 : vector<16x128xi32>
    %22 = arith.sitofp %21 : vector<16x128xi32> to vector<16x128xf32>
    %c1_i32_9 = arith.constant 1 : i32
    %23 = vector.broadcast %c1_i32_9 : i32 to vector<16x128xi32>
    %24 = arith.shrsi %4, %23 : vector<16x128xi32>
    %c1_i32_10 = arith.constant 1 : i32
    %25 = vector.broadcast %c1_i32_10 : i32 to vector<16x128xi32>
    %26 = arith.andi %24, %25 : vector<16x128xi32>
    %c2_i32_11 = arith.constant 2 : i32
    %27 = vector.broadcast %c2_i32_11 : i32 to vector<16x128xi32>
    %28 = arith.muli %27, %26 : vector<16x128xi32>
    %c1_i32_12 = arith.constant 1 : i32
    %29 = vector.broadcast %c1_i32_12 : i32 to vector<16x128xi32>
    %30 = arith.subi %28, %29 : vector<16x128xi32>
    %31 = arith.sitofp %30 : vector<16x128xi32> to vector<16x128xf32>
    %c0_i32 = arith.constant 0 : i32
    %32 = vector.broadcast %c0_i32 : i32 to vector<16x128xi32>
    %33 = arith.shrsi %4, %32 : vector<16x128xi32>
    %c1_i32_13 = arith.constant 1 : i32
    %34 = vector.broadcast %c1_i32_13 : i32 to vector<16x128xi32>
    %35 = arith.andi %33, %34 : vector<16x128xi32>
    %c2_i32_14 = arith.constant 2 : i32
    %36 = vector.broadcast %c2_i32_14 : i32 to vector<16x128xi32>
    %37 = arith.muli %36, %35 : vector<16x128xi32>
    %c1_i32_15 = arith.constant 1 : i32
    %38 = vector.broadcast %c1_i32_15 : i32 to vector<16x128xi32>
    %39 = arith.subi %37, %38 : vector<16x128xi32>
    %40 = arith.sitofp %39 : vector<16x128xi32> to vector<16x128xf32>
    %c0_16 = arith.constant 0 : index
    %c0_17 = arith.constant 0 : index
    %41 = vector.load %arg1[%c0_16, %c0_17] : memref<16x128xf32, #tpu.memory_space<vmem>>, vector<1x128xf32>
    %cst = arith.constant 5.000000e-01 : f32
    %42 = vector.broadcast %cst : f32 to vector<1x128xf32>
    %43 = arith.mulf %42, %41 : vector<1x128xf32>
    %c4 = arith.constant 4 : index
    %c0_18 = arith.constant 0 : index
    %44 = vector.load %arg1[%c4, %c0_18] : memref<16x128xf32, #tpu.memory_space<vmem>>, vector<1x128xf32>
    %cst_19 = arith.constant 5.000000e-01 : f32
    %45 = vector.broadcast %cst_19 : f32 to vector<1x128xf32>
    %46 = arith.mulf %45, %44 : vector<1x128xf32>
    %47 = math.cos %43 : vector<1x128xf32>
    %48 = math.sin %43 : vector<1x128xf32>
    %49 = math.cos %46 : vector<1x128xf32>
    %50 = math.sin %46 : vector<1x128xf32>
    %c0_20 = arith.constant 0 : index
    %c0_21 = arith.constant 0 : index
    %c0_22 = arith.constant 0 : index
    %51 = vector.load %arg5[%c0_20, %c0_21, %c0_22] : memref<4x16x16xf32, #tpu.memory_space<vmem>>, vector<1x16x16xf32>
    %52 = vector.shape_cast %51 : vector<1x16x16xf32> to vector<16x16xf32>
    %cst_23 = arith.constant dense<0.000000e+00> : vector<16x128xf32>
    %53 = tpu.matmul %52, %1, %cst_23 {dimension_numbers = #tpu.dot_dimension_numbers<[1], [0], [0], [1], [0, 0, 1, 1], [], []>} : vector<16x16xf32>, vector<16x128xf32>, vector<16x128xf32> -> vector<16x128xf32>
    %c0_24 = arith.constant 0 : index
    %c0_25 = arith.constant 0 : index
    %c0_26 = arith.constant 0 : index
    %54 = vector.load %arg5[%c0_24, %c0_25, %c0_26] : memref<4x16x16xf32, #tpu.memory_space<vmem>>, vector<1x16x16xf32>
    %55 = vector.shape_cast %54 : vector<1x16x16xf32> to vector<16x16xf32>
    %cst_27 = arith.constant dense<0.000000e+00> : vector<16x128xf32>
    %56 = tpu.matmul %55, %3, %cst_27 {dimension_numbers = #tpu.dot_dimension_numbers<[1], [0], [0], [1], [0, 0, 1, 1], [], []>} : vector<16x16xf32>, vector<16x128xf32>, vector<16x128xf32> -> vector<16x128xf32>
    %57 = arith.mulf %49, %47 : vector<1x128xf32>
    %58 = arith.mulf %50, %48 : vector<1x128xf32>
    %59 = arith.mulf %50, %47 : vector<1x128xf32>
    %60 = vector.broadcast %59 : vector<1x128xf32> to vector<16x128xf32>
    %61 = arith.mulf %13, %60 : vector<16x128xf32>
    %62 = arith.mulf %49, %48 : vector<1x128xf32>
    %63 = vector.broadcast %62 : vector<1x128xf32> to vector<16x128xf32>
    %64 = arith.mulf %13, %63 : vector<16x128xf32>
    %65 = vector.broadcast %57 : vector<1x128xf32> to vector<16x128xf32>
    %66 = arith.mulf %65, %1 : vector<16x128xf32>
    %67 = arith.mulf %61, %3 : vector<16x128xf32>
    %68 = arith.subf %66, %67 : vector<16x128xf32>
    %69 = arith.mulf %64, %53 : vector<16x128xf32>
    %70 = arith.addf %68, %69 : vector<16x128xf32>
    %71 = vector.broadcast %58 : vector<1x128xf32> to vector<16x128xf32>
    %72 = arith.mulf %71, %56 : vector<16x128xf32>
    %73 = arith.subf %70, %72 : vector<16x128xf32>
    %74 = vector.broadcast %57 : vector<1x128xf32> to vector<16x128xf32>
    %75 = arith.mulf %74, %3 : vector<16x128xf32>
    %76 = arith.mulf %61, %1 : vector<16x128xf32>
    %77 = arith.addf %75, %76 : vector<16x128xf32>
    %78 = arith.mulf %64, %56 : vector<16x128xf32>
    %79 = arith.addf %77, %78 : vector<16x128xf32>
    %80 = vector.broadcast %58 : vector<1x128xf32> to vector<16x128xf32>
    %81 = arith.mulf %80, %53 : vector<16x128xf32>
    %82 = arith.addf %79, %81 : vector<16x128xf32>
    %c1_28 = arith.constant 1 : index
    %c0_29 = arith.constant 0 : index
    %83 = vector.load %arg1[%c1_28, %c0_29] : memref<16x128xf32, #tpu.memory_space<vmem>>, vector<1x128xf32>
    %cst_30 = arith.constant 5.000000e-01 : f32
    %84 = vector.broadcast %cst_30 : f32 to vector<1x128xf32>
    %85 = arith.mulf %84, %83 : vector<1x128xf32>
    %c5 = arith.constant 5 : index
    %c0_31 = arith.constant 0 : index
    %86 = vector.load %arg1[%c5, %c0_31] : memref<16x128xf32, #tpu.memory_space<vmem>>, vector<1x128xf32>
    %cst_32 = arith.constant 5.000000e-01 : f32
    %87 = vector.broadcast %cst_32 : f32 to vector<1x128xf32>
    %88 = arith.mulf %87, %86 : vector<1x128xf32>
    %89 = math.cos %85 : vector<1x128xf32>
    %90 = math.sin %85 : vector<1x128xf32>
    %91 = math.cos %88 : vector<1x128xf32>
    %92 = math.sin %88 : vector<1x128xf32>
    %c1_33 = arith.constant 1 : index
    %c0_34 = arith.constant 0 : index
    %c0_35 = arith.constant 0 : index
    %93 = vector.load %arg5[%c1_33, %c0_34, %c0_35] : memref<4x16x16xf32, #tpu.memory_space<vmem>>, vector<1x16x16xf32>
    %94 = vector.shape_cast %93 : vector<1x16x16xf32> to vector<16x16xf32>
    %cst_36 = arith.constant dense<0.000000e+00> : vector<16x128xf32>
    %95 = tpu.matmul %94, %73, %cst_36 {dimension_numbers = #tpu.dot_dimension_numbers<[1], [0], [0], [1], [0, 0, 1, 1], [], []>} : vector<16x16xf32>, vector<16x128xf32>, vector<16x128xf32> -> vector<16x128xf32>
    %c1_37 = arith.constant 1 : index
    %c0_38 = arith.constant 0 : index
    %c0_39 = arith.constant 0 : index
    %96 = vector.load %arg5[%c1_37, %c0_38, %c0_39] : memref<4x16x16xf32, #tpu.memory_space<vmem>>, vector<1x16x16xf32>
    %97 = vector.shape_cast %96 : vector<1x16x16xf32> to vector<16x16xf32>
    %cst_40 = arith.constant dense<0.000000e+00> : vector<16x128xf32>
    %98 = tpu.matmul %97, %82, %cst_40 {dimension_numbers = #tpu.dot_dimension_numbers<[1], [0], [0], [1], [0, 0, 1, 1], [], []>} : vector<16x16xf32>, vector<16x128xf32>, vector<16x128xf32> -> vector<16x128xf32>
    %99 = arith.mulf %91, %89 : vector<1x128xf32>
    %100 = arith.mulf %92, %90 : vector<1x128xf32>
    %101 = arith.mulf %92, %89 : vector<1x128xf32>
    %102 = vector.broadcast %101 : vector<1x128xf32> to vector<16x128xf32>
    %103 = arith.mulf %22, %102 : vector<16x128xf32>
    %104 = arith.mulf %91, %90 : vector<1x128xf32>
    %105 = vector.broadcast %104 : vector<1x128xf32> to vector<16x128xf32>
    %106 = arith.mulf %22, %105 : vector<16x128xf32>
    %107 = vector.broadcast %99 : vector<1x128xf32> to vector<16x128xf32>
    %108 = arith.mulf %107, %73 : vector<16x128xf32>
    %109 = arith.mulf %103, %82 : vector<16x128xf32>
    %110 = arith.subf %108, %109 : vector<16x128xf32>
    %111 = arith.mulf %106, %95 : vector<16x128xf32>
    %112 = arith.addf %110, %111 : vector<16x128xf32>
    %113 = vector.broadcast %100 : vector<1x128xf32> to vector<16x128xf32>
    %114 = arith.mulf %113, %98 : vector<16x128xf32>
    %115 = arith.subf %112, %114 : vector<16x128xf32>
    %116 = vector.broadcast %99 : vector<1x128xf32> to vector<16x128xf32>
    %117 = arith.mulf %116, %82 : vector<16x128xf32>
    %118 = arith.mulf %103, %73 : vector<16x128xf32>
    %119 = arith.addf %117, %118 : vector<16x128xf32>
    %120 = arith.mulf %106, %98 : vector<16x128xf32>
    %121 = arith.addf %119, %120 : vector<16x128xf32>
    %122 = vector.broadcast %100 : vector<1x128xf32> to vector<16x128xf32>
    %123 = arith.mulf %122, %95 : vector<16x128xf32>
    %124 = arith.addf %121, %123 : vector<16x128xf32>
    %c2 = arith.constant 2 : index
    %c0_41 = arith.constant 0 : index
    %125 = vector.load %arg1[%c2, %c0_41] : memref<16x128xf32, #tpu.memory_space<vmem>>, vector<1x128xf32>
    %cst_42 = arith.constant 5.000000e-01 : f32
    %126 = vector.broadcast %cst_42 : f32 to vector<1x128xf32>
    %127 = arith.mulf %126, %125 : vector<1x128xf32>
    %c6 = arith.constant 6 : index
    %c0_43 = arith.constant 0 : index
    %128 = vector.load %arg1[%c6, %c0_43] : memref<16x128xf32, #tpu.memory_space<vmem>>, vector<1x128xf32>
    %cst_44 = arith.constant 5.000000e-01 : f32
    %129 = vector.broadcast %cst_44 : f32 to vector<1x128xf32>
    %130 = arith.mulf %129, %128 : vector<1x128xf32>
    %131 = math.cos %127 : vector<1x128xf32>
    %132 = math.sin %127 : vector<1x128xf32>
    %133 = math.cos %130 : vector<1x128xf32>
    %134 = math.sin %130 : vector<1x128xf32>
    %c2_45 = arith.constant 2 : index
    %c0_46 = arith.constant 0 : index
    %c0_47 = arith.constant 0 : index
    %135 = vector.load %arg5[%c2_45, %c0_46, %c0_47] : memref<4x16x16xf32, #tpu.memory_space<vmem>>, vector<1x16x16xf32>
    %136 = vector.shape_cast %135 : vector<1x16x16xf32> to vector<16x16xf32>
    %cst_48 = arith.constant dense<0.000000e+00> : vector<16x128xf32>
    %137 = tpu.matmul %136, %115, %cst_48 {dimension_numbers = #tpu.dot_dimension_numbers<[1], [0], [0], [1], [0, 0, 1, 1], [], []>} : vector<16x16xf32>, vector<16x128xf32>, vector<16x128xf32> -> vector<16x128xf32>
    %c2_49 = arith.constant 2 : index
    %c0_50 = arith.constant 0 : index
    %c0_51 = arith.constant 0 : index
    %138 = vector.load %arg5[%c2_49, %c0_50, %c0_51] : memref<4x16x16xf32, #tpu.memory_space<vmem>>, vector<1x16x16xf32>
    %139 = vector.shape_cast %138 : vector<1x16x16xf32> to vector<16x16xf32>
    %cst_52 = arith.constant dense<0.000000e+00> : vector<16x128xf32>
    %140 = tpu.matmul %139, %124, %cst_52 {dimension_numbers = #tpu.dot_dimension_numbers<[1], [0], [0], [1], [0, 0, 1, 1], [], []>} : vector<16x16xf32>, vector<16x128xf32>, vector<16x128xf32> -> vector<16x128xf32>
    %141 = arith.mulf %133, %131 : vector<1x128xf32>
    %142 = arith.mulf %134, %132 : vector<1x128xf32>
    %143 = arith.mulf %134, %131 : vector<1x128xf32>
    %144 = vector.broadcast %143 : vector<1x128xf32> to vector<16x128xf32>
    %145 = arith.mulf %31, %144 : vector<16x128xf32>
    %146 = arith.mulf %133, %132 : vector<1x128xf32>
    %147 = vector.broadcast %146 : vector<1x128xf32> to vector<16x128xf32>
    %148 = arith.mulf %31, %147 : vector<16x128xf32>
    %149 = vector.broadcast %141 : vector<1x128xf32> to vector<16x128xf32>
    %150 = arith.mulf %149, %115 : vector<16x128xf32>
    %151 = arith.mulf %145, %124 : vector<16x128xf32>
    %152 = arith.subf %150, %151 : vector<16x128xf32>
    %153 = arith.mulf %148, %137 : vector<16x128xf32>
    %154 = arith.addf %152, %153 : vector<16x128xf32>
    %155 = vector.broadcast %142 : vector<1x128xf32> to vector<16x128xf32>
    %156 = arith.mulf %155, %140 : vector<16x128xf32>
    %157 = arith.subf %154, %156 : vector<16x128xf32>
    %158 = vector.broadcast %141 : vector<1x128xf32> to vector<16x128xf32>
    %159 = arith.mulf %158, %124 : vector<16x128xf32>
    %160 = arith.mulf %145, %115 : vector<16x128xf32>
    %161 = arith.addf %159, %160 : vector<16x128xf32>
    %162 = arith.mulf %148, %140 : vector<16x128xf32>
    %163 = arith.addf %161, %162 : vector<16x128xf32>
    %164 = vector.broadcast %142 : vector<1x128xf32> to vector<16x128xf32>
    %165 = arith.mulf %164, %137 : vector<16x128xf32>
    %166 = arith.addf %163, %165 : vector<16x128xf32>
    %c3 = arith.constant 3 : index
    %c0_53 = arith.constant 0 : index
    %167 = vector.load %arg1[%c3, %c0_53] : memref<16x128xf32, #tpu.memory_space<vmem>>, vector<1x128xf32>
    %cst_54 = arith.constant 5.000000e-01 : f32
    %168 = vector.broadcast %cst_54 : f32 to vector<1x128xf32>
    %169 = arith.mulf %168, %167 : vector<1x128xf32>
    %c7 = arith.constant 7 : index
    %c0_55 = arith.constant 0 : index
    %170 = vector.load %arg1[%c7, %c0_55] : memref<16x128xf32, #tpu.memory_space<vmem>>, vector<1x128xf32>
    %cst_56 = arith.constant 5.000000e-01 : f32
    %171 = vector.broadcast %cst_56 : f32 to vector<1x128xf32>
    %172 = arith.mulf %171, %170 : vector<1x128xf32>
    %173 = math.cos %169 : vector<1x128xf32>
    %174 = math.sin %169 : vector<1x128xf32>
    %175 = math.cos %172 : vector<1x128xf32>
    %176 = math.sin %172 : vector<1x128xf32>
    %c3_57 = arith.constant 3 : index
    %c0_58 = arith.constant 0 : index
    %c0_59 = arith.constant 0 : index
    %177 = vector.load %arg5[%c3_57, %c0_58, %c0_59] : memref<4x16x16xf32, #tpu.memory_space<vmem>>, vector<1x16x16xf32>
    %178 = vector.shape_cast %177 : vector<1x16x16xf32> to vector<16x16xf32>
    %cst_60 = arith.constant dense<0.000000e+00> : vector<16x128xf32>
    %179 = tpu.matmul %178, %157, %cst_60 {dimension_numbers = #tpu.dot_dimension_numbers<[1], [0], [0], [1], [0, 0, 1, 1], [], []>} : vector<16x16xf32>, vector<16x128xf32>, vector<16x128xf32> -> vector<16x128xf32>
    %c3_61 = arith.constant 3 : index
    %c0_62 = arith.constant 0 : index
    %c0_63 = arith.constant 0 : index
    %180 = vector.load %arg5[%c3_61, %c0_62, %c0_63] : memref<4x16x16xf32, #tpu.memory_space<vmem>>, vector<1x16x16xf32>
    %181 = vector.shape_cast %180 : vector<1x16x16xf32> to vector<16x16xf32>
    %cst_64 = arith.constant dense<0.000000e+00> : vector<16x128xf32>
    %182 = tpu.matmul %181, %166, %cst_64 {dimension_numbers = #tpu.dot_dimension_numbers<[1], [0], [0], [1], [0, 0, 1, 1], [], []>} : vector<16x16xf32>, vector<16x128xf32>, vector<16x128xf32> -> vector<16x128xf32>
    %183 = arith.mulf %175, %173 : vector<1x128xf32>
    %184 = arith.mulf %176, %174 : vector<1x128xf32>
    %185 = arith.mulf %176, %173 : vector<1x128xf32>
    %186 = vector.broadcast %185 : vector<1x128xf32> to vector<16x128xf32>
    %187 = arith.mulf %40, %186 : vector<16x128xf32>
    %188 = arith.mulf %175, %174 : vector<1x128xf32>
    %189 = vector.broadcast %188 : vector<1x128xf32> to vector<16x128xf32>
    %190 = arith.mulf %40, %189 : vector<16x128xf32>
    %191 = vector.broadcast %183 : vector<1x128xf32> to vector<16x128xf32>
    %192 = arith.mulf %191, %157 : vector<16x128xf32>
    %193 = arith.mulf %187, %166 : vector<16x128xf32>
    %194 = arith.subf %192, %193 : vector<16x128xf32>
    %195 = arith.mulf %190, %179 : vector<16x128xf32>
    %196 = arith.addf %194, %195 : vector<16x128xf32>
    %197 = vector.broadcast %184 : vector<1x128xf32> to vector<16x128xf32>
    %198 = arith.mulf %197, %182 : vector<16x128xf32>
    %199 = arith.subf %196, %198 : vector<16x128xf32>
    %200 = vector.broadcast %183 : vector<1x128xf32> to vector<16x128xf32>
    %201 = arith.mulf %200, %166 : vector<16x128xf32>
    %202 = arith.mulf %187, %157 : vector<16x128xf32>
    %203 = arith.addf %201, %202 : vector<16x128xf32>
    %204 = arith.mulf %190, %182 : vector<16x128xf32>
    %205 = arith.addf %203, %204 : vector<16x128xf32>
    %206 = vector.broadcast %184 : vector<1x128xf32> to vector<16x128xf32>
    %207 = arith.mulf %206, %179 : vector<16x128xf32>
    %208 = arith.addf %205, %207 : vector<16x128xf32>
    %c0_65 = arith.constant 0 : index
    %c0_66 = arith.constant 0 : index
    %c0_67 = arith.constant 0 : index
    %c0_68 = arith.constant 0 : index
    %209 = vector.load %arg4[%c0_65, %c0_66, %c0_67, %c0_68] : memref<2x2x16x16xf32, #tpu.memory_space<vmem>>, vector<1x1x16x16xf32>
    %210 = vector.shape_cast %209 : vector<1x1x16x16xf32> to vector<16x16xf32>
    %c0_69 = arith.constant 0 : index
    %c1_70 = arith.constant 1 : index
    %c0_71 = arith.constant 0 : index
    %c0_72 = arith.constant 0 : index
    %211 = vector.load %arg4[%c0_69, %c1_70, %c0_71, %c0_72] : memref<2x2x16x16xf32, #tpu.memory_space<vmem>>, vector<1x1x16x16xf32>
    %212 = vector.shape_cast %211 : vector<1x1x16x16xf32> to vector<16x16xf32>
    %cst_73 = arith.constant dense<0.000000e+00> : vector<16x128xf32>
    %213 = tpu.matmul %210, %199, %cst_73 {dimension_numbers = #tpu.dot_dimension_numbers<[1], [0], [0], [1], [0, 0, 1, 1], [], []>} : vector<16x16xf32>, vector<16x128xf32>, vector<16x128xf32> -> vector<16x128xf32>
    %cst_74 = arith.constant dense<0.000000e+00> : vector<16x128xf32>
    %214 = tpu.matmul %212, %208, %cst_74 {dimension_numbers = #tpu.dot_dimension_numbers<[1], [0], [0], [1], [0, 0, 1, 1], [], []>} : vector<16x16xf32>, vector<16x128xf32>, vector<16x128xf32> -> vector<16x128xf32>
    %215 = arith.subf %213, %214 : vector<16x128xf32>
    %cst_75 = arith.constant dense<0.000000e+00> : vector<16x128xf32>
    %216 = tpu.matmul %210, %208, %cst_75 {dimension_numbers = #tpu.dot_dimension_numbers<[1], [0], [0], [1], [0, 0, 1, 1], [], []>} : vector<16x16xf32>, vector<16x128xf32>, vector<16x128xf32> -> vector<16x128xf32>
    %cst_76 = arith.constant dense<0.000000e+00> : vector<16x128xf32>
    %217 = tpu.matmul %212, %199, %cst_76 {dimension_numbers = #tpu.dot_dimension_numbers<[1], [0], [0], [1], [0, 0, 1, 1], [], []>} : vector<16x16xf32>, vector<16x128xf32>, vector<16x128xf32> -> vector<16x128xf32>
    %218 = arith.addf %216, %217 : vector<16x128xf32>
    %c8 = arith.constant 8 : index
    %c0_77 = arith.constant 0 : index
    %219 = vector.load %arg1[%c8, %c0_77] : memref<16x128xf32, #tpu.memory_space<vmem>>, vector<1x128xf32>
    %cst_78 = arith.constant 5.000000e-01 : f32
    %220 = vector.broadcast %cst_78 : f32 to vector<1x128xf32>
    %221 = arith.mulf %220, %219 : vector<1x128xf32>
    %c12 = arith.constant 12 : index
    %c0_79 = arith.constant 0 : index
    %222 = vector.load %arg1[%c12, %c0_79] : memref<16x128xf32, #tpu.memory_space<vmem>>, vector<1x128xf32>
    %cst_80 = arith.constant 5.000000e-01 : f32
    %223 = vector.broadcast %cst_80 : f32 to vector<1x128xf32>
    %224 = arith.mulf %223, %222 : vector<1x128xf32>
    %225 = math.cos %221 : vector<1x128xf32>
    %226 = math.sin %221 : vector<1x128xf32>
    %227 = math.cos %224 : vector<1x128xf32>
    %228 = math.sin %224 : vector<1x128xf32>
    %c0_81 = arith.constant 0 : index
    %c0_82 = arith.constant 0 : index
    %c0_83 = arith.constant 0 : index
    %229 = vector.load %arg5[%c0_81, %c0_82, %c0_83] : memref<4x16x16xf32, #tpu.memory_space<vmem>>, vector<1x16x16xf32>
    %230 = vector.shape_cast %229 : vector<1x16x16xf32> to vector<16x16xf32>
    %cst_84 = arith.constant dense<0.000000e+00> : vector<16x128xf32>
    %231 = tpu.matmul %230, %215, %cst_84 {dimension_numbers = #tpu.dot_dimension_numbers<[1], [0], [0], [1], [0, 0, 1, 1], [], []>} : vector<16x16xf32>, vector<16x128xf32>, vector<16x128xf32> -> vector<16x128xf32>
    %c0_85 = arith.constant 0 : index
    %c0_86 = arith.constant 0 : index
    %c0_87 = arith.constant 0 : index
    %232 = vector.load %arg5[%c0_85, %c0_86, %c0_87] : memref<4x16x16xf32, #tpu.memory_space<vmem>>, vector<1x16x16xf32>
    %233 = vector.shape_cast %232 : vector<1x16x16xf32> to vector<16x16xf32>
    %cst_88 = arith.constant dense<0.000000e+00> : vector<16x128xf32>
    %234 = tpu.matmul %233, %218, %cst_88 {dimension_numbers = #tpu.dot_dimension_numbers<[1], [0], [0], [1], [0, 0, 1, 1], [], []>} : vector<16x16xf32>, vector<16x128xf32>, vector<16x128xf32> -> vector<16x128xf32>
    %235 = arith.mulf %227, %225 : vector<1x128xf32>
    %236 = arith.mulf %228, %226 : vector<1x128xf32>
    %237 = arith.mulf %228, %225 : vector<1x128xf32>
    %238 = vector.broadcast %237 : vector<1x128xf32> to vector<16x128xf32>
    %239 = arith.mulf %13, %238 : vector<16x128xf32>
    %240 = arith.mulf %227, %226 : vector<1x128xf32>
    %241 = vector.broadcast %240 : vector<1x128xf32> to vector<16x128xf32>
    %242 = arith.mulf %13, %241 : vector<16x128xf32>
    %243 = vector.broadcast %235 : vector<1x128xf32> to vector<16x128xf32>
    %244 = arith.mulf %243, %215 : vector<16x128xf32>
    %245 = arith.mulf %239, %218 : vector<16x128xf32>
    %246 = arith.subf %244, %245 : vector<16x128xf32>
    %247 = arith.mulf %242, %231 : vector<16x128xf32>
    %248 = arith.addf %246, %247 : vector<16x128xf32>
    %249 = vector.broadcast %236 : vector<1x128xf32> to vector<16x128xf32>
    %250 = arith.mulf %249, %234 : vector<16x128xf32>
    %251 = arith.subf %248, %250 : vector<16x128xf32>
    %252 = vector.broadcast %235 : vector<1x128xf32> to vector<16x128xf32>
    %253 = arith.mulf %252, %218 : vector<16x128xf32>
    %254 = arith.mulf %239, %215 : vector<16x128xf32>
    %255 = arith.addf %253, %254 : vector<16x128xf32>
    %256 = arith.mulf %242, %234 : vector<16x128xf32>
    %257 = arith.addf %255, %256 : vector<16x128xf32>
    %258 = vector.broadcast %236 : vector<1x128xf32> to vector<16x128xf32>
    %259 = arith.mulf %258, %231 : vector<16x128xf32>
    %260 = arith.addf %257, %259 : vector<16x128xf32>
    %c9 = arith.constant 9 : index
    %c0_89 = arith.constant 0 : index
    %261 = vector.load %arg1[%c9, %c0_89] : memref<16x128xf32, #tpu.memory_space<vmem>>, vector<1x128xf32>
    %cst_90 = arith.constant 5.000000e-01 : f32
    %262 = vector.broadcast %cst_90 : f32 to vector<1x128xf32>
    %263 = arith.mulf %262, %261 : vector<1x128xf32>
    %c13 = arith.constant 13 : index
    %c0_91 = arith.constant 0 : index
    %264 = vector.load %arg1[%c13, %c0_91] : memref<16x128xf32, #tpu.memory_space<vmem>>, vector<1x128xf32>
    %cst_92 = arith.constant 5.000000e-01 : f32
    %265 = vector.broadcast %cst_92 : f32 to vector<1x128xf32>
    %266 = arith.mulf %265, %264 : vector<1x128xf32>
    %267 = math.cos %263 : vector<1x128xf32>
    %268 = math.sin %263 : vector<1x128xf32>
    %269 = math.cos %266 : vector<1x128xf32>
    %270 = math.sin %266 : vector<1x128xf32>
    %c1_93 = arith.constant 1 : index
    %c0_94 = arith.constant 0 : index
    %c0_95 = arith.constant 0 : index
    %271 = vector.load %arg5[%c1_93, %c0_94, %c0_95] : memref<4x16x16xf32, #tpu.memory_space<vmem>>, vector<1x16x16xf32>
    %272 = vector.shape_cast %271 : vector<1x16x16xf32> to vector<16x16xf32>
    %cst_96 = arith.constant dense<0.000000e+00> : vector<16x128xf32>
    %273 = tpu.matmul %272, %251, %cst_96 {dimension_numbers = #tpu.dot_dimension_numbers<[1], [0], [0], [1], [0, 0, 1, 1], [], []>} : vector<16x16xf32>, vector<16x128xf32>, vector<16x128xf32> -> vector<16x128xf32>
    %c1_97 = arith.constant 1 : index
    %c0_98 = arith.constant 0 : index
    %c0_99 = arith.constant 0 : index
    %274 = vector.load %arg5[%c1_97, %c0_98, %c0_99] : memref<4x16x16xf32, #tpu.memory_space<vmem>>, vector<1x16x16xf32>
    %275 = vector.shape_cast %274 : vector<1x16x16xf32> to vector<16x16xf32>
    %cst_100 = arith.constant dense<0.000000e+00> : vector<16x128xf32>
    %276 = tpu.matmul %275, %260, %cst_100 {dimension_numbers = #tpu.dot_dimension_numbers<[1], [0], [0], [1], [0, 0, 1, 1], [], []>} : vector<16x16xf32>, vector<16x128xf32>, vector<16x128xf32> -> vector<16x128xf32>
    %277 = arith.mulf %269, %267 : vector<1x128xf32>
    %278 = arith.mulf %270, %268 : vector<1x128xf32>
    %279 = arith.mulf %270, %267 : vector<1x128xf32>
    %280 = vector.broadcast %279 : vector<1x128xf32> to vector<16x128xf32>
    %281 = arith.mulf %22, %280 : vector<16x128xf32>
    %282 = arith.mulf %269, %268 : vector<1x128xf32>
    %283 = vector.broadcast %282 : vector<1x128xf32> to vector<16x128xf32>
    %284 = arith.mulf %22, %283 : vector<16x128xf32>
    %285 = vector.broadcast %277 : vector<1x128xf32> to vector<16x128xf32>
    %286 = arith.mulf %285, %251 : vector<16x128xf32>
    %287 = arith.mulf %281, %260 : vector<16x128xf32>
    %288 = arith.subf %286, %287 : vector<16x128xf32>
    %289 = arith.mulf %284, %273 : vector<16x128xf32>
    %290 = arith.addf %288, %289 : vector<16x128xf32>
    %291 = vector.broadcast %278 : vector<1x128xf32> to vector<16x128xf32>
    %292 = arith.mulf %291, %276 : vector<16x128xf32>
    %293 = arith.subf %290, %292 : vector<16x128xf32>
    %294 = vector.broadcast %277 : vector<1x128xf32> to vector<16x128xf32>
    %295 = arith.mulf %294, %260 : vector<16x128xf32>
    %296 = arith.mulf %281, %251 : vector<16x128xf32>
    %297 = arith.addf %295, %296 : vector<16x128xf32>
    %298 = arith.mulf %284, %276 : vector<16x128xf32>
    %299 = arith.addf %297, %298 : vector<16x128xf32>
    %300 = vector.broadcast %278 : vector<1x128xf32> to vector<16x128xf32>
    %301 = arith.mulf %300, %273 : vector<16x128xf32>
    %302 = arith.addf %299, %301 : vector<16x128xf32>
    %c10 = arith.constant 10 : index
    %c0_101 = arith.constant 0 : index
    %303 = vector.load %arg1[%c10, %c0_101] : memref<16x128xf32, #tpu.memory_space<vmem>>, vector<1x128xf32>
    %cst_102 = arith.constant 5.000000e-01 : f32
    %304 = vector.broadcast %cst_102 : f32 to vector<1x128xf32>
    %305 = arith.mulf %304, %303 : vector<1x128xf32>
    %c14 = arith.constant 14 : index
    %c0_103 = arith.constant 0 : index
    %306 = vector.load %arg1[%c14, %c0_103] : memref<16x128xf32, #tpu.memory_space<vmem>>, vector<1x128xf32>
    %cst_104 = arith.constant 5.000000e-01 : f32
    %307 = vector.broadcast %cst_104 : f32 to vector<1x128xf32>
    %308 = arith.mulf %307, %306 : vector<1x128xf32>
    %309 = math.cos %305 : vector<1x128xf32>
    %310 = math.sin %305 : vector<1x128xf32>
    %311 = math.cos %308 : vector<1x128xf32>
    %312 = math.sin %308 : vector<1x128xf32>
    %c2_105 = arith.constant 2 : index
    %c0_106 = arith.constant 0 : index
    %c0_107 = arith.constant 0 : index
    %313 = vector.load %arg5[%c2_105, %c0_106, %c0_107] : memref<4x16x16xf32, #tpu.memory_space<vmem>>, vector<1x16x16xf32>
    %314 = vector.shape_cast %313 : vector<1x16x16xf32> to vector<16x16xf32>
    %cst_108 = arith.constant dense<0.000000e+00> : vector<16x128xf32>
    %315 = tpu.matmul %314, %293, %cst_108 {dimension_numbers = #tpu.dot_dimension_numbers<[1], [0], [0], [1], [0, 0, 1, 1], [], []>} : vector<16x16xf32>, vector<16x128xf32>, vector<16x128xf32> -> vector<16x128xf32>
    %c2_109 = arith.constant 2 : index
    %c0_110 = arith.constant 0 : index
    %c0_111 = arith.constant 0 : index
    %316 = vector.load %arg5[%c2_109, %c0_110, %c0_111] : memref<4x16x16xf32, #tpu.memory_space<vmem>>, vector<1x16x16xf32>
    %317 = vector.shape_cast %316 : vector<1x16x16xf32> to vector<16x16xf32>
    %cst_112 = arith.constant dense<0.000000e+00> : vector<16x128xf32>
    %318 = tpu.matmul %317, %302, %cst_112 {dimension_numbers = #tpu.dot_dimension_numbers<[1], [0], [0], [1], [0, 0, 1, 1], [], []>} : vector<16x16xf32>, vector<16x128xf32>, vector<16x128xf32> -> vector<16x128xf32>
    %319 = arith.mulf %311, %309 : vector<1x128xf32>
    %320 = arith.mulf %312, %310 : vector<1x128xf32>
    %321 = arith.mulf %312, %309 : vector<1x128xf32>
    %322 = vector.broadcast %321 : vector<1x128xf32> to vector<16x128xf32>
    %323 = arith.mulf %31, %322 : vector<16x128xf32>
    %324 = arith.mulf %311, %310 : vector<1x128xf32>
    %325 = vector.broadcast %324 : vector<1x128xf32> to vector<16x128xf32>
    %326 = arith.mulf %31, %325 : vector<16x128xf32>
    %327 = vector.broadcast %319 : vector<1x128xf32> to vector<16x128xf32>
    %328 = arith.mulf %327, %293 : vector<16x128xf32>
    %329 = arith.mulf %323, %302 : vector<16x128xf32>
    %330 = arith.subf %328, %329 : vector<16x128xf32>
    %331 = arith.mulf %326, %315 : vector<16x128xf32>
    %332 = arith.addf %330, %331 : vector<16x128xf32>
    %333 = vector.broadcast %320 : vector<1x128xf32> to vector<16x128xf32>
    %334 = arith.mulf %333, %318 : vector<16x128xf32>
    %335 = arith.subf %332, %334 : vector<16x128xf32>
    %336 = vector.broadcast %319 : vector<1x128xf32> to vector<16x128xf32>
    %337 = arith.mulf %336, %302 : vector<16x128xf32>
    %338 = arith.mulf %323, %293 : vector<16x128xf32>
    %339 = arith.addf %337, %338 : vector<16x128xf32>
    %340 = arith.mulf %326, %318 : vector<16x128xf32>
    %341 = arith.addf %339, %340 : vector<16x128xf32>
    %342 = vector.broadcast %320 : vector<1x128xf32> to vector<16x128xf32>
    %343 = arith.mulf %342, %315 : vector<16x128xf32>
    %344 = arith.addf %341, %343 : vector<16x128xf32>
    %c11 = arith.constant 11 : index
    %c0_113 = arith.constant 0 : index
    %345 = vector.load %arg1[%c11, %c0_113] : memref<16x128xf32, #tpu.memory_space<vmem>>, vector<1x128xf32>
    %cst_114 = arith.constant 5.000000e-01 : f32
    %346 = vector.broadcast %cst_114 : f32 to vector<1x128xf32>
    %347 = arith.mulf %346, %345 : vector<1x128xf32>
    %c15 = arith.constant 15 : index
    %c0_115 = arith.constant 0 : index
    %348 = vector.load %arg1[%c15, %c0_115] : memref<16x128xf32, #tpu.memory_space<vmem>>, vector<1x128xf32>
    %cst_116 = arith.constant 5.000000e-01 : f32
    %349 = vector.broadcast %cst_116 : f32 to vector<1x128xf32>
    %350 = arith.mulf %349, %348 : vector<1x128xf32>
    %351 = math.cos %347 : vector<1x128xf32>
    %352 = math.sin %347 : vector<1x128xf32>
    %353 = math.cos %350 : vector<1x128xf32>
    %354 = math.sin %350 : vector<1x128xf32>
    %c3_117 = arith.constant 3 : index
    %c0_118 = arith.constant 0 : index
    %c0_119 = arith.constant 0 : index
    %355 = vector.load %arg5[%c3_117, %c0_118, %c0_119] : memref<4x16x16xf32, #tpu.memory_space<vmem>>, vector<1x16x16xf32>
    %356 = vector.shape_cast %355 : vector<1x16x16xf32> to vector<16x16xf32>
    %cst_120 = arith.constant dense<0.000000e+00> : vector<16x128xf32>
    %357 = tpu.matmul %356, %335, %cst_120 {dimension_numbers = #tpu.dot_dimension_numbers<[1], [0], [0], [1], [0, 0, 1, 1], [], []>} : vector<16x16xf32>, vector<16x128xf32>, vector<16x128xf32> -> vector<16x128xf32>
    %c3_121 = arith.constant 3 : index
    %c0_122 = arith.constant 0 : index
    %c0_123 = arith.constant 0 : index
    %358 = vector.load %arg5[%c3_121, %c0_122, %c0_123] : memref<4x16x16xf32, #tpu.memory_space<vmem>>, vector<1x16x16xf32>
    %359 = vector.shape_cast %358 : vector<1x16x16xf32> to vector<16x16xf32>
    %cst_124 = arith.constant dense<0.000000e+00> : vector<16x128xf32>
    %360 = tpu.matmul %359, %344, %cst_124 {dimension_numbers = #tpu.dot_dimension_numbers<[1], [0], [0], [1], [0, 0, 1, 1], [], []>} : vector<16x16xf32>, vector<16x128xf32>, vector<16x128xf32> -> vector<16x128xf32>
    %361 = arith.mulf %353, %351 : vector<1x128xf32>
    %362 = arith.mulf %354, %352 : vector<1x128xf32>
    %363 = arith.mulf %354, %351 : vector<1x128xf32>
    %364 = vector.broadcast %363 : vector<1x128xf32> to vector<16x128xf32>
    %365 = arith.mulf %40, %364 : vector<16x128xf32>
    %366 = arith.mulf %353, %352 : vector<1x128xf32>
    %367 = vector.broadcast %366 : vector<1x128xf32> to vector<16x128xf32>
    %368 = arith.mulf %40, %367 : vector<16x128xf32>
    %369 = vector.broadcast %361 : vector<1x128xf32> to vector<16x128xf32>
    %370 = arith.mulf %369, %335 : vector<16x128xf32>
    %371 = arith.mulf %365, %344 : vector<16x128xf32>
    %372 = arith.subf %370, %371 : vector<16x128xf32>
    %373 = arith.mulf %368, %357 : vector<16x128xf32>
    %374 = arith.addf %372, %373 : vector<16x128xf32>
    %375 = vector.broadcast %362 : vector<1x128xf32> to vector<16x128xf32>
    %376 = arith.mulf %375, %360 : vector<16x128xf32>
    %377 = arith.subf %374, %376 : vector<16x128xf32>
    %378 = vector.broadcast %361 : vector<1x128xf32> to vector<16x128xf32>
    %379 = arith.mulf %378, %344 : vector<16x128xf32>
    %380 = arith.mulf %365, %335 : vector<16x128xf32>
    %381 = arith.addf %379, %380 : vector<16x128xf32>
    %382 = arith.mulf %368, %360 : vector<16x128xf32>
    %383 = arith.addf %381, %382 : vector<16x128xf32>
    %384 = vector.broadcast %362 : vector<1x128xf32> to vector<16x128xf32>
    %385 = arith.mulf %384, %357 : vector<16x128xf32>
    %386 = arith.addf %383, %385 : vector<16x128xf32>
    %c1_125 = arith.constant 1 : index
    %c0_126 = arith.constant 0 : index
    %c0_127 = arith.constant 0 : index
    %c0_128 = arith.constant 0 : index
    %387 = vector.load %arg4[%c1_125, %c0_126, %c0_127, %c0_128] : memref<2x2x16x16xf32, #tpu.memory_space<vmem>>, vector<1x1x16x16xf32>
    %388 = vector.shape_cast %387 : vector<1x1x16x16xf32> to vector<16x16xf32>
    %c1_129 = arith.constant 1 : index
    %c1_130 = arith.constant 1 : index
    %c0_131 = arith.constant 0 : index
    %c0_132 = arith.constant 0 : index
    %389 = vector.load %arg4[%c1_129, %c1_130, %c0_131, %c0_132] : memref<2x2x16x16xf32, #tpu.memory_space<vmem>>, vector<1x1x16x16xf32>
    %390 = vector.shape_cast %389 : vector<1x1x16x16xf32> to vector<16x16xf32>
    %cst_133 = arith.constant dense<0.000000e+00> : vector<16x128xf32>
    %391 = tpu.matmul %388, %377, %cst_133 {dimension_numbers = #tpu.dot_dimension_numbers<[1], [0], [0], [1], [0, 0, 1, 1], [], []>} : vector<16x16xf32>, vector<16x128xf32>, vector<16x128xf32> -> vector<16x128xf32>
    %cst_134 = arith.constant dense<0.000000e+00> : vector<16x128xf32>
    %392 = tpu.matmul %390, %386, %cst_134 {dimension_numbers = #tpu.dot_dimension_numbers<[1], [0], [0], [1], [0, 0, 1, 1], [], []>} : vector<16x16xf32>, vector<16x128xf32>, vector<16x128xf32> -> vector<16x128xf32>
    %393 = arith.subf %391, %392 : vector<16x128xf32>
    %cst_135 = arith.constant dense<0.000000e+00> : vector<16x128xf32>
    %394 = tpu.matmul %388, %386, %cst_135 {dimension_numbers = #tpu.dot_dimension_numbers<[1], [0], [0], [1], [0, 0, 1, 1], [], []>} : vector<16x16xf32>, vector<16x128xf32>, vector<16x128xf32> -> vector<16x128xf32>
    %cst_136 = arith.constant dense<0.000000e+00> : vector<16x128xf32>
    %395 = tpu.matmul %390, %377, %cst_136 {dimension_numbers = #tpu.dot_dimension_numbers<[1], [0], [0], [1], [0, 0, 1, 1], [], []>} : vector<16x16xf32>, vector<16x128xf32>, vector<16x128xf32> -> vector<16x128xf32>
    %396 = arith.addf %394, %395 : vector<16x128xf32>
    %397 = arith.mulf %393, %393 : vector<16x128xf32>
    %398 = arith.mulf %396, %396 : vector<16x128xf32>
    %399 = arith.addf %397, %398 : vector<16x128xf32>
    %c0_137 = arith.constant 0 : index
    %c0_138 = arith.constant 0 : index
    %400 = vector.load %arg6[%c0_137, %c0_138] : memref<8x16xf32, #tpu.memory_space<vmem>>, vector<8x16xf32>
    %cst_139 = arith.constant dense<0.000000e+00> : vector<8x128xf32>
    %401 = tpu.matmul %400, %399, %cst_139 {dimension_numbers = #tpu.dot_dimension_numbers<[1], [0], [0], [1], [0, 0, 1, 1], [], []>} : vector<8x16xf32>, vector<16x128xf32>, vector<8x128xf32> -> vector<8x128xf32>
    %402 = vector.extract_strided_slice %401 {offsets = [0, 0], sizes = [1, 128], strides = [1, 1]} : vector<8x128xf32> to vector<1x128xf32>
    %403 = vector.extract_strided_slice %401 {offsets = [1, 0], sizes = [1, 128], strides = [1, 1]} : vector<8x128xf32> to vector<1x128xf32>
    %404 = arith.mulf %402, %403 : vector<1x128xf32>
    %405 = vector.extract_strided_slice %401 {offsets = [2, 0], sizes = [1, 128], strides = [1, 1]} : vector<8x128xf32> to vector<1x128xf32>
    %406 = arith.mulf %404, %405 : vector<1x128xf32>
    %407 = vector.extract_strided_slice %401 {offsets = [3, 0], sizes = [1, 128], strides = [1, 1]} : vector<8x128xf32> to vector<1x128xf32>
    %408 = arith.mulf %406, %407 : vector<1x128xf32>
    %409 = vector.extract_strided_slice %401 {offsets = [4, 0], sizes = [1, 128], strides = [1, 1]} : vector<8x128xf32> to vector<1x128xf32>
    %410 = vector.extract_strided_slice %401 {offsets = [5, 0], sizes = [1, 128], strides = [1, 1]} : vector<8x128xf32> to vector<1x128xf32>
    %411 = arith.mulf %409, %410 : vector<1x128xf32>
    %412 = vector.extract_strided_slice %401 {offsets = [6, 0], sizes = [1, 128], strides = [1, 1]} : vector<8x128xf32> to vector<1x128xf32>
    %413 = arith.mulf %411, %412 : vector<1x128xf32>
    %414 = vector.extract_strided_slice %401 {offsets = [7, 0], sizes = [1, 128], strides = [1, 1]} : vector<8x128xf32> to vector<1x128xf32>
    %415 = arith.mulf %413, %414 : vector<1x128xf32>
    %416 = arith.addf %408, %415 : vector<1x128xf32>
    %cst_140 = arith.constant 1.000000e-30 : f32
    %417 = vector.broadcast %cst_140 : f32 to vector<1x128xf32>
    %418 = arith.maximumf %416, %417 : vector<1x128xf32>
    %419 = tpu.reciprocal %418 {approx = true} : vector<1x128xf32> -> vector<1x128xf32>
    %420 = arith.mulf %418, %419 : vector<1x128xf32>
    %cst_141 = arith.constant 2.000000e+00 : f32
    %421 = vector.broadcast %cst_141 : f32 to vector<1x128xf32>
    %422 = arith.subf %421, %420 : vector<1x128xf32>
    %423 = arith.mulf %419, %422 : vector<1x128xf32>
    %424 = arith.mulf %408, %423 : vector<1x128xf32>
    %425 = arith.mulf %415, %423 : vector<1x128xf32>
    %c0_142 = arith.constant 0 : index
    %c0_143 = arith.constant 0 : index
    %426 = vector.load %arg2[%c0_142, %c0_143] : memref<1x128xf32, #tpu.memory_space<vmem>>, vector<1x128xf32>
    %427 = arith.cmpf olt, %426, %424 : vector<1x128xf32>
    %cst_144 = arith.constant 0.000000e+00 : f32
    %cst_145 = arith.constant 1.000000e+00 : f32
    %428 = vector.broadcast %cst_144 : f32 to vector<1x128xf32>
    %429 = vector.broadcast %cst_145 : f32 to vector<1x128xf32>
    %430 = arith.select %427, %428, %429 : vector<1x128xi1>, vector<1x128xf32>
    %cst_146 = arith.constant 1.000000e-30 : f32
    %431 = vector.broadcast %cst_146 : f32 to vector<1x128xf32>
    %432 = arith.maximumf %424, %431 : vector<1x128xf32>
    %433 = math.log %432 : vector<1x128xf32>
    %cst_147 = arith.constant 1.000000e-30 : f32
    %434 = vector.broadcast %cst_147 : f32 to vector<1x128xf32>
    %435 = arith.maximumf %425, %434 : vector<1x128xf32>
    %436 = math.log %435 : vector<1x128xf32>
    %437 = arith.select %427, %433, %436 : vector<1x128xi1>, vector<1x128xf32>
    %c0_148 = arith.constant 0 : index
    %c0_149 = arith.constant 0 : index
    %438 = vector.load %arg7[%c0_148, %c0_149] : memref<8x128xf32, #tpu.memory_space<vmem>>, vector<1x128xf32>
    tpu.vector_store %arg7[%c0_148, %c0_149], %424 {strides = array<i32>} : memref<8x128xf32, #tpu.memory_space<vmem>>, vector<1x128xf32>,
    %c1_150 = arith.constant 1 : index
    %c0_151 = arith.constant 0 : index
    %439 = vector.load %arg7[%c1_150, %c0_151] : memref<8x128xf32, #tpu.memory_space<vmem>>, vector<1x128xf32>
    tpu.vector_store %arg7[%c1_150, %c0_151], %425 {strides = array<i32>} : memref<8x128xf32, #tpu.memory_space<vmem>>, vector<1x128xf32>,
    %c2_152 = arith.constant 2 : index
    %c0_153 = arith.constant 0 : index
    %440 = vector.load %arg7[%c2_152, %c0_153] : memref<8x128xf32, #tpu.memory_space<vmem>>, vector<1x128xf32>
    tpu.vector_store %arg7[%c2_152, %c0_153], %430 {strides = array<i32>} : memref<8x128xf32, #tpu.memory_space<vmem>>, vector<1x128xf32>,
    %c3_154 = arith.constant 3 : index
    %c0_155 = arith.constant 0 : index
    %441 = vector.load %arg7[%c3_154, %c0_155] : memref<8x128xf32, #tpu.memory_space<vmem>>, vector<1x128xf32>
    tpu.vector_store %arg7[%c3_154, %c0_155], %437 {strides = array<i32>} : memref<8x128xf32, #tpu.memory_space<vmem>>, vector<1x128xf32>,
    %cst_156 = arith.constant 0.000000e+00 : f32
    %442 = vector.broadcast %cst_156 : f32 to vector<4x128xf32>
    %c4_157 = arith.constant 4 : index
    %c0_158 = arith.constant 0 : index
    %443 = vector.load %arg7[%c4_157, %c0_158] : memref<8x128xf32, #tpu.memory_space<vmem>>, vector<4x128xf32>
    tpu.vector_store %arg7[%c4_157, %c0_158], %442 {strides = array<i32>} : memref<8x128xf32, #tpu.memory_space<vmem>>, vector<4x128xf32>,
    return
  }
  func.func @transform_0(%arg0: i32) -> (i32, i32) {
    %c0_i32 = arith.constant 0 : i32
    %c0_i32_0 = arith.constant 0 : i32
    return %c0_i32, %arg0 : i32, i32
  }
  func.func @transform_1(%arg0: i32) -> (i32, i32) {
    %c0_i32 = arith.constant 0 : i32
    %c0_i32_0 = arith.constant 0 : i32
    return %c0_i32, %arg0 : i32, i32
  }
  func.func @transform_2(%arg0: i32) -> (i32, i32, i32) {
    %c0_i32 = arith.constant 0 : i32
    %c0_i32_0 = arith.constant 0 : i32
    %c0_i32_1 = arith.constant 0 : i32
    %c0_i32_2 = arith.constant 0 : i32
    return %c0_i32, %c0_i32_0, %c0_i32_1 : i32, i32, i32
  }
  func.func @transform_3(%arg0: i32) -> (i32, i32, i32, i32) {
    %c0_i32 = arith.constant 0 : i32
    %c0_i32_0 = arith.constant 0 : i32
    %c0_i32_1 = arith.constant 0 : i32
    %c0_i32_2 = arith.constant 0 : i32
    %c0_i32_3 = arith.constant 0 : i32
    return %c0_i32, %c0_i32_0, %c0_i32_1, %c0_i32_2 : i32, i32, i32, i32
  }
  func.func @transform_4(%arg0: i32) -> (i32, i32, i32) {
    %c0_i32 = arith.constant 0 : i32
    %c0_i32_0 = arith.constant 0 : i32
    %c0_i32_1 = arith.constant 0 : i32
    %c0_i32_2 = arith.constant 0 : i32
    return %c0_i32, %c0_i32_0, %c0_i32_1 : i32, i32, i32
  }
  func.func @transform_5(%arg0: i32) -> (i32, i32) {
    %c0_i32 = arith.constant 0 : i32
    %c0_i32_0 = arith.constant 0 : i32
    %c0_i32_1 = arith.constant 0 : i32
    return %c0_i32, %c0_i32_0 : i32, i32
  }
  func.func @transform_6(%arg0: i32) -> (i32, i32) {
    %c0_i32 = arith.constant 0 : i32
    %c0_i32_0 = arith.constant 0 : i32
    return %c0_i32, %arg0 : i32, i32
  }
}

</mosaic_0001>

<bundles_post_ra>
// kernel: policy_forward_batch.1
= control target key start
LH: loop header
LB: loop body
LE: loop exit
PB: predicated region body
PF: predicated region fallthrough
CT: control target
= control target key end

     0   :  { %vm693_vm0 = vcmask 130048   ;;  %v8764_v35 = vmov 683565275   ;;  %v8758_v37 = vmov 2475754826   ;;  %s8749_s0 = inlined_call_operand.vmem [shape: f32[16,128], index: 0, kind: input, shape index: {}]   ;;  %s8750_s2 = inlined_call_operand.vmem [shape: f32[2,16,128], index: 2, kind: input, shape index: {}]   ;;  %s8751_s4 = inlined_call_operand.vmem [shape: f32[4,16,16], index: 4, kind: input, shape index: {}]   ;;  %s8752_s3 = inlined_call_operand.vmem [shape: f32[2,2,16,16], index: 3, kind: input, shape index: {}]   ;;  %s8753_s5 = inlined_call_operand.vmem [shape: f32[8,16], index: 5, kind: input, shape index: {}]   ;;  %s8754_s6 = inlined_call_operand.vmem [shape: f32[8,128], index: 6, kind: output, shape index: {}]   ;;  %s8755_s1 = inlined_call_operand.vmem [shape: f32[1,128], index: 1, kind: input, shape index: {}]  }
   0x1   :  { %v6307_v0 = vld [vmem:[%s8750_s2 + $0x8] sm:$0xff]  ;;  %v69_v1 = vld [vmem:[%s8749_s0] sm:$0x1]  ;;  %v71_v2 = vld [vmem:[%s8749_s0 + $0x4] sm:$0x1] }
   0x2   :  { %v6315_v3 = vmul.f32 0.5, %v69_v1  ;;  %v6317_v4 = vmul.f32 0.5, %v71_v2  ;;  %714 = vmatpush.msra.mxu0 %v6307_v0  ;;  %v6323_v5 = vld [vmem:[%s8750_s2 + $0x18] sm:$0xff]  ;;  %v6329_v6 = vld [vmem:[%s8750_s2] sm:$0xff]  ;;  %v6334_v7 = vld [vmem:[%s8750_s2 + $0x10] sm:$0xff] }
   0x3   :  { %737 = vmatpush.msra.mxu1 %v6323_v5  ;;  %v691_v10 = vld [vmem:[%s8751_s4] sm:$0xff]  ;;  %v692_v24 = vld [vmem:[%s8751_s4 + $0x8] sm:$0xff]  ;;  %v8756_v39 = vmov 2131351028   ;;  %v8780_v41 = vmov 2102212464  }
   0x4   :  { %v73_v8 = vand.u32 2147483647, %v6315_v3  ;;  %v76_v9 = vand.u32 2139095040, %v6315_v3  ;;  %715 = vmatpush.msra.mxu0 %v6329_v6  ;;  %v385_v11 = vand.u32 2139095040, %v6317_v4  ;;  %v786_v12 = vld [vmem:[%s8749_s0 + $0x1] sm:$0x1] }
   0x5   :  { %738 = vmatpush.msra.mxu1 %v6334_v7  ;;  %6092 = vmatmul.msk.f32.vlgmr.msra.gmra.mxu0 %vm693_vm0, %v691_v10  ;;  %v6351_v16 = vmul.f32 0.5, %v786_v12  ;;  %v382_v19 = vand.u32 2147483647, %v6317_v4  ;;  %v8760_v43 = vmov 920167782  }
   0x6   :  { %v77_v13 = vshrl.u32 %v76_v9, 23  ;;  %v80_v14 = vand.u32 8388607, %v73_v8  ;;  %6094 = vmatmul.msk.f32.vlgmr.msra.gmra.mxu1 %vm693_vm0, %v691_v10  ;;  %v386_v15 = vshrl.u32 %v385_v11, 23  ;;  %v8770_v52 = vmov 1326507024  }
   0x7   :  { %v793_v25 = vand.u32 2139095040, %v6351_v16  ;;  %v389_v27 = vand.u32 8388607, %v382_v19 }
   0x8   :  { %v6080_v17 = vadd.s32 4294967169, %v77_v13  ;;  %v81_v18 = vor.u32 8388608, %v80_v14  ;;  %v6086_v20 = vadd.s32 4294967169, %v386_v15 }
   0x9   :  { %v6369_v33 = vshrl.u32 %v793_v25, 23  ;;  %v390_v46 = vor.u32 8388608, %v389_v27 }
   0xa   :  { %v83_v21 = vadd.s32 1, %v6080_v17  ;;  %v6354_v22 = vshll.u32 %v81_v18, 8  ;;  %v392_v23 = vadd.s32 1, %v6086_v20 }
   0xb   :  { %v6420_v20 = vshll.u32 %v390_v46, 8 }
   0xc   :  { %vm84_vm1 = vcmp.gt.s32.totalorder %v83_v21, 0  ;;  %vm393_vm2 = vcmp.gt.s32.totalorder %v392_v23, 0  ;;  %v122_v31 = vand.u32 65535, %v6354_v22  ;;  %v123_v45 = vshrl.u32 %v6354_v22, 16 }
   0xd   :  { %v85_v26 = vsel %vm84_vm1, %v83_v21, 0  ;;  %v394_v29 = vsel %vm393_vm2, %v392_v23, 0  ;;  %6093 = vmatmul.msk.f32.gmra.mxu0 %vm693_vm0, %v692_v24 }
   0xe   :  { %v87_v28 = vand.u32 31, %v85_v26  ;;  %6095 = vmatmul.msk.f32.gmra.mxu1 %vm693_vm0, %v692_v24  ;;  %v6364_v30 = vshrl.u32 %v85_v26, 5  ;;  %v6367_v32 = vand.u32 31, %v394_v29  ;;  %v6380_v50 = vshrl.u32 %v394_v29, 5 }
  0x10   :  { %v88_v34 = vsub.s32 32, %v87_v28  ;;  %v90_v36 = vshll.u32 %v8764_v35, %v87_v28  ;;  %v93_v38 = vshll.u32 %v8758_v37, %v87_v28  ;;  %v96_v40 = vshll.u32 %v8756_v39, %v87_v28 }
  0x11   :  { %v99_v42 = vshll.u32 %v8780_v41, %v87_v28  ;;  %v102_v44 = vshll.u32 %v8760_v43, %v87_v28  ;;  %vm105_vm3 = vcmp.lt.s32.totalorder %v6364_v30, 1  ;;  %vm108_vm4 = vcmp.lt.s32.totalorder %v6364_v30, 4 }
  0x12   :  { %v91_v47 = vshrl.u32 %v8758_v37, %v88_v34  ;;  %v94_v48 = vshrl.u32 %v8756_v39, %v88_v34  ;;  %v97_v49 = vshrl.u32 %v8780_v41, %v88_v34  ;;  %v100_v51 = vshrl.u32 %v8760_v43, %v88_v34 }
  0x13   :  { %v103_v53 = vshrl.u32 %v8770_v52, %v88_v34  ;;  %v6387_v57 = vsub.s32 32, %v6367_v32  ;;  %v89_v58 = vshrl.u32 %v8764_v35, %v88_v34  ;;  %vm107_vm5 = vcmp.lt.s32.totalorder %v6364_v30, 3 }
  0x14   :  { %v92_v54 = vor.u32 %v91_v47, %v90_v36  ;;  %v95_v55 = vor.u32 %v94_v48, %v93_v38  ;;  %v98_v56 = vor.u32 %v97_v49, %v96_v40  ;;  %v101_v59 = vor.u32 %v100_v51, %v99_v42 }
  0x15   :  { %v104_v60 = vor.u32 %v103_v53, %v102_v44  ;;  %vm106_vm6 = vcmp.lt.s32.totalorder %v6364_v30, 2  ;;  %v399_v63 = vshll.u32 %v8764_v35, %v6367_v32  ;;  %v400_v9 = vshrl.u32 %v8758_v37, %v6387_v57 }
  0x16   :  { %v113_v61 = vsel %vm105_vm3, %v92_v54, %v95_v55  ;;  %v117_v62 = vsel %vm105_vm3, %v95_v55, %v98_v56  ;;  %v114_v1 = vsel %vm108_vm4, %v101_v59, 920167782  ;;  %v402_v10 = vshll.u32 %v8758_v37, %v6367_v32 }
  0x17   :  { %v118_v2 = vsel %vm108_vm4, %v104_v60, 1326507024  ;;  %v110_v11 = vsel %vm108_vm4, %v98_v56, 2102212464  ;;  %v115_v12 = vsel %vm107_vm5, %v98_v56, %v114_v1  ;;  %v403_v14 = vshrl.u32 %v8756_v39, %v6387_v57 }
  0x18   :  { %v119_v13 = vsel %vm107_vm5, %v101_v59, %v118_v2  ;;  %v109_v15 = vsel %vm105_vm3, %v89_v58, %v92_v54  ;;  %v116_v17 = vsel %vm106_vm6, %v113_v61, %v115_v12  ;;  %v111_v26 = vsel %vm107_vm5, %v95_v55, %v110_v11 }
  0x19   :  { %v120_v18 = vsel %vm106_vm6, %v117_v62, %v119_v13  ;;  %v146_v24 = vand.u32 65535, %v116_v17  ;;  %v147_v25 = vshrl.u32 %v116_v17, 16  ;;  %v6424_v27 = vor.u32 %v400_v9, %v399_v63 }
  0x1a   :  { %v124_v21 = vand.u32 65535, %v120_v18  ;;  %v125_v23 = vshrl.u32 %v120_v18, 16  ;;  %v6426_v28 = vor.u32 %v403_v14, %v402_v10  ;;  %v405_v29 = vshll.u32 %v8756_v39, %v6367_v32 }
  0x1b   :  { %v406_v40 = vshrl.u32 %v8780_v41, %v6387_v57  ;;  %v148_v42 = vmul.u32 %v146_v24, %v122_v31  ;;  %v149_v44 = vmul.u32 %v147_v25, %v122_v31  ;;  %v150_v46 = vmul.u32 %v146_v24, %v123_v45 }
  0x1c   :  { %v126_v34 = vmul.u32 %v124_v21, %v122_v31  ;;  %v127_v36 = vmul.u32 %v125_v23, %v122_v31  ;;  %v128_v38 = vmul.u32 %v124_v21, %v123_v45  ;;  %v408_v47 = vshll.u32 %v8780_v41, %v6367_v32 }
  0x1d   :  { %v129_v48 = vmul.u32 %v125_v23, %v123_v45  ;;  %v151_v53 = vmul.u32 %v147_v25, %v123_v45  ;;  %v152_v56 = vshll.u32 %v149_v44, 16  ;;  %v154_v58 = vshll.u32 %v150_v46, 16 }
  0x1e   :  { %v130_v49 = vshll.u32 %v127_v36, 16  ;;  %v132_v51 = vshll.u32 %v128_v38, 16  ;;  %v131_v54 = vshrl.u32 %v127_v36, 16  ;;  %v133_v55 = vshrl.u32 %v128_v38, 16 }
  0x1f   :  { %v153_v60 = vshrl.u32 %v149_v44, 16  ;;  %v155_v61 = vshrl.u32 %v150_v46, 16  ;;  %v8772_v62 = vmov 0   ;;  %vm156_vm8 = vc.u32 %v148_v42, %v152_v56 }
  0x20   :  { %vm134_vm7 = vc.u32 %v126_v34, %v130_v49  ;;  %v136_v59 = vadd.s32 %v130_v49, %v126_v34  ;;  %v158_v31 = vadd.s32 %v152_v56, %v148_v42  ;;  %v409_v1 = vshrl.u32 %v8760_v43, %v6387_v57 }
  0x21   :  { %v135_v63 = vsel %vm134_vm7, 1, %v8772_v62  ;;  %v157_v45 = vsel %vm156_vm8, 1, %v8772_v62  ;;  %v411_v9 = vshll.u32 %v8760_v43, %v6367_v32  ;;  %v407_v12 = vor.u32 %v406_v40, %v405_v29 }
  0x22   :  { %v137_v2 = vadd.s32 %v135_v63, %v129_v48  ;;  %vm138_vm9 = vc.u32 %v136_v59, %v132_v51  ;;  %v159_v11 = vadd.s32 %v157_v45, %v151_v53  ;;  %vm160_vm10 = vc.u32 %v158_v31, %v154_v58 }
  0x23   :  { %v139_v10 = vsel %vm138_vm9, 1, %v8772_v62  ;;  %v161_v14 = vsel %vm160_vm10, 1, %v8772_v62  ;;  %v410_v17 = vor.u32 %v409_v1, %v408_v47  ;;  %v412_v18 = vshrl.u32 %v8770_v52, %v6387_v57 }
  0x24   :  { %v141_v13 = vadd.s32 %v139_v10, %v137_v2  ;;  %v6444_v21 = vadd.s32 %v158_v31, %v154_v58  ;;  %v163_v23 = vadd.s32 %v161_v14, %v159_v11  ;;  %vm414_vm11 = vcmp.lt.s32.totalorder %v6380_v50, 1 }
  0x25   :  { %vm416_vm12 = vcmp.lt.s32.totalorder %v6380_v50, 3  ;;  %v413_v24 = vor.u32 %v412_v18, %v411_v9  ;;  %vm415_vm13 = vcmp.lt.s32.totalorder %v6380_v50, 2  ;;  %vm417_vm14 = vcmp.lt.s32.totalorder %v6380_v50, 4 }
  0x26   :  { %v142_v32 = vadd.s32 %v141_v13, %v131_v54  ;;  %v112_v25 = vsel %vm106_vm6, %v109_v15, %v111_v26  ;;  %v164_v29 = vadd.s32 %v163_v23, %v153_v60  ;;  %v422_v34 = vsel %vm414_vm11, %v6424_v27, %v6426_v28 }
  0x27   :  { %v423_v36 = vsel %vm417_vm14, %v410_v17, 920167782  ;;  %v426_v42 = vsel %vm414_vm11, %v6426_v28, %v407_v12  ;;  %v427_v26 = vsel %vm417_vm14, %v413_v24, 1326507024  ;;  %v6096_v44 = vadd.s32 4294967169, %v6369_v33 }
  0x28   :  { %v6458_v38 = vadd.s32 %v142_v32, %v133_v55  ;;  %v424_v40 = vsel %vm416_vm12, %v407_v12, %v423_v36  ;;  %v165_v30 = vadd.s32 %v164_v29, %v155_v61  ;;  %v166_v46 = vmul.u32 %v6354_v22, %v112_v25 }
  0x29   :  { %v425_v15 = vsel %vm415_vm13, %v422_v34, %v424_v40  ;;  %v428_v47 = vsel %vm416_vm12, %v410_v17, %v427_v26  ;;  %v431_v48 = vand.u32 65535, %v6420_v20  ;;  %v432_v53 = vshrl.u32 %v6420_v20, 16 }
  0x2a   :  { %vm168_vm15 = vc.u32 %v6458_v38, %v6444_v21  ;;  %v169_v49 = vadd.s32 1, %v165_v30  ;;  %v429_v51 = vsel %vm415_vm13, %v426_v42, %v428_v47  ;;  %v455_v54 = vand.u32 65535, %v425_v15 }
  0x2b   :  { %v433_v55 = vand.u32 65535, %v429_v51  ;;  %v434_v56 = vshrl.u32 %v429_v51, 16  ;;  %v456_v33 = vshrl.u32 %v425_v15, 16  ;;  %v398_v22 = vshrl.u32 %v8764_v35, %v6387_v57 }
  0x2c   :  { %v170_v58 = vsel %vm168_vm15, %v169_v49, %v165_v30  ;;  %v459_v59 = vmul.u32 %v455_v54, %v432_v53  ;;  %v457_v1 = vmul.u32 %v455_v54, %v431_v48  ;;  %v800_v45 = vadd.s32 1, %v6096_v44 }
  0x2d   :  { %v171_v60 = vadd.s32 %v170_v58, %v166_v46  ;;  %v435_v61 = vmul.u32 %v433_v55, %v431_v48  ;;  %v436_v63 = vmul.u32 %v434_v56, %v431_v48  ;;  %v437_v31 = vmul.u32 %v433_v55, %v432_v53 }
  0x2e   :  { %v458_v2 = vmul.u32 %v456_v33, %v431_v48  ;;  %v438_v10 = vmul.u32 %v434_v56, %v432_v53  ;;  %v418_v14 = vsel %vm414_vm11, %v398_v22, %v6424_v27  ;;  %v419_v17 = vsel %vm417_vm14, %v407_v12, 2102212464 }
  0x2f   :  { %v172_v9 = vadd.s32 536870912, %v171_v60  ;;  %v439_v11 = vshll.u32 %v436_v63, 16  ;;  %v441_v13 = vshll.u32 %v437_v31, 16  ;;  %v463_v18 = vshll.u32 %v459_v59, 16 }
  0x30   :  { %v461_v57 = vshll.u32 %v458_v2, 16  ;;  %v460_v24 = vmul.u32 %v456_v33, %v432_v53  ;;  %v440_v25 = vshrl.u32 %v436_v63, 16  ;;  %vm801_vm4 = vcmp.gt.s32.totalorder %v800_v45, 0 }
  0x31   :  { %v6486_v23 = vshrl.u32 %v172_v9, 30  ;;  %vm443_vm1 = vc.u32 %v435_v61, %v439_v11  ;;  %v445_v32 = vadd.s32 %v439_v11, %v435_v61  ;;  %v442_v27 = vshrl.u32 %v437_v31, 16 }
  0x32   :  { %v444_v29 = vsel %vm443_vm1, 1, %v8772_v62  ;;  %vm465_vm2 = vc.u32 %v457_v1, %v461_v57  ;;  %v467_v34 = vadd.s32 %v461_v57, %v457_v1  ;;  %v462_v26 = vshrl.u32 %v458_v2, 16 }
  0x33   :  { %v174_v36 = vshll.u32 %v6486_v23, 30  ;;  %v446_v40 = vadd.s32 %v444_v29, %v438_v10  ;;  %vm447_vm3 = vc.u32 %v445_v32, %v441_v13  ;;  %v466_v42 = vsel %vm465_vm2, 1, %v8772_v62 }
  0x34   :  { %v448_v12 = vsel %vm447_vm3, 1, %v8772_v62  ;;  %vm469_vm5 = vc.u32 %v467_v34, %v463_v18  ;;  %v468_v44 = vadd.s32 %v466_v42, %v460_v24  ;;  %v420_v46 = vsel %vm416_vm12, %v6426_v28, %v419_v17 }
  0x35   :  { %v175_v30 = vsub.s32 %v171_v60, %v174_v36  ;;  %v450_v15 = vadd.s32 %v448_v12, %v446_v40  ;;  %v464_v47 = vshrl.u32 %v459_v59, 16  ;;  %v470_v48 = vsel %vm469_vm5, 1, %v8772_v62 }
  0x36   :  { %v802_v49 = vsel %vm801_vm4, %v800_v45, 0  ;;  %v472_v54 = vadd.s32 %v470_v48, %v468_v44  ;;  %v6496_v55 = vadd.s32 %v467_v34, %v463_v18  ;;  %v421_v61 = vsel %vm415_vm13, %v418_v14, %v420_v46 }
  0x37   :  { %vm176_vm6 = vcmp.lt.s32.totalorder %v175_v30, 0  ;;  %v177_v51 = vsub.s32 0, %v175_v30  ;;  %v451_v53 = vadd.s32 %v450_v15, %v440_v25  ;;  %v804_v56 = vand.u32 31, %v802_v49 }
  0x38   :  { %v473_v22 = vadd.s32 %v472_v54, %v462_v26  ;;  %v790_v28 = vand.u32 2147483647, %v6351_v16  ;;  %v475_v1 = vmul.u32 %v6420_v20, %v421_v61  ;;  %v167_v45 = vadd.s32 %v6444_v21, %v6458_v38 }
  0x39   :  { %v178_v33 = vsel %vm176_vm6, %v177_v51, %v175_v30  ;;  %v6498_v58 = vadd.s32 %v451_v53, %v442_v27  ;;  %v6503_v63 = vsub.s32 32, %v804_v56  ;;  %v810_v9 = vshll.u32 %v8758_v37, %v804_v56 }
  0x3a   :  { %v179_v60 = vclz %v178_v33  ;;  %v474_v59 = vadd.s32 %v473_v22, %v464_v47  ;;  %v797_v50 = vand.u32 8388607, %v790_v28  ;;  %v813_v14 = vshll.u32 %v8756_v39, %v804_v56 }
  0x3b   :  { %vm477_vm7 = vc.u32 %v6498_v58, %v6496_v55  ;;  %v811_v13 = vshrl.u32 %v8756_v39, %v6503_v63  ;;  %v814_v18 = vshrl.u32 %v8780_v41, %v6503_v63  ;;  %v6518_v38 = vshrl.u32 %v802_v49, 5 }
  0x3c   :  { %v6081_v31 = vadd.s32 4294967294, %v179_v60  ;;  %v478_v2 = vadd.s32 1, %v474_v59  ;;  %v819_v32 = vshll.u32 %v8760_v43, %v804_v56  ;;  %v798_v29 = vor.u32 8388608, %v797_v50 }
  0x3d   :  { %v816_v36 = vshll.u32 %v8780_v41, %v804_v56  ;;  %v817_v40 = vshrl.u32 %v8760_v43, %v6503_v63  ;;  %v820_v27 = vshrl.u32 %v8770_v52, %v6503_v63  ;;  %v6528_v15 = vor.u32 %v814_v18, %v813_v14 }
  0x3e   :  { %vm6082_vm8 = vcmp.lt.s32.totalorder %v6081_v31, 0  ;;  %v479_v11 = vsel %vm477_vm7, %v478_v2, %v474_v59  ;;  %v28_v26 = vlaneseq  ;;  %vm822_vm9 = vcmp.lt.s32.totalorder %v6518_v38, 1 }
  0x3f   :  { %v182_v10 = vsel %vm6082_vm8, 0, %v6081_v31  ;;  %v480_v21 = vadd.s32 %v479_v11, %v475_v1  ;;  %v821_v46 = vor.u32 %v820_v27, %v819_v32  ;;  %vm825_vm10 = vcmp.lt.s32.totalorder %v6518_v38, 4 }
  0x40   :  { %v183_v17 = vsub.s32 32, %v182_v10  ;;  %v184_v57 = vshll.u32 %v175_v30, %v182_v10  ;;  %v187_v20 = vsub.s32 4294967266, %v182_v10  ;;  %v6526_v30 = vor.u32 %v811_v13, %v810_v9 }
  0x41   :  { %v481_v34 = vadd.s32 536870912, %v480_v21  ;;  %vm824_vm11 = vcmp.lt.s32.totalorder %v6518_v38, 3  ;;  %v6536_v51 = vshll.u32 %v798_v29, 8  ;;  %v818_v54 = vor.u32 %v817_v40, %v816_v36 }
  0x42   :  { %v185_v24 = vshrl.u32 %v167_v45, %v183_v17  ;;  %v188_v25 = vadd.s32 127, %v187_v20  ;;  %vm823_vm12 = vcmp.lt.s32.totalorder %v6518_v38, 2  ;;  %v834_v33 = vsel %vm822_vm9, %v6526_v30, %v6528_v15 }
  0x43   :  { %v6530_v44 = vshrl.u32 %v481_v34, 30  ;;  %v6543_v22 = vshrl.u32 %v28_v26, 7  ;;  %vm75_vm13 = vcmp.lt.s32.totalorder %v6315_v3, 0  ;;  %v835_v61 = vsel %vm825_vm10, %v821_v46, 1326507024 }
  0x44   :  { %v186_v12 = vor.u32 %v185_v24, %v184_v57  ;;  %v189_v42 = vshll.u32 %v188_v25, 23  ;;  %v807_v31 = vshll.u32 %v8764_v35, %v804_v56  ;;  %v808_v1 = vshrl.u32 %v8758_v37, %v6503_v63 }
  0x45   :  { %v483_v49 = vshll.u32 %v6530_v44, 30  ;;  %v836_v2 = vsel %vm824_vm11, %v818_v54, %v835_v61  ;;  %v6556_v9 = vand.u32 65535, %v6536_v51  ;;  %vm6560_vm15 = vcmp.le.f32.partialorder %v73_v8, 0.7853982  ;;  %v788_v61 = vld [vmem:[%s8749_s0 + $0x5] sm:$0x1] }
  0x46   :  { %v190_v47 = vor.u32 4788187, %v189_v42  ;;  %v193_v48 = vcvt.s32.f32 %v186_v12  ;;  %v837_v50 = vsel %vm823_vm12, %v834_v33, %v836_v2  ;;  %v6565_v11 = vadd.s32 8, %v6543_v22 }
  0x47   :  { %v484_v60 = vsub.s32 %v480_v21, %v483_v49  ;;  %v842_v14 = vshrl.u32 %v837_v50, 16  ;;  %v809_v20 = vor.u32 %v808_v1, %v807_v31  ;;  %v831_v18 = vsel %vm825_vm10, %v818_v54, 920167782 }
  0x48   :  { %v191_v53 = vand.u32 2147483647, %v190_v47  ;;  %v6577_v21 = vshrl.u32 %v6536_v51, 16  ;;  %v841_v32 = vand.u32 65535, %v837_v50  ;;  %v32_v34 = vshra.s32 %v6565_v11, 3 }
  0x49   :  { %vm485_vm14 = vcmp.lt.s32.totalorder %v484_v60, 0  ;;  %v486_v45 = vsub.s32 0, %v484_v60  ;;  %v6580_v24 = vmul.u32 %v842_v14, %v6556_v9  ;;  %v476_v36 = vadd.s32 %v6496_v55, %v6498_v58 }
  0x4a   :  { %v194_v59 = vmul.f32 %v193_v48, %v191_v53  ;;  %v830_v27 = vsel %vm822_vm9, %v809_v20, %v6526_v30  ;;  %v832_v12 = vsel %vm824_vm11, %v6528_v15, %v831_v18  ;;  %v843_v26 = vmul.u32 %v841_v32, %v6556_v9 }
  0x4b   :  { %v487_v13 = vsel %vm485_vm14, %v486_v45, %v484_v60  ;;  %v6598_v46 = vmul.u32 %v841_v32, %v6577_v21  ;;  %v847_v47 = vshll.u32 %v6580_v24, 16  ;;  %v197_v53 = vsub.s32 4, %v6486_v23 }
  0x4c   :  { %v195_v56 = vxor.u32 2147483648, %v194_v59  ;;  %v488_v57 = vclz %v487_v13  ;;  %v6608_v31 = vand.u32 1, %v32_v34  ;;  %v506_v18 = vsub.s32 4, %v6530_v44 }
  0x4d   :  { %v849_v2 = vshll.u32 %v6598_v46, 16  ;;  %vm851_vm2 = vc.u32 %v843_v26, %v847_v47  ;;  %v806_v32 = vshrl.u32 %v8764_v35, %v6503_v63  ;;  %v853_v34 = vadd.s32 %v847_v47, %v843_v26 }
  0x4e   :  { %v196_v17 = vsel %vm75_vm13, %v195_v56, %v194_v59  ;;  %v6087_v29 = vadd.s32 4294967294, %v488_v57  ;;  %v833_v59 = vsel %vm823_vm12, %v830_v27, %v832_v12  ;;  %v198_v56 = vsel %vm75_vm13, %v197_v53, %v6486_v23 }
  0x4f   :  { %v6574_v8 = vsel %vm6560_vm15, %v6315_v3, %v196_v17  ;;  %v6615_v17 = vmul.f32 0.5, %v788_v61  ;;  %v864_v57 = vshrl.u32 %v833_v59, 16  ;;  %v852_v27 = vsel %vm851_vm2, 1, %v8772_v62 }
  0x50   :  { %v6584_v25 = vmul.f32 %v6574_v8, %v6574_v8  ;;  %vm6088_vm1 = vcmp.lt.s32.totalorder %v6087_v29, 0  ;;  %v863_v12 = vand.u32 65535, %v833_v59  ;;  %vm855_vm3 = vc.u32 %v853_v34, %v849_v2 }
  0x51   :  { %v491_v42 = vsel %vm6088_vm1, 0, %v6087_v29  ;;  %v846_v29 = vmul.u32 %v842_v14, %v6577_v21  ;;  %vm384_vm4 = vcmp.lt.s32.totalorder %v6317_v4, 0  ;;  %v866_v14 = vmul.u32 %v864_v57, %v6556_v9 }
  0x52   :  { %v209_v40 = vmul.f32 -0.00019511016, %v6584_v25  ;;  %v202_v55 = vmul.f32 -0.001358992, %v6584_v25  ;;  %v492_v48 = vsub.s32 32, %v491_v42  ;;  %v493_v49 = vshll.u32 %v484_v60, %v491_v42 }
  0x53   :  { %v496_v54 = vsub.s32 4294967266, %v491_v42  ;;  %v36_v26 = vmul.u32 2, %v6608_v31  ;;  %v507_v47 = vsel %vm384_vm4, %v506_v18, %v6530_v44  ;;  %v856_v53 = vsel %vm855_vm3, 1, %v8772_v62 }
  0x54   :  { %v210_v58 = vadd.f32 0.008332121, %v209_v40  ;;  %v494_v33 = vshrl.u32 %v476_v36, %v492_v48  ;;  %v203_v45 = vadd.f32 0.041655596, %v202_v55  ;;  %v827_v55 = vsel %vm825_vm10, %v6528_v15, 2102212464 }
  0x55   :  { %v497_v1 = vadd.s32 127, %v496_v54  ;;  %v826_v48 = vsel %vm822_vm9, %v806_v32, %v809_v20  ;;  %v828_v10 = vsel %vm824_vm11, %v6526_v30, %v827_v55  ;;  %v867_v54 = vmul.u32 %v863_v12, %v6577_v21 }
  0x56   :  { %v211_v50 = vmul.f32 %v210_v58, %v6584_v25  ;;  %v495_v60 = vor.u32 %v494_v33, %v493_v49  ;;  %v204_v42 = vmul.f32 %v203_v45, %v6584_v25  ;;  %v200_v58 = vsel %vm6560_vm15, 0, %v198_v56 }
  0x57   :  { %v498_v13 = vshll.u32 %v497_v1, 23  ;;  %v854_v49 = vadd.s32 %v852_v27, %v846_v29  ;;  %v6642_v59 = vand.u32 3, %v200_v58  ;;  %vm383_vm5 = vcmp.le.f32.partialorder %v382_v19, 0.7853982 }
  0x58   :  { %v502_v40 = vcvt.s32.f32 %v495_v60  ;;  %v212_v23 = vadd.f32 -0.16666654, %v211_v50  ;;  %v205_v33 = vadd.f32 -0.4999988, %v204_v42  ;;  %v509_v20 = vsel %vm383_vm5, 0, %v507_v47 }
  0x59   :  { %v499_v36 = vor.u32 4788187, %v498_v13  ;;  %v865_v1 = vmul.u32 %v863_v12, %v6556_v9  ;;  %v869_v2 = vshll.u32 %v866_v14, 16  ;;  %v6649_v30 = vsel %vm823_vm12, %v826_v48, %v828_v10 }
  0x5a   :  { %v213_v61 = vmul.f32 %v212_v23, %v6584_v25  ;;  %v848_v45 = vshrl.u32 %v6580_v24, 16  ;;  %v858_v50 = vadd.s32 %v856_v53, %v854_v49  ;;  %v1102_v60 = vand.u32 2139095040, %v6615_v17 }
  0x5b   :  { %v500_v63 = vand.u32 2147483647, %v499_v36  ;;  %v850_v13 = vshrl.u32 %v6598_v46, 16  ;;  %v868_v19 = vmul.u32 %v864_v57, %v6577_v21  ;;  %v871_v18 = vshll.u32 %v867_v54, 16 }
  0x5c   :  { %v206_v9 = vmul.f32 %v205_v33, %v6584_v25  ;;  %v214_v32 = vadd.f32 1.0, %v213_v61  ;;  %v680_v29 = vadd.s32 3, %v509_v20  ;;  %vm219_vm6 = vcmp.eq.s32.totalorder %v6642_v59, 0 }
  0x5d   :  { %v503_v15 = vmul.f32 %v502_v40, %v500_v63  ;;  %vm222_vm7 = vcmp.eq.s32.totalorder %v6642_v59, 2  ;;  %v6665_v34 = vand.u32 3, %v509_v20  ;;  %vm873_vm8 = vc.u32 %v865_v1, %v869_v2 }
  0x5e   :  { %v875_v46 = vadd.s32 %v869_v2, %v865_v1  ;;  %v371_v21 = vadd.s32 3, %v200_v58  ;;  %v859_v57 = vadd.s32 %v858_v50, %v848_v45  ;;  %v870_v36 = vshrl.u32 %v866_v14, 16 }
  0x5f   :  { %v504_v44 = vxor.u32 2147483648, %v503_v15  ;;  %v874_v25 = vsel %vm873_vm8, 1, %v8772_v62  ;;  %v207_v42 = vadd.f32 1.0, %v206_v9  ;;  %v215_v23 = vmul.f32 %v214_v32, %v6574_v8 }
  0x60   :  { %v876_v12 = vadd.s32 %v874_v25, %v868_v19  ;;  %vm877_vm9 = vc.u32 %v875_v46, %v871_v18  ;;  %v1103_v63 = vshrl.u32 %v1102_v60, 23  ;;  %vm218_vm10 = vcmp.lt.s32.totalorder %v6642_v59, 2 }
  0x61   :  { %v505_v56 = vsel %vm384_vm4, %v504_v44, %v503_v15  ;;  %v878_v55 = vsel %vm877_vm9, 1, %v8772_v62  ;;  %v872_v49 = vshrl.u32 %v867_v54, 16  ;;  %v31_v14 = vshra.s32 %v6543_v22, 3 }
  0x62   :  { %v6659_v38 = vsel %vm383_vm5, %v6317_v4, %v505_v56  ;;  %v880_v58 = vadd.s32 %v878_v55, %v876_v12  ;;  %v372_v15 = vand.u32 3, %v371_v21  ;;  %v6672_v10 = vadd.s32 %v859_v57, %v850_v13 }
  0x63   :  { %v510_v24 = vmul.f32 %v6659_v38, %v6659_v38  ;;  %v6102_v53 = vadd.s32 4294967169, %v1103_v63  ;;  %v6674_v44 = vadd.s32 %v875_v46, %v871_v18  ;;  %vm216_vm11 = vweird.f32 %v6315_v3 }
  0x64   :  { %v881_v8 = vadd.s32 %v880_v58, %v870_v36  ;;  %v220_v20 = vxor.u32 2147483648, %v215_v23  ;;  %v223_v1 = vxor.u32 2147483648, %v207_v42  ;;  %v681_v2 = vand.u32 3, %v680_v29 }
  0x65   :  { %v511_v40 = vmul.f32 -0.001358992, %v510_v24  ;;  %v518_v27 = vmul.f32 -0.00019511016, %v510_v24  ;;  %v1109_v45 = vadd.s32 1, %v6102_v53  ;;  %vm527_vm12 = vcmp.lt.s32.totalorder %v6665_v34, 2 }
  0x66   :  { %vm528_vm13 = vcmp.eq.s32.totalorder %v6665_v34, 0  ;;  %v882_v60 = vadd.s32 %v881_v8, %v872_v49  ;;  %vm531_vm14 = vcmp.eq.s32.totalorder %v6665_v34, 2  ;;  %v33_v56 = vand.u32 1, %v31_v14 }
  0x67   :  { %v512_v47 = vadd.f32 0.041655596, %v511_v40  ;;  %v519_v48 = vadd.f32 0.008332121, %v518_v27  ;;  %vm377_vm15 = vcmp.eq.s32.totalorder %v372_v15, 2  ;;  %vm1110_vm1 = vcmp.gt.s32.totalorder %v1109_v45, 0 }
  0x68   :  { %vm885_vm2 = vc.u32 %v6672_v10, %v6674_v44  ;;  %v886_v18 = vadd.s32 1, %v882_v60  ;;  %v221_v9 = vsel %vm219_vm6, %v207_v42, %v220_v20  ;;  %v224_v32 = vsel %vm222_vm7, %v223_v1, %v215_v23 }
  0x69   :  { %v513_v33 = vmul.f32 %v512_v47, %v510_v24  ;;  %v520_v61 = vmul.f32 %v519_v48, %v510_v24  ;;  %vm686_vm3 = vcmp.eq.s32.totalorder %v681_v2, 2  ;;  %vm374_vm4 = vcmp.eq.s32.totalorder %v372_v15, 0 }
  0x6a   :  { %v883_v21 = vmul.u32 %v6536_v51, %v6649_v30  ;;  %v1111_v57 = vsel %vm1110_vm1, %v1109_v45, 0  ;;  %v35_v36 = vmul.u32 2, %v33_v56  ;;  %vm373_vm5 = vcmp.lt.s32.totalorder %v372_v15, 2 }
  0x6b   :  { %v514_v50 = vadd.f32 -0.4999988, %v513_v33  ;;  %v521_v54 = vadd.f32 -0.16666654, %v520_v61  ;;  %v887_v25 = vsel %vm885_vm2, %v886_v18, %v882_v60  ;;  %v376_v12 = vsel %vm374_vm4, %v207_v42, %v220_v20 }
  0x6c   :  { %v1099_v55 = vand.u32 2147483647, %v6615_v17  ;;  %v225_v63 = vsel %vm218_vm10, %v221_v9, %v224_v32  ;;  %vm682_vm6 = vcmp.lt.s32.totalorder %v681_v2, 2  ;;  %vm683_vm7 = vcmp.eq.s32.totalorder %v681_v2, 0 }
  0x6d   :  { %v515_v13 = vmul.f32 %v514_v50, %v510_v24  ;;  %v522_v19 = vmul.f32 %v521_v54, %v510_v24  ;;  %v379_v24 = vsel %vm377_vm15, %v223_v1, %v215_v23  ;;  %v1113_v47 = vand.u32 31, %v1111_v57 }
  0x6e   :  { %v6696_v23 = vadd.s32 %v887_v25, %v883_v21  ;;  %vm525_vm8 = vweird.f32 %v6317_v4  ;;  %v6072_v42 = vadd.s32 4294967295, %v35_v36  ;;  %v380_v59 = vsel %vm373_vm5, %v376_v12, %v379_v24 }
  0x6f   :  { %v516_v29 = vadd.f32 1.0, %v515_v13  ;;  %v523_v46 = vadd.f32 1.0, %v522_v19  ;;  %v226_v49 = vsel %vm216_vm11, nan, %v225_v63  ;;  %v1106_v53 = vand.u32 8388607, %v1099_v55 }
  0x70   :  { %v381_v61 = vsel %vm216_vm11, nan, %v380_v59  ;;  %v889_v8 = vadd.s32 536870912, %v6696_v23  ;;  %v6718_v45 = vcvt.s32.f32 %v6072_v42  ;;  %v6720_v34 = vshrl.u32 %v1111_v57, 5 }
  0x71   :  { %v524_v40 = vmul.f32 %v523_v46, %v6659_v38  ;;  %v532_v27 = vxor.u32 2147483648, %v516_v29  ;;  %v6073_v38 = vadd.s32 4294967295, %v36_v26  ;;  %v6711_v26 = vsub.s32 32, %v1113_v47 }
  0x72   :  { %v1107_v54 = vor.u32 8388608, %v1106_v53  ;;  %v1116_v2 = vshll.u32 %v8764_v35, %v1113_v47  ;;  %v1119_v3 = vshll.u32 %v8758_v37, %v1113_v47  ;;  %v6726_v19 = vshrl.u32 %v889_v8, 30 }
  0x73   :  { %v529_v48 = vxor.u32 2147483648, %v524_v40  ;;  %v533_v51 = vsel %vm531_vm14, %v532_v27, %v524_v40  ;;  %v688_v30 = vsel %vm686_vm3, %v532_v27, %v524_v40  ;;  %v6716_v20 = vcvt.s32.f32 %v6073_v38 }
  0x74   :  { %v1117_v13 = vshrl.u32 %v8758_v37, %v6711_v26  ;;  %v1120_v18 = vshrl.u32 %v8756_v39, %v6711_v26  ;;  %v1122_v9 = vshll.u32 %v8756_v39, %v1113_v47  ;;  %v1123_v32 = vshrl.u32 %v8780_v41, %v6711_v26 }
  0x75   :  { %v530_v58 = vsel %vm528_vm13, %v516_v29, %v529_v48  ;;  %v685_v14 = vsel %vm683_vm7, %v516_v29, %v529_v48  ;;  %v1125_v29 = vshll.u32 %v8780_v41, %v1113_v47  ;;  %v1126_v46 = vshrl.u32 %v8760_v43, %v6711_v26 }
  0x76   :  { %v534_v33 = vsel %vm527_vm12, %v530_v58, %v533_v51  ;;  %v689_v31 = vsel %vm682_vm6, %v685_v14, %v688_v30  ;;  %v1128_v21 = vshll.u32 %v8760_v43, %v1113_v47  ;;  %v1129_v57 = vshrl.u32 %v8770_v52, %v6711_v26 }
  0x77   :  { %v535_v4 = vsel %vm525_vm8, nan, %v534_v33  ;;  %v690_v15 = vsel %vm525_vm8, nan, %v689_v31  ;;  %v6740_v40 = vor.u32 %v1117_v13, %v1116_v2  ;;  %v6742_v27 = vshll.u32 %v1107_v54, 8 }
  0x78   :  { %v748_v1 = vmul.f32 %v690_v15, %v226_v49  ;;  %v746_v50 = vmul.f32 %v535_v4, %v226_v49  ;;  %v752_v56 = vmul.f32 %v535_v4, %v381_v61  ;;  %v891_v63 = vshll.u32 %v6726_v19, 30 }
  0x79   :  { %v6746_v48 = vor.u32 %v1120_v18, %v1119_v3  ;;  %v6748_v51 = vor.u32 %v1123_v32, %v1122_v9  ;;  %v1127_v38 = vor.u32 %v1126_v46, %v1125_v29  ;;  %v1130_v42 = vor.u32 %v1129_v57, %v1128_v21 }
  0x7a   :  { %v749_v60 = vperm.slane %v748_v1, 0  ;;  %v756_v36 = vperm.slane %v746_v50, 0  ;;  %v753_v25 = vperm.slane %v752_v56, 0  ;;  %vm1131_vm9 = vcmp.lt.s32.totalorder %v6720_v34, 1 }
  0x7b   :  { %vm1132_vm10 = vcmp.lt.s32.totalorder %v6720_v34, 2  ;;  %vm1133_vm11 = vcmp.lt.s32.totalorder %v6720_v34, 3  ;;  %vm1134_vm12 = vcmp.lt.s32.totalorder %v6720_v34, 4  ;;  %v1139_v1 = vsel %vm1131_vm9, %v6740_v40, %v6746_v48 }
  0x7c   :  { %v750_v24 = vmul.f32 %v749_v60, %v6718_v45  ;;  %v751_v12 = vmul.f32 %v749_v60, %v6716_v20  ;;  %v757_v59 = vmul.f32 %v756_v36, %v6329_v6  ;;  %v758_v58 = vmul.f32 %v756_v36, %v6307_v0 }
  0x7d   :  { %v772_v53 = vmul.f32 %v6334_v7, %v756_v36  ;;  %v754_v33 = vmul.f32 %v753_v25, %v6718_v45  ;;  %v773_v8 = vmul.f32 %v6323_v5, %v756_v36  ;;  %v747_v50 = vmul.f32 %v690_v15, %v381_v61 }
  0x7e   :  { %v759_v49 = vmul.f32 %v6334_v7, %v750_v24  ;;  %v774_v14 = vmul.f32 %v750_v24, %v6329_v6  ;;  %v775_v31 = vmul.f32 %v751_v12, %v6307_v0  ;;  %v760_v4 = vmul.f32 %v6323_v5, %v751_v12 }
  0x7f   :  { %v6768_v54 = vsub.s32 %v6696_v23, %v891_v63  ;;  %v1140_v6 = vsel %vm1134_vm12, %v1127_v38, 920167782  ;;  %v755_v2 = vmul.f32 %v753_v25, %v6716_v20  ;;  %v1144_v5 = vsel %vm1134_vm12, %v1130_v42, 1326507024 }
  0x80   :  { %v761_v7 = vsub.f32 %v757_v59, %v759_v49  ;;  %v1141_v0 = vsel %vm1133_vm11, %v6748_v51, %v1140_v6  ;;  %v776_v56 = vadd.f32 %v774_v14, %v772_v53  ;;  %v762_v15 = vsub.f32 %v758_v58, %v760_v4 }
  0x81   :  { %v1142_v23 = vsel %vm1132_vm10, %v1139_v1, %v1141_v0  ;;  %v777_v61 = vadd.f32 %v775_v31, %v773_v8  ;;  %v1148_v3 = vand.u32 65535, %v6742_v27  ;;  %v1149_v18 = vshrl.u32 %v6742_v27, 16 }
  0x82   :  { %v717_v47 = vpop.f32.mrf.mxu0  ;;  %v767_v9 = vperm.slane %v747_v50, 0  ;;  %v894_v46 = vsub.s32 0, %v6768_v54  ;;  %v1143_v21 = vsel %vm1131_vm9, %v6746_v48, %v6748_v51  ;;  %v1145_v57 = vsel %vm1133_vm11, %v1127_v38, %v1144_v5 }
  0x83   :  { %v740_v30 = vpop.f32.mrf.mxu1  ;;  %v763_v60 = vmul.f32 %v754_v33, %v717_v47  ;;  %vm893_vm13 = vcmp.lt.s32.totalorder %v6768_v54, 0  ;;  %v1173_v25 = vshrl.u32 %v1142_v23, 16  ;;  %v1172_v59 = vand.u32 65535, %v1142_v23 }
  0x84   :  { %v778_v13 = vmul.f32 %v754_v33, %v740_v30  ;;  %v1146_v53 = vsel %vm1132_vm10, %v1143_v21, %v1145_v57  ;;  %v782_v33 = vmul.f32 %v767_v9, %v717_v47  ;;  %v768_v31 = vmul.f32 %v767_v9, %v740_v30  ;;  %v6108_v47 = vld [vmem:[%s8751_s4 + $0x10] sm:$0xff] }
  0x85   :  { %v765_v12 = vadd.f32 %v763_v60, %v761_v7  ;;  %v895_v4 = vsel %vm893_vm13, %v894_v46, %v6768_v54  ;;  %v1150_v38 = vand.u32 65535, %v1146_v53  ;;  %v1151_v50 = vshrl.u32 %v1146_v53, 16 }
  0x86   :  { %v780_v63 = vadd.f32 %v778_v13, %v776_v56  ;;  %v1175_v6 = vmul.u32 %v1173_v25, %v1148_v3  ;;  %v1115_v0 = vshrl.u32 %v8764_v35, %v6711_v26  ;;  %v1174_v5 = vmul.u32 %v1172_v59, %v1148_v3 }
  0x87   :  { %v6797_v7 = vsub.f32 %v765_v12, %v768_v31  ;;  %v1152_v30 = vmul.u32 %v1150_v38, %v1148_v3  ;;  %v1153_v60 = vmul.u32 %v1151_v50, %v1148_v3  ;;  %v1154_v56 = vmul.u32 %v1150_v38, %v1149_v18 }
  0x88   :  { %v1178_v13 = vshll.u32 %v1175_v6, 16  ;;  %v896_v23 = vclz %v895_v4  ;;  %v1177_v3 = vmul.u32 %v1173_v25, %v1149_v18  ;;  %v1136_v57 = vsel %vm1134_vm12, %v6748_v51, 2102212464 }
  0x89   :  { %v1156_v26 = vshll.u32 %v1153_v60, 16  ;;  %v1157_v12 = vshrl.u32 %v1153_v60, 16  ;;  %v1137_v51 = vsel %vm1133_vm11, %v6746_v48, %v1136_v57  ;;  %vm792_vm7 = vcmp.lt.s32.totalorder %v6351_v16, 0 }
  0x8a   :  { %v720_v32 = vpop.f32.mrf.mxu0  ;;  %vm1182_vm15 = vc.u32 %v1174_v5, %v1178_v13  ;;  %v1184_v46 = vadd.s32 %v1178_v13, %v1174_v5  ;;  %v6097_v21 = vadd.s32 4294967294, %v896_v23  ;;  %v884_v23 = vadd.s32 %v6674_v44, %v6672_v10 }
  0x8b   :  { %v743_v29 = vpop.f32.mrf.mxu1  ;;  %v764_v36 = vmul.f32 %v755_v2, %v720_v32  ;;  %v783_v42 = vmul.f32 %v767_v9, %v720_v32  ;;  %v1176_v32 = vmul.u32 %v1172_v59, %v1149_v18  ;;  %vm1160_vm14 = vc.u32 %v1152_v30, %v1156_v26  ;;  %v6109_v59 = vld [vmem:[%s8751_s4 + $0x18] sm:$0xff] }
  0x8c   :  { %v779_v24 = vmul.f32 %v755_v2, %v743_v29  ;;  %v769_v58 = vmul.f32 %v767_v9, %v743_v29  ;;  %v6799_v2 = vadd.f32 %v782_v33, %v780_v63  ;;  %v1135_v9 = vsel %vm1131_vm9, %v1115_v0, %v6740_v40 }
  0x8d   :  { %v766_v49 = vadd.f32 %v764_v36, %v762_v15  ;;  %v1155_v15 = vmul.u32 %v1151_v50, %v1149_v18  ;;  %v1162_v29 = vadd.s32 %v1156_v26, %v1152_v30  ;;  %v1161_v36 = vsel %vm1160_vm14, 1, %v8772_v62 }
  0x8e   :  { %v781_v14 = vadd.f32 %v779_v24, %v777_v61  ;;  %v1158_v61 = vshll.u32 %v1154_v56, 16  ;;  %v1180_v24 = vshll.u32 %v1176_v32, 16  ;;  %v1179_v18 = vshrl.u32 %v1175_v6, 16 }
  0x8f   :  { %v6793_v8 = vsub.f32 %v766_v49, %v769_v58  ;;  %v1163_v63 = vadd.s32 %v1161_v36, %v1155_v15  ;;  %v1159_v49 = vshrl.u32 %v1154_v56, 16  ;;  %v1181_v53 = vshrl.u32 %v1176_v32, 16 }
  0x90   :  { %v6795_v1 = vadd.f32 %v783_v42, %v781_v14  ;;  %vm1164_vm1 = vc.u32 %v1162_v29, %v1158_v61  ;;  %v1183_v42 = vsel %vm1182_vm15, 1, %v8772_v62  ;;  %vm1186_vm2 = vc.u32 %v1184_v46, %v1180_v24 }
  0x91   :  { %1431 = vmatpush.msra.mxu2 %v6793_v8  ;;  %v1165_v40 = vsel %vm1164_vm1, 1, %v8772_v62  ;;  %v1185_v25 = vadd.s32 %v1183_v42, %v1177_v3  ;;  %v1187_v14 = vsel %vm1186_vm2, 1, %v8772_v62  ;;  %v1188_v4 = vadd.s32 %v1184_v46, %v1180_v24 }
  0x92   :  { %1454 = vmatpush.msra.mxu3 %v6795_v1  ;;  %v1167_v58 = vadd.s32 %v1165_v40, %v1163_v63  ;;  %vm6098_vm3 = vcmp.lt.s32.totalorder %v6097_v21, 0  ;;  %v1138_v38 = vsel %vm1132_vm10, %v1135_v9, %v1137_v51  ;;  %vm6839_vm8 = vcmp.le.f32.partialorder %v790_v28, 0.7853982 }
  0x93   :  { %1432 = vmatpush.msra.mxu2 %v6797_v7  ;;  %v1189_v33 = vadd.s32 %v1187_v14, %v1185_v25  ;;  %v899_v48 = vsel %vm6098_vm3, 0, %v6097_v21  ;;  %v1192_v5 = vmul.u32 %v6742_v27, %v1138_v38  ;;  %vm1101_vm9 = vcmp.lt.s32.totalorder %v6615_v17, 0 }
  0x94   :  { %1455 = vmatpush.msra.mxu3 %v6799_v2  ;;  %6110 = vmatmul.msk.f32.vlgmr.msra.gmra.mxu2 %vm693_vm0, %v6108_v47  ;;  %v1168_v31 = vadd.s32 %v1167_v58, %v1157_v12  ;;  %v904_v30 = vsub.s32 4294967266, %v899_v48  ;;  %v900_v15 = vsub.s32 32, %v899_v48  ;;  %v901_v9 = vshll.u32 %v6768_v54, %v899_v48 }
  0x95   :  { %6112 = vmatmul.msk.f32.vlgmr.msra.gmra.mxu3 %vm693_vm0, %v6108_v47  ;;  %v1190_v50 = vadd.s32 %v1189_v33, %v1179_v18  ;;  %vm6851_vm10 = vcmp.le.f32.partialorder %v1099_v55, 0.7853982 }
  0x96   :  { %v1169_v6 = vadd.s32 %v1168_v31, %v1159_v49  ;;  %v905_v26 = vadd.s32 127, %v904_v30  ;;  %v902_v32 = vshrl.u32 %v884_v23, %v900_v15 }
  0x97   :  { %v1191_v0 = vadd.s32 %v1190_v50, %v1181_v53 }
  0x98   :  { %vm1194_vm4 = vc.u32 %v1169_v6, %v1188_v4  ;;  %v906_v3 = vshll.u32 %v905_v26, 23  ;;  %v903_v46 = vor.u32 %v902_v32, %v901_v9  ;;  %v1193_v42 = vadd.s32 %v1188_v4, %v1169_v6 }
  0x99   :  { %v1195_v47 = vadd.s32 1, %v1191_v0 }
  0x9a   :  { %v907_v21 = vor.u32 4788187, %v906_v3  ;;  %v910_v12 = vcvt.s32.f32 %v903_v46 }
  0x9b   :  { %v1196_v60 = vsel %vm1194_vm4, %v1195_v47, %v1191_v0 }
  0x9c   :  { %6111 = vmatmul.msk.f32.gmra.mxu2 %vm693_vm0, %v6109_v59  ;;  %v1197_v56 = vadd.s32 %v1196_v60, %v1192_v5  ;;  %v908_v24 = vand.u32 2147483647, %v907_v21  ;;  %v914_v21 = vsub.s32 4, %v6726_v19 }
  0x9d   :  { %6113 = vmatmul.msk.f32.gmra.mxu3 %vm693_vm0, %v6109_v59 }
  0x9e   :  { %v1198_v13 = vadd.s32 536870912, %v1197_v56  ;;  %v911_v44 = vmul.f32 %v910_v12, %v908_v24 }
  0xa0   :  { %v1199_v61 = vshrl.u32 %v1198_v13, 30  ;;  %v912_v51 = vxor.u32 2147483648, %v911_v44 }
  0xa2   :  { %v1200_v34 = vshll.u32 %v1199_v61, 30  ;;  %v913_v31 = vsel %vm792_vm7, %v912_v51, %v911_v44 }
  0xa3   :  { %v916_v50 = vsel %vm6839_vm8, %v6351_v16, %v913_v31 }
  0xa4   :  { %v1201_v29 = vsub.s32 %v1197_v56, %v1200_v34  ;;  %v918_v0 = vmul.f32 %v916_v50, %v916_v50 }
  0xa6   :  { %vm1202_vm5 = vcmp.lt.s32.totalorder %v1201_v29, 0  ;;  %v1203_v27 = vsub.s32 0, %v1201_v29  ;;  %v926_v30 = vmul.f32 -0.00019511016, %v918_v0  ;;  %v919_v56 = vmul.f32 -0.001358992, %v918_v0 }
  0xa8   :  { %v1204_v57 = vsel %vm1202_vm5, %v1203_v27, %v1201_v29  ;;  %v927_v13 = vadd.f32 0.008332121, %v926_v30  ;;  %v920_v55 = vadd.f32 0.041655596, %v919_v56  ;;  %vm933_vm5 = vweird.f32 %v6351_v16 }
  0xa9   :  { %v1205_v36 = vclz %v1204_v57 }
  0xaa   :  { %v928_v26 = vmul.f32 %v927_v13, %v918_v0  ;;  %v921_v32 = vmul.f32 %v920_v55, %v918_v0 }
  0xab   :  { %v6103_v63 = vadd.s32 4294967294, %v1205_v36 }
  0xac   :  { %v929_v3 = vadd.f32 -0.16666654, %v928_v26  ;;  %v922_v57 = vadd.f32 -0.4999988, %v921_v32  ;;  %v1503_v26 = vld [vmem:[%s8749_s0 + $0x2] sm:$0x1] }
  0xad   :  { %vm6104_vm6 = vcmp.lt.s32.totalorder %v6103_v63, 0  ;;  %v6884_v32 = vmul.f32 0.5, %v1503_v26 }
  0xae   :  { %v1208_v10 = vsel %vm6104_vm6, 0, %v6103_v63  ;;  %v930_v36 = vmul.f32 %v929_v3, %v918_v0  ;;  %v923_v44 = vmul.f32 %v922_v57, %v918_v0  ;;  %vm1242_vm6 = vweird.f32 %v6615_v17 }
  0xaf   :  { %v1209_v40 = vsub.s32 32, %v1208_v10  ;;  %v1210_v18 = vshll.u32 %v1201_v29, %v1208_v10  ;;  %v1213_v25 = vsub.s32 4294967266, %v1208_v10  ;;  %v1223_v29 = vsub.s32 4, %v1199_v61 }
  0xb0   :  { %v6870_v51 = vadd.f32 1.0, %v923_v44 }
  0xb1   :  { %v1211_v54 = vshrl.u32 %v1193_v42, %v1209_v40  ;;  %v1214_v59 = vadd.s32 127, %v1213_v25  ;;  %v1224_v24 = vsel %vm1101_vm9, %v1223_v29, %v1199_v61  ;;  %v915_v42 = vsel %vm792_vm7, %v914_v21, %v6726_v19 }
  0xb2   :  { %v1226_v10 = vsel %vm6851_vm10, 0, %v1224_v24  ;;  %v931_v40 = vadd.f32 1.0, %v930_v36  ;;  %v41_v19 = vshra.s32 %v6543_v22, 2 }
  0xb3   :  { %v1212_v49 = vor.u32 %v1211_v54, %v1210_v18  ;;  %v1215_v58 = vshll.u32 %v1214_v59, 23  ;;  %v917_v54 = vsel %vm6839_vm8, 0, %v915_v42  ;;  %v1397_v59 = vadd.s32 3, %v1226_v10 }
  0xb4   :  { %v932_v61 = vmul.f32 %v931_v40, %v916_v50  ;;  %v43_v33 = vand.u32 1, %v41_v19  ;;  %v1088_v30 = vadd.s32 3, %v917_v54 }
  0xb5   :  { %v1216_v14 = vor.u32 4788187, %v1215_v58  ;;  %v1219_v53 = vcvt.s32.f32 %v1212_v49  ;;  %v934_v49 = vand.u32 3, %v917_v54 }
  0xb6   :  { %v937_v31 = vxor.u32 2147483648, %v932_v61 }
  0xb7   :  { %v1217_v4 = vand.u32 2147483647, %v1216_v14  ;;  %vm936_vm11 = vcmp.eq.s32.totalorder %v934_v49, 0  ;;  %vm939_vm12 = vcmp.eq.s32.totalorder %v934_v49, 2  ;;  %vm935_vm15 = vcmp.lt.s32.totalorder %v934_v49, 2 }
  0xb8   :  { %v938_v50 = vsel %vm936_vm11, %v6870_v51, %v937_v31 }
  0xb9   :  { %v1220_v38 = vmul.f32 %v1219_v53, %v1217_v4  ;;  %v1398_v53 = vand.u32 3, %v1397_v59  ;;  %v940_v4 = vxor.u32 2147483648, %v6870_v51 }
  0xbb   :  { %v1221_v28 = vxor.u32 2147483648, %v1220_v38  ;;  %vm1400_vm13 = vcmp.eq.s32.totalorder %v1398_v53, 0  ;;  %vm1403_vm14 = vcmp.eq.s32.totalorder %v1398_v53, 2  ;;  %v941_v0 = vsel %vm939_vm12, %v940_v4, %v932_v61 }
  0xbc   :  { %vm1399_vm3 = vcmp.lt.s32.totalorder %v1398_v53, 2  ;;  %v942_v13 = vsel %vm935_vm15, %v938_v50, %v941_v0 }
  0xbd   :  { %v1222_v48 = vsel %vm1101_vm9, %v1221_v28, %v1220_v38  ;;  %v1243_v38 = vand.u32 3, %v1226_v10  ;;  %v943_v29 = vsel %vm933_vm5, nan, %v942_v13 }
  0xbe   :  { %v1225_v5 = vsel %vm6851_vm10, %v6615_v17, %v1222_v48  ;;  %v1089_v17 = vand.u32 3, %v1088_v30 }
  0xbf   :  { %v1227_v47 = vmul.f32 %v1225_v5, %v1225_v5  ;;  %vm1245_vm1 = vcmp.eq.s32.totalorder %v1243_v38, 0  ;;  %vm1248_vm2 = vcmp.eq.s32.totalorder %v1243_v38, 2  ;;  %vm1244_vm4 = vcmp.lt.s32.totalorder %v1243_v38, 2 }
  0xc0   :  { %vm1091_vm7 = vcmp.eq.s32.totalorder %v1089_v17, 0  ;;  %vm1094_vm8 = vcmp.eq.s32.totalorder %v1089_v17, 2  ;;  %vm1090_vm9 = vcmp.lt.s32.totalorder %v1089_v17, 2 }
  0xc1   :  { %v1235_v60 = vmul.f32 -0.00019511016, %v1227_v47  ;;  %v1228_v23 = vmul.f32 -0.001358992, %v1227_v47  ;;  %v1093_v54 = vsel %vm1091_vm7, %v6870_v51, %v937_v31  ;;  %v1096_v59 = vsel %vm1094_vm8, %v940_v4, %v932_v61 }
  0xc2   :  { %v1097_v19 = vsel %vm1090_vm9, %v1093_v54, %v1096_v59 }
  0xc3   :  { %v1236_v15 = vadd.f32 0.008332121, %v1235_v60  ;;  %v1229_v34 = vadd.f32 0.041655596, %v1228_v23  ;;  %v6906_v50 = vsel %vm933_vm5, nan, %v1097_v19 }
  0xc5   :  { %v1237_v9 = vmul.f32 %v1236_v15, %v1227_v47  ;;  %v1230_v27 = vmul.f32 %v1229_v34, %v1227_v47  ;;  %v45_v15 = vmul.u32 2, %v43_v33  ;;  %v1505_v34 = vld [vmem:[%s8749_s0 + $0x6] sm:$0x1] }
  0xc6   :  { %v6886_v3 = vmul.f32 0.5, %v1505_v34 }
  0xc7   :  { %v1238_v46 = vadd.f32 -0.16666654, %v1237_v9  ;;  %v1231_v12 = vadd.f32 -0.4999988, %v1230_v27  ;;  %v6074_v57 = vadd.s32 4294967295, %v45_v15 }
  0xc8   :  { %v1819_v21 = vand.u32 2139095040, %v6886_v3 }
  0xc9   :  { %v1239_v63 = vmul.f32 %v1238_v46, %v1227_v47  ;;  %v1232_v18 = vmul.f32 %v1231_v12, %v1227_v47  ;;  %v42_v47 = vshra.s32 %v6565_v11, 2  ;;  %v1510_v46 = vand.u32 2139095040, %v6884_v32 }
  0xca   :  { %v1820_v42 = vshrl.u32 %v1819_v21, 23 }
  0xcb   :  { %v1240_v25 = vadd.f32 1.0, %v1239_v63  ;;  %v1233_v58 = vadd.f32 1.0, %v1232_v18  ;;  %v44_v55 = vand.u32 1, %v42_v47  ;;  %v1511_v63 = vshrl.u32 %v1510_v46, 23 }
  0xcc   :  { %v6120_v40 = vadd.s32 4294967169, %v1820_v42  ;;  %v6898_v18 = vcvt.s32.f32 %v6074_v57 }
  0xcd   :  { %v1241_v14 = vmul.f32 %v1240_v25, %v1225_v5  ;;  %v1249_v28 = vxor.u32 2147483648, %v1233_v58  ;;  %v46_v24 = vmul.u32 2, %v44_v55  ;;  %v6114_v44 = vadd.s32 4294967169, %v1511_v63 }
  0xce   :  { %v1826_v53 = vadd.s32 1, %v6120_v40 }
  0xcf   :  { %v1246_v6 = vxor.u32 2147483648, %v1241_v14  ;;  %v1405_v5 = vsel %vm1403_vm14, %v1249_v28, %v1241_v14  ;;  %v1250_v56 = vsel %vm1248_vm2, %v1249_v28, %v1241_v14  ;;  %v6075_v25 = vadd.s32 4294967295, %v46_v24 }
  0xd0   :  { %vm1827_vm11 = vcmp.gt.s32.totalorder %v1826_v53, 0 }
  0xd1   :  { %v1402_v48 = vsel %vm1400_vm13, %v1233_v58, %v1246_v6  ;;  %v1247_v60 = vsel %vm1245_vm1, %v1233_v58, %v1246_v6  ;;  %v1517_v58 = vadd.s32 1, %v6114_v44  ;;  %v6901_v38 = vcvt.s32.f32 %v6075_v25 }
  0xd2   :  { %v1406_v23 = vsel %vm1399_vm3, %v1402_v48, %v1405_v5  ;;  %v1251_v9 = vsel %vm1244_vm4, %v1247_v60, %v1250_v56  ;;  %v1507_v48 = vand.u32 2147483647, %v6884_v32 }
  0xd3   :  { %v6890_v27 = vsel %vm1242_vm6, nan, %v1406_v23  ;;  %v6894_v36 = vsel %vm1242_vm6, nan, %v1251_v9  ;;  %vm1518_vm10 = vcmp.gt.s32.totalorder %v1517_v58, 0  ;;  %v6933_v23 = vsel %vm1827_vm11, %v1826_v53, 0 }
  0xd4   :  { %v1465_v12 = vmul.f32 %v6890_v27, %v943_v29  ;;  %v1463_v10 = vmul.f32 %v6894_v36, %v943_v29  ;;  %v1519_v6 = vsel %vm1518_vm10, %v1517_v58, 0  ;;  %v1514_v60 = vand.u32 8388607, %v1507_v48 }
  0xd5   :  { %v1521_v33 = vand.u32 31, %v1519_v6  ;;  %v6930_v56 = vshrl.u32 %v1519_v6, 5  ;;  %v6969_v54 = vand.u32 31, %v6933_v23 }
  0xd6   :  { %v1466_v49 = vperm.slane %v1465_v12, 0  ;;  %v1473_v14 = vperm.slane %v1463_v10, 0  ;;  %v1515_v34 = vor.u32 8388608, %v1514_v60 }
  0xd7   :  { %v6911_v51 = vsub.s32 32, %v1521_v33  ;;  %v1533_v47 = vshll.u32 %v8780_v41, %v1521_v33  ;;  %v1524_v13 = vshll.u32 %v8764_v35, %v1521_v33  ;;  %v1527_v15 = vshll.u32 %v8758_v37, %v1521_v33 }
  0xd8   :  { %v1467_v28 = vmul.f32 %v1466_v49, %v6898_v18  ;;  %v6909_v0 = vmul.f32 %v1473_v14, %v6797_v7  ;;  %v1489_v61 = vmul.f32 %v1473_v14, %v6799_v2  ;;  %v1468_v31 = vmul.f32 %v1466_v49, %v6901_v38 }
  0xd9   :  { %v6916_v4 = vmul.f32 %v1473_v14, %v6793_v8  ;;  %v6923_v16 = vmul.f32 %v1473_v14, %v6795_v1  ;;  %v1534_v30 = vshrl.u32 %v8760_v43, %v6911_v51  ;;  %v1528_v55 = vshrl.u32 %v8756_v39, %v6911_v51 }
  0xda   :  { %v6920_v5 = vmul.f32 %v1467_v28, %v6799_v2  ;;  %v1525_v2 = vshrl.u32 %v8758_v37, %v6911_v51  ;;  %v1530_v26 = vshll.u32 %v8756_v39, %v1521_v33  ;;  %v1531_v9 = vshrl.u32 %v8780_v41, %v6911_v51 }
  0xdb   :  { %v1535_v29 = vor.u32 %v1534_v30, %v1533_v47  ;;  %v1536_v17 = vshll.u32 %v8760_v43, %v1521_v33  ;;  %v6946_v21 = vor.u32 %v1528_v55, %v1527_v15  ;;  %v1537_v57 = vshrl.u32 %v8770_v52, %v6911_v51 }
  0xdc   :  { %v6944_v46 = vor.u32 %v1525_v2, %v1524_v13  ;;  %vm1539_vm12 = vcmp.lt.s32.totalorder %v6930_v56, 1  ;;  %v1532_v24 = vor.u32 %v1531_v9, %v1530_v26  ;;  %vm1540_vm13 = vcmp.lt.s32.totalorder %v6930_v56, 2 }
  0xdd   :  { %vm1541_vm14 = vcmp.lt.s32.totalorder %v6930_v56, 3  ;;  %vm1542_vm15 = vcmp.lt.s32.totalorder %v6930_v56, 4  ;;  %v1538_v12 = vor.u32 %v1537_v57, %v1536_v17  ;;  %v6960_v10 = vshll.u32 %v1515_v34, 8 }
  0xde   :  { %v1547_v63 = vsel %vm1539_vm12, %v6944_v46, %v6946_v21  ;;  %v1548_v42 = vsel %vm1542_vm15, %v1535_v29, 920167782  ;;  %v1491_v44 = vmul.f32 %v1467_v28, %v6797_v7  ;;  %v1551_v25 = vsel %vm1539_vm12, %v6946_v21, %v1532_v24 }
  0xdf   :  { %v1549_v40 = vsel %vm1541_vm14, %v1532_v24, %v1548_v42  ;;  %v6972_v59 = vmul.f32 %v1468_v31, %v6795_v1  ;;  %v1552_v58 = vsel %vm1542_vm15, %v1538_v12, 1326507024  ;;  %v1556_v7 = vand.u32 65535, %v6960_v10 }
  0xe0   :  { %v1550_v49 = vsel %vm1540_vm13, %v1547_v63, %v1549_v40  ;;  %v1553_v14 = vsel %vm1541_vm14, %v1535_v29, %v1552_v58  ;;  %v1557_v53 = vshrl.u32 %v6960_v10, 16  ;;  %v6984_v28 = vmul.f32 %v6894_v36, %v6906_v50 }
  0xe1   :  { %v1580_v19 = vand.u32 65535, %v1550_v49  ;;  %v1581_v6 = vshrl.u32 %v1550_v49, 16  ;;  %v1478_v1 = vsub.f32 %v6909_v0, %v6920_v5  ;;  %v6989_v33 = vmul.f32 %v1468_v31, %v6793_v8 }
  0xe2   :  { %v1554_v47 = vsel %vm1540_vm13, %v1551_v25, %v1553_v14  ;;  %v6994_v2 = vsub.s32 32, %v6969_v54  ;;  %v6996_v15 = vadd.f32 %v1491_v44, %v1489_v61  ;;  %v1479_v36 = vsub.f32 %v6916_v4, %v6972_v59 }
  0xe3   :  { %v1558_v30 = vand.u32 65535, %v1554_v47  ;;  %v1559_v60 = vshrl.u32 %v1554_v47, 16  ;;  %v1583_v13 = vmul.u32 %v1581_v6, %v1556_v7  ;;  %v1582_v55 = vmul.u32 %v1580_v19, %v1556_v7 }
  0xe4   :  { %v1584_v26 = vmul.u32 %v1580_v19, %v1557_v53  ;;  %v1816_v31 = vand.u32 2147483647, %v6886_v3  ;;  %v1464_v29 = vmul.f32 %v6890_v27, %v6906_v50  ;;  %v1470_v17 = vperm.slane %v6984_v28, 0 }
  0xe5   :  { %v1560_v34 = vmul.u32 %v1558_v30, %v1556_v7  ;;  %v1561_v9 = vmul.u32 %v1559_v60, %v1556_v7  ;;  %v1562_v8 = vmul.u32 %v1558_v30, %v1557_v53  ;;  %v1586_v57 = vshll.u32 %v1583_v13, 16 }
  0xe6   :  { %v1842_v61 = vshll.u32 %v8780_v41, %v6969_v54  ;;  %v1585_v63 = vmul.u32 %v1581_v6, %v1557_v53  ;;  %v1588_v42 = vshll.u32 %v1584_v26, 16  ;;  %v1843_v44 = vshrl.u32 %v8760_v43, %v6994_v2 }
  0xe7   :  { %v1564_v12 = vshll.u32 %v1561_v9, 16  ;;  %v1563_v40 = vmul.u32 %v1559_v60, %v1557_v53  ;;  %v1566_v25 = vshll.u32 %v1562_v8, 16  ;;  %vm1590_vm1 = vc.u32 %v1582_v55, %v1586_v57 }
  0xe8   :  { %v1592_v49 = vadd.s32 %v1586_v57, %v1582_v55  ;;  %v1591_v27 = vsel %vm1590_vm1, 1, %v8772_v62  ;;  %v1823_v50 = vand.u32 8388607, %v1816_v31  ;;  %v7013_v14 = vshrl.u32 %v6933_v23, 5 }
  0xe9   :  { %vm1568_vm2 = vc.u32 %v1560_v34, %v1564_v12  ;;  %v1570_v58 = vadd.s32 %v1564_v12, %v1560_v34  ;;  %v1833_v19 = vshll.u32 %v8764_v35, %v6969_v54  ;;  %v1834_v53 = vshrl.u32 %v8758_v37, %v6994_v2 }
  0xea   :  { %v1569_v7 = vsel %vm1568_vm2, 1, %v8772_v62  ;;  %v1523_v6 = vshrl.u32 %v8764_v35, %v6911_v51  ;;  %v1593_v47 = vadd.s32 %v1591_v27, %v1585_v63  ;;  %vm1594_vm3 = vc.u32 %v1592_v49, %v1588_v42 }
  0xeb   :  { %v1836_v30 = vshll.u32 %v8758_v37, %v6969_v54  ;;  %v1544_v60 = vsel %vm1542_vm15, %v1532_v24, 2102212464  ;;  %v1565_v55 = vshrl.u32 %v1561_v9, 16  ;;  %v1571_v23 = vadd.s32 %v1569_v7, %v1563_v40 }
  0xec   :  { %vm1572_vm4 = vc.u32 %v1570_v58, %v1566_v25  ;;  %v1587_v57 = vshrl.u32 %v1583_v13, 16  ;;  %v1837_v12 = vshrl.u32 %v8756_v39, %v6994_v2  ;;  %v1839_v51 = vshll.u32 %v8756_v39, %v6969_v54 }
  0xed   :  { %v1573_v34 = vsel %vm1572_vm4, 1, %v8772_v62  ;;  %v1543_v63 = vsel %vm1539_vm12, %v1523_v6, %v6944_v46  ;;  %v1545_v24 = vsel %vm1541_vm14, %v6946_v21, %v1544_v60  ;;  %v1595_v40 = vsel %vm1594_vm3, 1, %v8772_v62 }
  0xee   :  { %v1575_v9 = vadd.s32 %v1573_v34, %v1571_v23  ;;  %v1567_v25 = vshrl.u32 %v1562_v8, 16  ;;  %v1589_v58 = vshrl.u32 %v1584_v26, 16  ;;  %v1597_v13 = vadd.s32 %v1595_v40, %v1593_v47 }
  0xef   :  { %v1840_v27 = vshrl.u32 %v8780_v41, %v6994_v2  ;;  %v1471_v7 = vmul.f32 %v1470_v17, %v6898_v18  ;;  %v1845_v46 = vshll.u32 %v8760_v43, %v6969_v54  ;;  %v1846_v21 = vshrl.u32 %v8770_v52, %v6994_v2 }
  0xf0   :  { %v1576_v39 = vadd.s32 %v1575_v9, %v1565_v55  ;;  %v1484_v60 = vperm.slane %v1464_v29, 0  ;;  %v1546_v26 = vsel %vm1540_vm13, %v1543_v63, %v1545_v24  ;;  %v7048_v8 = vadd.s32 %v1592_v49, %v1588_v42 }
  0xf1   :  { %v1598_v47 = vadd.s32 %v1597_v13, %v1587_v57  ;;  %v1824_v34 = vor.u32 8388608, %v1823_v50  ;;  %v7050_v40 = vor.u32 %v1834_v53, %v1833_v19  ;;  %v7052_v37 = vor.u32 %v1837_v12, %v1836_v30 }
  0xf2   :  { %v1844_v55 = vor.u32 %v1843_v44, %v1842_v61  ;;  %v7054_v9 = vadd.s32 %v1576_v39, %v1567_v25  ;;  %v7056_v43 = vor.u32 %v1840_v27, %v1839_v51  ;;  %vm1848_vm5 = vcmp.lt.s32.totalorder %v7013_v14, 1 }
  0xf3   :  { %v1599_v54 = vadd.s32 %v1598_v47, %v1589_v58  ;;  %v1600_v56 = vmul.u32 %v6960_v10, %v1546_v26  ;;  %v1847_v63 = vor.u32 %v1846_v21, %v1845_v46  ;;  %vm1851_vm6 = vcmp.lt.s32.totalorder %v7013_v14, 4 }
  0xf4   :  { %vm1602_vm7 = vc.u32 %v7054_v9, %v7048_v8  ;;  %vm1850_vm8 = vcmp.lt.s32.totalorder %v7013_v14, 3  ;;  %v1472_v39 = vmul.f32 %v1470_v17, %v6901_v38  ;;  %v1494_v61 = vadd.f32 %v6989_v33, %v6923_v16 }
  0xf5   :  { %v1603_v49 = vadd.s32 1, %v1599_v54  ;;  %vm1849_vm9 = vcmp.lt.s32.totalorder %v7013_v14, 2  ;;  %v1856_v10 = vsel %vm1848_vm5, %v7050_v40, %v7052_v37  ;;  %v1857_v19 = vsel %vm1851_vm6, %v1844_v55, 920167782 }
  0xf6   :  { %v1860_v28 = vsel %vm1848_vm5, %v7052_v37, %v7056_v43  ;;  %v1858_v16 = vsel %vm1850_vm8, %v7056_v43, %v1857_v19  ;;  %v1861_v33 = vsel %vm1851_vm6, %v1847_v63, 1326507024  ;;  %v7085_v53 = vshll.u32 %v1824_v34, 8 }
  0xf7   :  { %v1604_v50 = vsel %vm1602_vm7, %v1603_v49, %v1599_v54  ;;  %v1859_v24 = vsel %vm1849_vm9, %v1856_v10, %v1858_v16  ;;  %v1862_v25 = vsel %vm1850_vm8, %v1844_v55, %v1861_v33  ;;  %vm1509_vm4 = vcmp.lt.s32.totalorder %v6884_v32, 0 }
  0xf8   :  { %v1605_v17 = vadd.s32 %v1604_v50, %v1600_v56  ;;  %v1863_v21 = vsel %vm1849_vm9, %v1860_v28, %v1862_v25  ;;  %v1865_v0 = vand.u32 65535, %v7085_v53  ;;  %v1866_v5 = vshrl.u32 %v7085_v53, 16 }
  0xf9   :  { %v1868_v26 = vshrl.u32 %v1863_v21, 16  ;;  %v1889_v55 = vand.u32 65535, %v1859_v24  ;;  %v1890_v54 = vshrl.u32 %v1859_v24, 16  ;;  %vm7168_vm7 = vcmp.le.f32.partialorder %v1816_v31, 0.7853982 }
  0xfa   :  { %v1606_v46 = vadd.s32 536870912, %v1605_v17 }
  0xfb   :  { %v1891_v19 = vmul.u32 %v1889_v55, %v1865_v0  ;;  %v1893_v16 = vmul.u32 %v1889_v55, %v1866_v5 }
  0xfc   :  { %v7102_v34 = vshrl.u32 %v1606_v46, 30  ;;  %v1853_v46 = vsel %vm1851_vm6, %v7056_v43, 2102212464  ;;  %vm1818_vm6 = vcmp.lt.s32.totalorder %v6886_v3, 0 }
  0xfd   :  { %v1897_v25 = vshll.u32 %v1893_v16, 16  ;;  %v1898_v55 = vshrl.u32 %v1893_v16, 16 }
 0x117   :  { %v1434_v6 = vpop.f32.mrf.mxu2 }
 0x118   :  { %v1457_v23 = vpop.f32.mrf.mxu3  ;;  %v1480_v29 = vmul.f32 %v1471_v7, %v1434_v6  ;;  %v1499_v44 = vmul.f32 %v1484_v60, %v1434_v6  ;;  %v1867_v6 = vand.u32 65535, %v1863_v21 }
 0x119   :  { %v1495_v42 = vmul.f32 %v1471_v7, %v1457_v23  ;;  %v1485_v47 = vmul.f32 %v1484_v60, %v1457_v23 }
 0x11a   :  { %v1482_v30 = vadd.f32 %v1480_v29, %v1478_v1  ;;  %v1869_v63 = vmul.u32 %v1867_v6, %v1865_v0  ;;  %v1871_v4 = vmul.u32 %v1867_v6, %v1866_v5 }
 0x11b   :  { %v1497_v57 = vadd.f32 %v1495_v42, %v6996_v15  ;;  %v1870_v42 = vmul.u32 %v1868_v26, %v1865_v0 }
 0x11c   :  { %v7108_v49 = vsub.f32 %v1482_v30, %v1485_v47  ;;  %v1875_v50 = vshll.u32 %v1871_v4, 16  ;;  %v1876_v21 = vshrl.u32 %v1871_v4, 16 }
 0x11d   :  { %v7113_v59 = vadd.f32 %v1499_v44, %v1497_v57  ;;  %v1873_v23 = vshll.u32 %v1870_v42, 16  ;;  %v1874_v33 = vshrl.u32 %v1870_v42, 16  ;;  %v1894_v57 = vmul.u32 %v1890_v54, %v1866_v5 }
 0x11f   :  { %v1437_v12 = vpop.f32.mrf.mxu2  ;;  %vm1877_vm10 = vc.u32 %v1869_v63, %v1873_v23  ;;  %v1879_v28 = vadd.s32 %v1873_v23, %v1869_v63 }
 0x120   :  { %v1460_v51 = vpop.f32.mrf.mxu3  ;;  %v1481_v58 = vmul.f32 %v1472_v39, %v1437_v12  ;;  %v1500_v13 = vmul.f32 %v1484_v60, %v1437_v12 }
 0x121   :  { %v1486_v27 = vmul.f32 %v1484_v60, %v1460_v51  ;;  %v1496_v7 = vmul.f32 %v1472_v39, %v1460_v51  ;;  %v1608_v39 = vshll.u32 %v7102_v34, 30  ;;  %v1872_v60 = vmul.u32 %v1868_v26, %v1866_v5  ;;  %v6127_v5 = vld [vmem:[%s8751_s4 + $0x28] sm:$0xff] }
 0x122   :  { %v1483_v1 = vadd.f32 %v1481_v58, %v1479_v36  ;;  %v6126_v36 = vld [vmem:[%s8751_s4 + $0x20] sm:$0xff]  ;;  %vm1881_vm12 = vc.u32 %v1879_v28, %v1875_v50 }
 0x123   :  { %v1498_v15 = vadd.f32 %v1496_v7, %v1494_v61  ;;  %v1892_v61 = vmul.u32 %v1890_v54, %v1865_v0  ;;  %v7118_v10 = vsub.s32 %v1605_v17, %v1608_v39  ;;  %v1878_v17 = vsel %vm1877_vm10, 1, %v8772_v62 }
 0x124   :  { %v7104_v29 = vsub.f32 %v1483_v1, %v1486_v27  ;;  %v1880_v30 = vadd.s32 %v1878_v17, %v1872_v60  ;;  %v1882_v24 = vsel %vm1881_vm12, 1, %v8772_v62  ;;  %v1832_v7 = vshrl.u32 %v8764_v35, %v6994_v2 }
 0x125   :  { %v7106_v56 = vadd.f32 %v1500_v13, %v1498_v15  ;;  %vm1610_vm11 = vcmp.lt.s32.totalorder %v7118_v10, 0  ;;  %v1611_v44 = vsub.s32 0, %v7118_v10  ;;  %v1895_v12 = vshll.u32 %v1892_v61, 16 }
 0x126   :  { %2148 = vmatpush.msrb.mxu0 %v7104_v29  ;;  %v1884_v13 = vadd.s32 %v1882_v24, %v1880_v30  ;;  %v1896_v26 = vshrl.u32 %v1892_v61, 16  ;;  %v1852_v43 = vsel %vm1848_vm5, %v1832_v7, %v7050_v40  ;;  %v1854_v2 = vsel %vm1850_vm8, %v7052_v37, %v1853_v46 }
 0x127   :  { %2171 = vmatpush.msrb.mxu1 %v7106_v56  ;;  %v1612_v51 = vsel %vm1610_vm11, %v1611_v44, %v7118_v10  ;;  %vm1899_vm13 = vc.u32 %v1891_v19, %v1895_v12  ;;  %v1901_v27 = vadd.s32 %v1895_v12, %v1891_v19  ;;  %v1601_v40 = vadd.s32 %v7048_v8, %v7054_v9 }
 0x128   :  { %2149 = vmatpush.msrb.mxu0 %v7108_v49  ;;  %v1613_v58 = vclz %v1612_v51  ;;  %v1900_v0 = vsel %vm1899_vm13, 1, %v8772_v62  ;;  %v1885_v15 = vadd.s32 %v1884_v13, %v1874_v33  ;;  %vm7156_vm5 = vcmp.le.f32.partialorder %v1507_v48, 0.7853982 }
 0x129   :  { %2172 = vmatpush.msrb.mxu1 %v7113_v59  ;;  %6128 = vmatmul.msk.f32.vlgmr.msrb.gmra.mxu0 %vm693_vm0, %v6126_v36  ;;  %v1902_v6 = vadd.s32 %v1900_v0, %v1894_v57  ;;  %vm1903_vm14 = vc.u32 %v1901_v27, %v1897_v25  ;;  %v1905_v39 = vadd.s32 %v1901_v27, %v1897_v25 }
 0x12a   :  { %6130 = vmatmul.msk.f32.vlgmr.msrb.gmra.mxu1 %vm693_vm0, %v6126_v36  ;;  %v6115_v1 = vadd.s32 4294967294, %v1613_v58  ;;  %v1904_v47 = vsel %vm1903_vm14, 1, %v8772_v62  ;;  %v1886_v42 = vadd.s32 %v1885_v15, %v1876_v21  ;;  %v1855_v36 = vsel %vm1849_vm9, %v1852_v43, %v1854_v2 }
 0x12b   :  { %v1906_v54 = vadd.s32 %v1904_v47, %v1902_v6  ;;  %v1909_v61 = vmul.u32 %v7085_v53, %v1855_v36 }
 0x12c   :  { %vm6116_vm15 = vcmp.lt.s32.totalorder %v6115_v1, 0  ;;  %vm1911_vm1 = vc.u32 %v1886_v42, %v1905_v39  ;;  %v1910_v7 = vadd.s32 %v1905_v39, %v1886_v42 }
 0x12d   :  { %v1616_v63 = vsel %vm6116_vm15, 0, %v6115_v1  ;;  %v1907_v4 = vadd.s32 %v1906_v54, %v1896_v26 }
 0x12e   :  { %v1621_v60 = vsub.s32 4294967266, %v1616_v63  ;;  %v1617_v19 = vsub.s32 32, %v1616_v63  ;;  %v1618_v44 = vshll.u32 %v7118_v10, %v1616_v63 }
 0x12f   :  { %v1908_v23 = vadd.s32 %v1907_v4, %v1898_v55 }
 0x130   :  { %v1622_v37 = vadd.s32 127, %v1621_v60  ;;  %v1619_v33 = vshrl.u32 %v1601_v40, %v1617_v19 }
 0x131   :  { %6129 = vmatmul.msk.f32.gmra.mxu0 %vm693_vm0, %v6127_v5  ;;  %v1912_v50 = vadd.s32 1, %v1908_v23 }
 0x132   :  { %6131 = vmatmul.msk.f32.gmra.mxu1 %vm693_vm0, %v6127_v5  ;;  %v1623_v17 = vshll.u32 %v1622_v37, 23  ;;  %v1620_v57 = vor.u32 %v1619_v33, %v1618_v44 }
 0x133   :  { %v1913_v28 = vsel %vm1911_vm1, %v1912_v50, %v1908_v23 }
 0x134   :  { %v1914_v16 = vadd.s32 %v1913_v28, %v1909_v61  ;;  %v1624_v12 = vor.u32 4788187, %v1623_v17  ;;  %v1627_v53 = vcvt.s32.f32 %v1620_v57  ;;  %v1631_v17 = vsub.s32 4, %v7102_v34 }
 0x136   :  { %v1915_v30 = vadd.s32 536870912, %v1914_v16  ;;  %v1625_v25 = vand.u32 2147483647, %v1624_v12 }
 0x138   :  { %v1916_v14 = vshrl.u32 %v1915_v30, 30  ;;  %v1628_v9 = vmul.f32 %v1627_v53, %v1625_v25  ;;  %v1632_v25 = vsel %vm1509_vm4, %v1631_v17, %v7102_v34  ;;  %v2222_v17 = vld [vmem:[%s8749_s0 + $0x7] sm:$0x1] }
 0x13a   :  { %v1917_v51 = vshll.u32 %v1916_v14, 30  ;;  %v1629_v46 = vxor.u32 2147483648, %v1628_v9  ;;  %v1940_v30 = vsub.s32 4, %v1916_v14 }
 0x13c   :  { %v1918_v24 = vsub.s32 %v1914_v16, %v1917_v51  ;;  %v1630_v6 = vsel %vm1509_vm4, %v1629_v46, %v1628_v9  ;;  %v1941_v53 = vsel %vm1818_vm6, %v1940_v30, %v1916_v14 }
 0x13d   :  { %v1633_v2 = vsel %vm7156_vm5, %v6884_v32, %v1630_v6 }
 0x13e   :  { %vm1919_vm2 = vcmp.lt.s32.totalorder %v1918_v24, 0  ;;  %v1920_v58 = vsub.s32 0, %v1918_v24  ;;  %v1635_v63 = vmul.f32 %v1633_v2, %v1633_v2 }
 0x140   :  { %v1921_v13 = vsel %vm1919_vm2, %v1920_v58, %v1918_v24  ;;  %v1643_v48 = vmul.f32 -0.00019511016, %v1635_v63  ;;  %v1636_v61 = vmul.f32 -0.001358992, %v1635_v63  ;;  %vm1650_vm2 = vweird.f32 %v6884_v32 }
 0x141   :  { %v1922_v8 = vclz %v1921_v13 }
 0x142   :  { %v1644_v50 = vadd.f32 0.008332121, %v1643_v48  ;;  %v1637_v28 = vadd.f32 0.041655596, %v1636_v61 }
 0x143   :  { %v6121_v27 = vadd.s32 4294967294, %v1922_v8 }
 0x144   :  { %v1645_v16 = vmul.f32 %v1644_v50, %v1635_v63  ;;  %v1638_v57 = vmul.f32 %v1637_v28, %v1635_v63 }
 0x145   :  { %vm6122_vm3 = vcmp.lt.s32.totalorder %v6121_v27, 0 }
 0x146   :  { %v1925_v10 = vsel %vm6122_vm3, 0, %v6121_v27  ;;  %v1646_v12 = vadd.f32 -0.16666654, %v1645_v16  ;;  %v1639_v58 = vadd.f32 -0.4999988, %v1638_v57  ;;  %v1943_v27 = vsel %vm7168_vm7, 0, %v1941_v53 }
 0x147   :  { %v1926_v21 = vsub.s32 32, %v1925_v10  ;;  %v1927_v0 = vshll.u32 %v1918_v24, %v1925_v10  ;;  %v1930_v5 = vsub.s32 4294967266, %v1925_v10  ;;  %vm1959_vm3 = vweird.f32 %v6886_v3 }
 0x148   :  { %v1647_v13 = vmul.f32 %v1646_v12, %v1635_v63  ;;  %v1640_v46 = vmul.f32 %v1639_v58, %v1635_v63  ;;  %v52_v63 = vshra.s32 %v6565_v11, 1 }
 0x149   :  { %v1928_v1 = vshrl.u32 %v1910_v7, %v1926_v21  ;;  %v1931_v26 = vadd.s32 127, %v1930_v5  ;;  %v1634_v7 = vsel %vm7156_vm5, 0, %v1632_v25  ;;  %v2114_v5 = vadd.s32 3, %v1943_v27 }
 0x14a   :  { %v1648_v10 = vadd.f32 1.0, %v1647_v13  ;;  %v1641_v34 = vadd.f32 1.0, %v1640_v46  ;;  %v54_v61 = vand.u32 1, %v52_v63 }
 0x14b   :  { %v1929_v47 = vor.u32 %v1928_v1, %v1927_v0  ;;  %v1932_v43 = vshll.u32 %v1931_v26, 23  ;;  %v1651_v1 = vand.u32 3, %v1634_v7 }
 0x14c   :  { %v1649_v6 = vmul.f32 %v1648_v10, %v1633_v2 }
 0x14d   :  { %v1933_v55 = vor.u32 4788187, %v1932_v43  ;;  %v1936_v54 = vcvt.s32.f32 %v1929_v47  ;;  %v2115_v47 = vand.u32 3, %v2114_v5  ;;  %v51_v43 = vshra.s32 %v6543_v22, 1 }
 0x14e   :  { %vm1653_vm8 = vcmp.eq.s32.totalorder %v1651_v1, 0  ;;  %vm1656_vm9 = vcmp.eq.s32.totalorder %v1651_v1, 2  ;;  %vm1652_vm12 = vcmp.lt.s32.totalorder %v1651_v1, 2 }
 0x14f   :  { %v1934_v42 = vand.u32 2147483647, %v1933_v55  ;;  %v1960_v55 = vand.u32 3, %v1943_v27  ;;  %vm2117_vm10 = vcmp.eq.s32.totalorder %v2115_v47, 0  ;;  %vm2120_vm11 = vcmp.eq.s32.totalorder %v2115_v47, 2 }
 0x150   :  { %v53_v48 = vand.u32 1, %v51_v43  ;;  %vm2116_vm15 = vcmp.lt.s32.totalorder %v2115_v47, 2 }
 0x151   :  { %v1937_v39 = vmul.f32 %v1936_v54, %v1934_v42  ;;  %v1654_v54 = vxor.u32 2147483648, %v1649_v6  ;;  %v1657_v42 = vxor.u32 2147483648, %v1641_v34  ;;  %vm1962_vm13 = vcmp.eq.s32.totalorder %v1960_v55, 0 }
 0x152   :  { %vm1965_vm14 = vcmp.eq.s32.totalorder %v1960_v55, 2  ;;  %vm1961_vm1 = vcmp.lt.s32.totalorder %v1960_v55, 2  ;;  %v55_v28 = vmul.u32 2, %v53_v48 }
 0x153   :  { %v1938_v36 = vxor.u32 2147483648, %v1937_v39  ;;  %v1655_v2 = vsel %vm1653_vm8, %v1641_v34, %v1654_v54  ;;  %v1658_v4 = vsel %vm1656_vm9, %v1657_v42, %v1649_v6 }
 0x155   :  { %v1939_v60 = vsel %vm1818_vm6, %v1938_v36, %v1937_v39 }
 0x156   :  { %v1942_v23 = vsel %vm7168_vm7, %v6886_v3, %v1939_v60  ;;  %v7203_v3 = vmul.f32 0.5, %v2222_v17 }
 0x157   :  { %v1944_v40 = vmul.f32 %v1942_v23, %v1942_v23 }
 0x158   :  { %v2536_v53 = vand.u32 2139095040, %v7203_v3 }
 0x159   :  { %v1945_v19 = vmul.f32 -0.001358992, %v1944_v40  ;;  %v1952_v37 = vmul.f32 -0.00019511016, %v1944_v40 }
 0x15b   :  { %v1946_v44 = vadd.f32 0.041655596, %v1945_v19  ;;  %v1953_v31 = vadd.f32 0.008332121, %v1952_v37  ;;  %v1659_v19 = vsel %vm1652_vm12, %v1655_v2, %v1658_v4 }
 0x15c   :  { %v1660_v30 = vsel %vm1650_vm2, nan, %v1659_v19 }
 0x15d   :  { %v1954_v33 = vmul.f32 %v1953_v31, %v1944_v40  ;;  %v1947_v51 = vmul.f32 %v1946_v44, %v1944_v40  ;;  %v56_v31 = vmul.u32 2, %v54_v61 }
 0x15f   :  { %v1955_v24 = vadd.f32 -0.16666654, %v1954_v33  ;;  %v1948_v8 = vadd.f32 -0.4999988, %v1947_v51  ;;  %v2220_v33 = vld [vmem:[%s8749_s0 + $0x3] sm:$0x1] }
 0x160   :  { %v7201_v12 = vmul.f32 0.5, %v2220_v33  ;;  %v6076_v51 = vadd.s32 4294967295, %v55_v28  ;;  %v6077_v13 = vadd.s32 4294967295, %v56_v31 }
 0x161   :  { %v1956_v9 = vmul.f32 %v1955_v24, %v1944_v40  ;;  %v1949_v21 = vmul.f32 %v1948_v8, %v1944_v40 }
 0x162   :  { %v2227_v25 = vand.u32 2139095040, %v7201_v12  ;;  %v7210_v1 = vcvt.s32.f32 %v6077_v13 }
 0x163   :  { %v1957_v0 = vadd.f32 1.0, %v1956_v9  ;;  %v1950_v26 = vadd.f32 1.0, %v1949_v21  ;;  %v2537_v9 = vshrl.u32 %v2536_v53, 23 }
 0x164   :  { %v2228_v8 = vshrl.u32 %v2227_v25, 23  ;;  %8797 = vst [vmem:[#allocation2_spill] sm:$0xff] %v7210_v1 }
 0x165   :  { %v1958_v14 = vmul.f32 %v1957_v0, %v1942_v23  ;;  %v1966_v15 = vxor.u32 2147483648, %v1950_v26  ;;  %v1805_v23 = vadd.s32 3, %v1634_v7  ;;  %v7208_v7 = vcvt.s32.f32 %v6076_v51 }
 0x166   :  { %v6132_v46 = vadd.s32 4294967169, %v2228_v8  ;;  %v6138_v10 = vadd.s32 4294967169, %v2537_v9 }
 0x167   :  { %v1963_v39 = vxor.u32 2147483648, %v1958_v14  ;;  %v2122_v60 = vsel %vm2120_vm11, %v1966_v15, %v1958_v14  ;;  %v1967_v40 = vsel %vm1965_vm14, %v1966_v15, %v1958_v14  ;;  %v1806_v16 = vand.u32 3, %v1805_v23 }
 0x168   :  { %v2543_v47 = vadd.s32 1, %v6138_v10 }
 0x169   :  { %v2119_v36 = vsel %vm2117_vm10, %v1950_v26, %v1963_v39  ;;  %v1964_v50 = vsel %vm1962_vm13, %v1950_v26, %v1963_v39  ;;  %vm1808_vm4 = vcmp.eq.s32.totalorder %v1806_v16, 0  ;;  %vm1811_vm5 = vcmp.eq.s32.totalorder %v1806_v16, 2 }
 0x16a   :  { %v2123_v37 = vsel %vm2116_vm15, %v2119_v36, %v2122_v60  ;;  %v1968_v44 = vsel %vm1961_vm1, %v1964_v50, %v1967_v40  ;;  %vm1807_vm6 = vcmp.lt.s32.totalorder %v1806_v16, 2  ;;  %v1810_v21 = vsel %vm1808_vm4, %v1641_v34, %v1654_v54 }
 0x16b   :  { %v7199_v57 = vsel %vm1959_vm3, nan, %v2123_v37  ;;  %v1969_v24 = vsel %vm1959_vm3, nan, %v1968_v44  ;;  %v1813_v0 = vsel %vm1811_vm5, %v1657_v42, %v1649_v6  ;;  %v2234_v26 = vadd.s32 1, %v6132_v46 }
 0x16c   :  { %v2182_v58 = vmul.f32 %v7199_v57, %v1660_v30  ;;  %v2180_v27 = vmul.f32 %v1969_v24, %v1660_v30  ;;  %v1814_v43 = vsel %vm1807_vm6, %v1810_v21, %v1813_v0  ;;  %vm2544_vm8 = vcmp.gt.s32.totalorder %v2543_v47, 0 }
 0x16d   :  { %vm2235_vm7 = vcmp.gt.s32.totalorder %v2234_v26, 0  ;;  %v1815_v48 = vsel %vm1650_vm2, nan, %v1814_v43  ;;  %v8763_v60 = vand.u32 2147483647, %v7201_v12  ;;  %v8798_v50 = vmov 920167782  }
 0x16e   :  { %v2183_v5 = vperm.slane %v2182_v58, 0  ;;  %v2190_v14 = vperm.slane %v2180_v27, 0  ;;  %v2236_v15 = vsel %vm2235_vm7, %v2234_v26, 0  ;;  %v2186_v23 = vmul.f32 %v1969_v24, %v1815_v48 }
 0x16f   :  { %v2238_v63 = vand.u32 31, %v2236_v15  ;;  %v2545_v19 = vsel %vm2544_vm8, %v2543_v47, 0  ;;  %v2231_v37 = vand.u32 8388607, %v8763_v60  ;;  %v7239_v28 = vshrl.u32 %v2236_v15, 5 }
 0x170   :  { %v2184_v55 = vmul.f32 %v2183_v5, %v7208_v7  ;;  %v2185_v39 = vmul.f32 %v2183_v5, %v7210_v1  ;;  %v7217_v34 = vmul.f32 %v2190_v14, %v7108_v49  ;;  %v2206_v6 = vmul.f32 %v2190_v14, %v7113_v59 }
 0x171   :  { %v7221_v54 = vmul.f32 %v2190_v14, %v7104_v29  ;;  %v2207_v42 = vmul.f32 %v2190_v14, %v7106_v56  ;;  %v7224_v2 = vsub.s32 32, %v2238_v63  ;;  %v2250_v61 = vshll.u32 %v8780_v41, %v2238_v63 }
 0x172   :  { %v7227_v4 = vmul.f32 %v2184_v55, %v7113_v59  ;;  %v2208_v36 = vmul.f32 %v2184_v55, %v7108_v49  ;;  %v7231_v32 = vmul.f32 %v2185_v39, %v7106_v56  ;;  %v2241_v59 = vshll.u32 %v8764_v35, %v2238_v63 }
 0x173   :  { %v2251_v40 = vshrl.u32 %v8798_v50, %v7224_v2  ;;  %v8799_v49 = vmov 2475754826   ;;  %v8800_v44 = vmov 2131351028   ;;  %v2248_v17 = vshrl.u32 %v8780_v41, %v7224_v2 }
 0x174   :  { %v2242_v56 = vshrl.u32 %v8799_v49, %v7224_v2  ;;  %v2244_v16 = vshll.u32 %v8799_v49, %v2238_v63  ;;  %v2245_v31 = vshrl.u32 %v8800_v44, %v7224_v2  ;;  %v2247_v33 = vshll.u32 %v8800_v44, %v2238_v63 }
 0x175   :  { %v2232_v30 = vor.u32 8388608, %v2231_v37  ;;  %v2252_v24 = vor.u32 %v2251_v40, %v2250_v61  ;;  %v2253_v25 = vshll.u32 %v8798_v50, %v2238_v63  ;;  %v2254_v13 = vshrl.u32 %v8770_v52, %v7224_v2 }
 0x176   :  { %v7250_v51 = vor.u32 %v2242_v56, %v2241_v59  ;;  %v7253_v53 = vor.u32 %v2245_v31, %v2244_v16  ;;  %v2249_v58 = vor.u32 %v2248_v17, %v2247_v33  ;;  %vm2256_vm9 = vcmp.lt.s32.totalorder %v7239_v28, 1 }
 0x177   :  { %vm2257_vm10 = vcmp.lt.s32.totalorder %v7239_v28, 2  ;;  %vm2258_vm11 = vcmp.lt.s32.totalorder %v7239_v28, 3  ;;  %vm2259_vm12 = vcmp.lt.s32.totalorder %v7239_v28, 4  ;;  %v7261_v8 = vshll.u32 %v2232_v30, 8 }
 0x178   :  { %v2255_v9 = vor.u32 %v2254_v13, %v2253_v25  ;;  %v2264_v27 = vsel %vm2256_vm9, %v7250_v51, %v7253_v53  ;;  %v2265_v46 = vsel %vm2259_vm12, %v2252_v24, 920167782  ;;  %v7269_v10 = vand.u32 31, %v2545_v19 }
 0x179   :  { %v2209_v21 = vmul.f32 %v2185_v39, %v7104_v29  ;;  %v2266_v0 = vsel %vm2258_vm11, %v2249_v58, %v2265_v46  ;;  %v2268_v5 = vsel %vm2256_vm9, %v7253_v53, %v2249_v58  ;;  %v2273_v26 = vand.u32 65535, %v7261_v8 }
 0x17a   :  { %v2181_v14 = vmul.f32 %v7199_v57, %v1815_v48  ;;  %v2187_v47 = vperm.slane %v2186_v23, 0  ;;  %v2267_v43 = vsel %vm2257_vm10, %v2264_v27, %v2266_v0  ;;  %v2269_v55 = vsel %vm2259_vm12, %v2255_v9, 1326507024 }
 0x17b   :  { %v2270_v29 = vsel %vm2258_vm11, %v2252_v24, %v2269_v55  ;;  %v2274_v39 = vshrl.u32 %v7261_v8, 16  ;;  %v2298_v15 = vshrl.u32 %v2267_v43, 16  ;;  %v8762_v63 = vand.u32 2147483647, %v7203_v3 }
 0x17c   :  { %v2195_v61 = vsub.f32 %v7217_v34, %v7227_v4  ;;  %v2271_v57 = vsel %vm2257_vm10, %v2268_v5, %v2270_v29  ;;  %v7292_v48 = vsub.s32 32, %v7269_v10  ;;  %v2297_v37 = vand.u32 65535, %v2267_v43 }
 0x17d   :  { %v2275_v23 = vand.u32 65535, %v2271_v57  ;;  %v2276_v40 = vshrl.u32 %v2271_v57, 16  ;;  %v7294_v59 = vmul.u32 %v2298_v15, %v2273_v26  ;;  %v7296_v56 = vperm.slane %v2181_v14, 0 }
 0x17e   :  { %v7298_v16 = vadd.f32 %v2208_v36, %v2206_v6  ;;  %v7302_v33 = vadd.f32 %v2209_v21, %v2207_v42  ;;  %v2188_v17 = vmul.f32 %v2187_v47, %v7208_v7  ;;  %v7309_v25 = vand.u32 8388607, %v8762_v63 }
 0x17f   :  { %v2278_v30 = vmul.u32 %v2276_v40, %v2273_v26  ;;  %v7305_v24 = vmul.u32 %v2275_v23, %v2274_v39  ;;  %v7312_v13 = vmul.f32 %v2187_v47, %v7210_v1  ;;  %v2277_v9 = vmul.u32 %v2275_v23, %v2273_v26 }
 0x180   :  { %v2559_v6 = vshll.u32 %v8780_v41, %v7269_v10  ;;  %v2560_v42 = vshrl.u32 %v8798_v50, %v7292_v48  ;;  %v2299_v36 = vmul.u32 %v2297_v37, %v2273_v26  ;;  %v2301_v27 = vmul.u32 %v2297_v37, %v2274_v39 }
 0x181   :  { %v2303_v46 = vshll.u32 %v7294_v59, 16  ;;  %v7319_v21 = vshrl.u32 %v2545_v19, 5  ;;  %v2280_v0 = vmul.u32 %v2276_v40, %v2274_v39  ;;  %v2281_v5 = vshll.u32 %v2278_v30, 16 }
 0x182   :  { %v2283_v14 = vshll.u32 %v7305_v24, 16  ;;  %v2550_v47 = vshll.u32 %v8764_v35, %v7269_v10  ;;  %v2302_v43 = vmul.u32 %v2298_v15, %v2274_v39  ;;  %v2551_v29 = vshrl.u32 %v8799_v49, %v7292_v48 }
 0x183   :  { %v2553_v26 = vshll.u32 %v8799_v49, %v7269_v10  ;;  %v2240_v19 = vshrl.u32 %v8764_v35, %v7224_v2  ;;  %vm2285_vm13 = vc.u32 %v2277_v9, %v2281_v5  ;;  %v2287_v57 = vadd.s32 %v2281_v5, %v2277_v9 }
 0x184   :  { %v2554_v23 = vshrl.u32 %v8800_v44, %v7292_v48  ;;  %v2261_v40 = vsel %vm2259_vm12, %v2249_v58, 2102212464  ;;  %v2286_v39 = vsel %vm2285_vm13, 1, %v8772_v62  ;;  %v2305_v15 = vshll.u32 %v2301_v27, 16 }
 0x185   :  { %vm2307_vm14 = vc.u32 %v2299_v36, %v2303_v46  ;;  %v2288_v37 = vadd.s32 %v2286_v39, %v2280_v0  ;;  %vm2289_vm15 = vc.u32 %v2287_v57, %v2283_v14  ;;  %v2309_v60 = vadd.s32 %v2303_v46, %v2299_v36 }
 0x186   :  { %v2308_v63 = vsel %vm2307_vm14, 1, %v8772_v62  ;;  %v2282_v2 = vshrl.u32 %v2278_v30, 16  ;;  %v2290_v9 = vsel %vm2289_vm15, 1, %v8772_v62  ;;  %v7338_v35 = vor.u32 %v2551_v29, %v2550_v47 }
 0x187   :  { %v2310_v5 = vadd.s32 %v2308_v63, %v2302_v43  ;;  %v2260_v58 = vsel %vm2256_vm9, %v2240_v19, %v7250_v51  ;;  %v2262_v0 = vsel %vm2258_vm11, %v7253_v53, %v2261_v40  ;;  %v2556_v14 = vshll.u32 %v8800_v44, %v7269_v10 }
 0x188   :  { %v2557_v36 = vshrl.u32 %v8780_v41, %v7292_v48  ;;  %v2292_v46 = vadd.s32 %v2290_v9, %v2288_v37  ;;  %v2304_v63 = vshrl.u32 %v7294_v59, 16  ;;  %vm2311_vm1 = vc.u32 %v2309_v60, %v2305_v15 }
 0x189   :  { %v2284_v43 = vshrl.u32 %v7305_v24, 16  ;;  %v2312_v51 = vsel %vm2311_vm1, 1, %v8772_v62  ;;  %v7353_v29 = vor.u32 %v2554_v23, %v2553_v26  ;;  %v2306_v53 = vshrl.u32 %v2301_v27, 16 }
 0x18a   :  { %v2293_v19 = vadd.s32 %v2292_v46, %v2282_v2  ;;  %v2314_v57 = vadd.s32 %v2312_v51, %v2310_v5  ;;  %v2562_v40 = vshll.u32 %v8798_v50, %v7269_v10  ;;  %v7361_v59 = vsel %vm2257_vm10, %v2260_v58, %v2262_v0 }
 0x18b   :  { %v2561_v26 = vor.u32 %v2560_v42, %v2559_v6  ;;  %vm2565_vm2 = vcmp.lt.s32.totalorder %v7319_v21, 1  ;;  %vm2568_vm3 = vcmp.lt.s32.totalorder %v7319_v21, 4  ;;  %vm2567_vm4 = vcmp.lt.s32.totalorder %v7319_v21, 3 }
 0x18c   :  { %v2315_v27 = vadd.s32 %v2314_v57, %v2304_v63  ;;  %v7375_v2 = vadd.s32 %v2293_v19, %v2284_v43  ;;  %vm2566_vm5 = vcmp.lt.s32.totalorder %v7319_v21, 2  ;;  %vm2226_vm1 = vcmp.lt.s32.totalorder %v7201_v12, 0 }
 0x18d   :  { %v2574_v42 = vsel %vm2568_vm3, %v2561_v26, 920167782 }
 0x18e   :  { %v2316_v9 = vadd.s32 %v2315_v27, %v2306_v53  ;;  %v6144_v53 = vld [vmem:[%s8751_s4 + $0x30] sm:$0xff] }
 0x1a6   :  { %v2151_v55 = vpop.f32.mrf.mxu0 }
 0x1a7   :  { %v2174_v31 = vpop.f32.mrf.mxu1  ;;  %v2197_v30 = vmul.f32 %v2188_v17, %v2151_v55  ;;  %v2216_v39 = vmul.f32 %v7296_v56, %v2151_v55  ;;  %v7370_v55 = vadd.s32 %v2309_v60, %v2305_v15  ;;  %v2573_v60 = vsel %vm2565_vm2, %v7338_v35, %v7353_v29 }
 0x1a8   :  { %v2212_v47 = vmul.f32 %v2188_v17, %v2174_v31  ;;  %v2202_v37 = vmul.f32 %v7296_v56, %v2174_v31  ;;  %v2563_v17 = vshrl.u32 %v8770_v52, %v7292_v48  ;;  %v7372_v31 = vor.u32 %v2557_v36, %v2556_v14 }
 0x1a9   :  { %v2199_v24 = vadd.f32 %v2197_v30, %v2195_v61  ;;  %v8801_v15 = vsub.f32 %v7221_v54, %v7231_v32  ;;  %v2320_v36 = vadd.s32 1, %v2316_v9  ;;  %v8802_v54 = vor.u32 8388608, %v7309_v25 }
 0x1aa   :  { %v2214_v10 = vadd.f32 %v2212_v47, %v7298_v16  ;;  %v2564_v5 = vor.u32 %v2563_v17, %v2562_v40  ;;  %v2575_v0 = vsel %vm2567_vm4, %v7372_v31, %v2574_v42  ;;  %v2577_v14 = vsel %vm2565_vm2, %v7353_v29, %v7372_v31  ;;  %v6145_v42 = vld [vmem:[%s8751_s4 + $0x38] sm:$0xff] }
 0x1ab   :  { %v7385_v61 = vsub.f32 %v2199_v24, %v2202_v37  ;;  %v7408_v32 = vshll.u32 %v8802_v54, 8  ;;  %vm2319_vm6 = vc.u32 %v7375_v2, %v7370_v55  ;;  %v2317_v17 = vmul.u32 %v7261_v8, %v7361_v59 }
 0x1ac   :  { %v2578_v30 = vsel %vm2568_vm3, %v2564_v5, 1326507024  ;;  %v7424_v19 = vadd.f32 %v2216_v39, %v2214_v10  ;;  %v2321_v24 = vsel %vm2319_vm6, %v2320_v36, %v2316_v9  ;;  %v2570_v54 = vsel %vm2568_vm3, %v7372_v31, 2102212464 }
 0x1ad   :  { %v2579_v63 = vsel %vm2567_vm4, %v2561_v26, %v2578_v30  ;;  %v2582_v43 = vand.u32 65535, %v7408_v32  ;;  %v2583_v51 = vshrl.u32 %v7408_v32, 16  ;;  %v2322_v8 = vadd.s32 %v2321_v24, %v2317_v17 }
 0x1ae   :  { %v2154_v28 = vpop.f32.mrf.mxu0  ;;  %v2580_v47 = vsel %vm2566_vm5, %v2577_v14, %v2579_v63  ;;  %v2571_v31 = vsel %vm2567_vm4, %v7353_v29, %v2570_v54 }
 0x1af   :  { %v2177_v23 = vpop.f32.mrf.mxu1  ;;  %v2198_v34 = vmul.f32 %v7312_v13, %v2154_v28  ;;  %v2217_v16 = vmul.f32 %v7296_v56, %v2154_v28  ;;  %v2584_v57 = vand.u32 65535, %v2580_v47  ;;  %v2585_v40 = vshrl.u32 %v2580_v47, 16 }
 0x1b0   :  { %v2213_v4 = vmul.f32 %v7312_v13, %v2177_v23  ;;  %v2203_v6 = vmul.f32 %v7296_v56, %v2177_v23  ;;  %v2576_v56 = vsel %vm2566_vm5, %v2573_v60, %v2575_v0  ;;  %v2323_v30 = vadd.s32 536870912, %v2322_v8 }
 0x1b1   :  { %v2200_v13 = vadd.f32 %v2198_v34, %v8801_v15  ;;  %v2606_v25 = vand.u32 65535, %v2576_v56  ;;  %v2607_v37 = vshrl.u32 %v2576_v56, 16  ;;  %v2586_v27 = vmul.u32 %v2584_v57, %v2582_v43 }
 0x1b2   :  { %v2215_v58 = vadd.f32 %v2213_v4, %v7302_v33  ;;  %v2587_v26 = vmul.u32 %v2585_v40, %v2582_v43  ;;  %v2588_v28 = vmul.u32 %v2584_v57, %v2583_v51  ;;  %v2589_v5 = vmul.u32 %v2585_v40, %v2583_v51 }
 0x1b3   :  { %v7410_v33 = vsub.f32 %v2200_v13, %v2203_v6  ;;  %v2608_v39 = vmul.u32 %v2606_v25, %v2582_v43  ;;  %v2609_v10 = vmul.u32 %v2607_v37, %v2582_v43  ;;  %v2610_v23 = vmul.u32 %v2606_v25, %v2583_v51 }
 0x1b4   :  { %v7412_v46 = vadd.f32 %v2217_v16, %v2215_v58  ;;  %v2590_v34 = vshll.u32 %v2587_v26, 16  ;;  %v2592_v4 = vshll.u32 %v2588_v28, 16  ;;  %v2611_v9 = vmul.u32 %v2607_v37, %v2583_v51 }
 0x1b5   :  { %2865 = vmatpush.msrb.mxu2 %v7410_v33  ;;  %v2612_v60 = vshll.u32 %v2609_v10, 16  ;;  %v2614_v6 = vshll.u32 %v2610_v23, 16  ;;  %v2591_v15 = vshrl.u32 %v2587_v26, 16  ;;  %v8803_v58 = vmov 683565275  }
 0x1b6   :  { %2888 = vmatpush.msrb.mxu3 %v7412_v46  ;;  %vm2594_vm7 = vc.u32 %v2586_v27, %v2590_v34  ;;  %v2596_v59 = vadd.s32 %v2590_v34, %v2586_v27  ;;  %v2549_v0 = vshrl.u32 %v8803_v58, %v7292_v48  ;;  %v2593_v43 = vshrl.u32 %v2588_v28, 16 }
 0x1b7   :  { %2866 = vmatpush.msrb.mxu2 %v7385_v61  ;;  %v2595_v16 = vsel %vm2594_vm7, 1, %v8772_v62  ;;  %vm2616_vm8 = vc.u32 %v2608_v39, %v2612_v60  ;;  %v2618_v56 = vadd.s32 %v2612_v60, %v2608_v39  ;;  %v2613_v51 = vshrl.u32 %v2609_v10, 16 }
 0x1b8   :  { %2889 = vmatpush.msrb.mxu3 %v7424_v19  ;;  %6146 = vmatmul.msk.f32.vlgmr.msrb.gmra.mxu2 %vm693_vm0, %v6144_v53  ;;  %v2597_v13 = vadd.s32 %v2595_v16, %v2589_v5  ;;  %vm2598_vm9 = vc.u32 %v2596_v59, %v2592_v4  ;;  %v2617_v36 = vsel %vm2616_vm8, 1, %v8772_v62  ;;  %v7455_v40 = vshrl.u32 %v2323_v30, 30 }
 0x1b9   :  { %6148 = vmatmul.msk.f32.vlgmr.msrb.gmra.mxu3 %vm693_vm0, %v6144_v53  ;;  %v2599_v14 = vsel %vm2598_vm9, 1, %v8772_v62  ;;  %v2619_v47 = vadd.s32 %v2617_v36, %v2611_v9  ;;  %vm2620_vm10 = vc.u32 %v2618_v56, %v2614_v6  ;;  %v2569_v53 = vsel %vm2565_vm2, %v2549_v0, %v7338_v35 }
 0x1ba   :  { %v2601_v63 = vadd.s32 %v2599_v14, %v2597_v13  ;;  %v2621_v25 = vsel %vm2620_vm10, 1, %v8772_v62  ;;  %v2615_v37 = vshrl.u32 %v2610_v23, 16  ;;  %v2622_v24 = vadd.s32 %v2618_v56, %v2614_v6 }
 0x1bb   :  { %v2623_v57 = vadd.s32 %v2621_v25, %v2619_v47  ;;  %v2572_v26 = vsel %vm2566_vm5, %v2569_v53, %v2571_v31  ;;  %v2325_v28 = vshll.u32 %v7455_v40, 30  ;;  %v2318_v56 = vadd.s32 %v7370_v55, %v7375_v2 }
 0x1bc   :  { %v2602_v48 = vadd.s32 %v2601_v63, %v2591_v15  ;;  %v2626_v10 = vmul.u32 %v7408_v32, %v2572_v26  ;;  %vm2535_vm2 = vcmp.lt.s32.totalorder %v7203_v3, 0 }
 0x1bd   :  { %v2624_v27 = vadd.s32 %v2623_v57, %v2613_v51  ;;  %v2326_v5 = vsub.s32 %v2322_v8, %v2325_v28 }
 0x1be   :  { %v2603_v17 = vadd.s32 %v2602_v48, %v2593_v43 }
 0x1bf   :  { %v2625_v39 = vadd.s32 %v2624_v27, %v2615_v37  ;;  %v2328_v4 = vsub.s32 0, %v2326_v5  ;;  %vm2327_vm12 = vcmp.lt.s32.totalorder %v2326_v5, 0 }
 0x1c0   :  { %6147 = vmatmul.msk.f32.gmra.mxu2 %vm693_vm0, %v6145_v42  ;;  %vm2628_vm11 = vc.u32 %v2603_v17, %v2622_v24  ;;  %v2627_v63 = vadd.s32 %v2622_v24, %v2603_v17  ;;  %v8804_v24 = vand.u32 2147483647, %v7201_v12 }
 0x1c1   :  { %6149 = vmatmul.msk.f32.gmra.mxu3 %vm693_vm0, %v6145_v42  ;;  %v2629_v35 = vadd.s32 1, %v2625_v39  ;;  %v2329_v59 = vsel %vm2327_vm12, %v2328_v4, %v2326_v5 }
 0x1c2   :  { %v2330_v16 = vclz %v2329_v59  ;;  %vm7470_vm3 = vcmp.le.f32.partialorder %v8804_v24, 0.7853982 }
 0x1c3   :  { %v2630_v34 = vsel %vm2628_vm11, %v2629_v35, %v2625_v39 }
 0x1c4   :  { %v2631_v29 = vadd.s32 %v2630_v34, %v2626_v10  ;;  %v6133_v15 = vadd.s32 4294967294, %v2330_v16 }
 0x1c6   :  { %v2632_v60 = vadd.s32 536870912, %v2631_v29  ;;  %vm6134_vm14 = vcmp.lt.s32.totalorder %v6133_v15, 0 }
 0x1c7   :  { %v2333_v8 = vsel %vm6134_vm14, 0, %v6133_v15 }
 0x1c8   :  { %v7461_v23 = vshrl.u32 %v2632_v60, 30  ;;  %v2338_v14 = vsub.s32 4294967266, %v2333_v8  ;;  %v2334_v30 = vsub.s32 32, %v2333_v8  ;;  %v2335_v51 = vshll.u32 %v2326_v5, %v2333_v8 }
 0x1c9   :  { %v8807_v60 = vand.u32 2147483647, %v7203_v3 }
 0x1ca   :  { %v2634_v9 = vshll.u32 %v7461_v23, 30  ;;  %v2339_v54 = vadd.s32 127, %v2338_v14  ;;  %v2336_v48 = vshrl.u32 %v2318_v56, %v2334_v30 }
 0x1cb   :  { %vm7478_vm4 = vcmp.le.f32.partialorder %v8807_v60, 0.7853982 }
 0x1cc   :  { %v2635_v21 = vsub.s32 %v2631_v29, %v2634_v9  ;;  %v2340_v25 = vshll.u32 %v2339_v54, 23  ;;  %v2337_v37 = vor.u32 %v2336_v48, %v2335_v51 }
 0x1ce   :  { %vm2636_vm13 = vcmp.lt.s32.totalorder %v2635_v21, 0  ;;  %v2637_v6 = vsub.s32 0, %v2635_v21  ;;  %v2341_v27 = vor.u32 4788187, %v2340_v25  ;;  %v2344_v10 = vcvt.s32.f32 %v2337_v37 }
 0x1cf   :  { %v2348_v25 = vsub.s32 4, %v7455_v40 }
 0x1d0   :  { %v2638_v42 = vsel %vm2636_vm13, %v2637_v6, %v2635_v21  ;;  %v2342_v39 = vand.u32 2147483647, %v2341_v27 }
 0x1d1   :  { %v2639_v32 = vclz %v2638_v42 }
 0x1d2   :  { %v2345_v55 = vmul.f32 %v2344_v10, %v2342_v39 }
 0x1d3   :  { %v6139_v13 = vadd.s32 4294967294, %v2639_v32 }
 0x1d4   :  { %v2346_v29 = vxor.u32 2147483648, %v2345_v55 }
 0x1d5   :  { %vm6140_vm15 = vcmp.lt.s32.totalorder %v6139_v13, 0 }
 0x1d6   :  { %v2642_v0 = vsel %vm6140_vm15, 0, %v6139_v13  ;;  %v2347_v4 = vsel %vm2226_vm1, %v2346_v29, %v2345_v55  ;;  %vm2367_vm15 = vweird.f32 %v7201_v12 }
 0x1d7   :  { %v2647_v36 = vsub.s32 4294967266, %v2642_v0  ;;  %v2643_v47 = vsub.s32 32, %v2642_v0  ;;  %v2644_v53 = vshll.u32 %v2635_v21, %v2642_v0  ;;  %v2350_v21 = vsel %vm7470_vm3, %v7201_v12, %v2347_v4 }
 0x1d8   :  { %v2352_v6 = vmul.f32 %v2350_v21, %v2350_v21 }
 0x1d9   :  { %v2648_v43 = vadd.s32 127, %v2647_v36  ;;  %v2645_v31 = vshrl.u32 %v2627_v63, %v2643_v47  ;;  %v2657_v63 = vsub.s32 4, %v7461_v23 }
 0x1da   :  { %v2360_v15 = vmul.f32 -0.00019511016, %v2352_v6  ;;  %v2353_v13 = vmul.f32 -0.001358992, %v2352_v6 }
 0x1db   :  { %v2649_v57 = vshll.u32 %v2648_v43, 23  ;;  %v2646_v26 = vor.u32 %v2645_v31, %v2644_v53  ;;  %v2658_v53 = vsel %vm2535_vm2, %v2657_v63, %v7461_v23 }
 0x1dc   :  { %v2361_v8 = vadd.f32 0.008332121, %v2360_v15  ;;  %v2354_v36 = vadd.f32 0.041655596, %v2353_v13 }
 0x1dd   :  { %v2650_v28 = vor.u32 4788187, %v2649_v57  ;;  %v2653_v34 = vcvt.s32.f32 %v2646_v26  ;;  %v2349_v26 = vsel %vm2226_vm1, %v2348_v25, %v7455_v40 }
 0x1de   :  { %v2362_v56 = vmul.f32 %v2361_v8, %v2352_v6  ;;  %v2355_v47 = vmul.f32 %v2354_v36, %v2352_v6  ;;  %v2351_v55 = vsel %vm7470_vm3, 0, %v2349_v26  ;;  %v61_v8 = vand.u32 1, %v6543_v22 }
 0x1df   :  { %v2651_v35 = vand.u32 2147483647, %v2650_v28  ;;  %v2660_v28 = vsel %vm7478_vm4, 0, %v2658_v53  ;;  %v2522_v23 = vadd.s32 3, %v2351_v55  ;;  %v2368_v60 = vand.u32 3, %v2351_v55 }
 0x1e0   :  { %v2363_v43 = vadd.f32 -0.16666654, %v2362_v56  ;;  %v2356_v31 = vadd.f32 -0.4999988, %v2355_v47  ;;  %v2677_v40 = vand.u32 3, %v2660_v28  ;;  %v63_v47 = vmul.u32 2, %v61_v8 }
 0x1e1   :  { %v2654_v2 = vmul.f32 %v2653_v34, %v2651_v35  ;;  %v2523_v15 = vand.u32 3, %v2522_v23  ;;  %vm2370_vm5 = vcmp.eq.s32.totalorder %v2368_v60, 0  ;;  %vm2373_vm6 = vcmp.eq.s32.totalorder %v2368_v60, 2 }
 0x1e2   :  { %v2364_v57 = vmul.f32 %v2363_v43, %v2352_v6  ;;  %v2357_v39 = vmul.f32 %v2356_v31, %v2352_v6  ;;  %vm2369_vm9 = vcmp.lt.s32.totalorder %v2368_v60, 2  ;;  %vm2679_vm12 = vcmp.eq.s32.totalorder %v2677_v40, 0 }
 0x1e3   :  { %v2655_v17 = vxor.u32 2147483648, %v2654_v2  ;;  %vm2525_vm10 = vcmp.eq.s32.totalorder %v2523_v15, 0  ;;  %vm2528_vm11 = vcmp.eq.s32.totalorder %v2523_v15, 2  ;;  %vm2682_vm13 = vcmp.eq.s32.totalorder %v2677_v40, 2 }
 0x1e4   :  { %v2365_v10 = vadd.f32 1.0, %v2364_v57  ;;  %v2358_v29 = vadd.f32 1.0, %v2357_v39  ;;  %vm2524_vm1 = vcmp.lt.s32.totalorder %v2523_v15, 2  ;;  %vm2678_vm3 = vcmp.lt.s32.totalorder %v2677_v40, 2 }
 0x1e5   :  { %v2656_v9 = vsel %vm2535_vm2, %v2655_v17, %v2654_v2  ;;  %v2831_v2 = vadd.s32 3, %v2660_v28  ;;  %vm2676_vm2 = vweird.f32 %v7203_v3  ;;  %v6078_v25 = vadd.s32 4294967295, %v63_v47 }
 0x1e6   :  { %v2659_v16 = vsel %vm7478_vm4, %v7203_v3, %v2656_v9  ;;  %v2366_v17 = vmul.f32 %v2365_v10, %v2350_v21  ;;  %v2374_v59 = vxor.u32 2147483648, %v2358_v29 }
 0x1e7   :  { %v2661_v42 = vmul.f32 %v2659_v16, %v2659_v16  ;;  %v2832_v9 = vand.u32 3, %v2831_v2  ;;  %v7514_v26 = vcvt.s32.f32 %v6078_v25  ;;  %v2938_v25 = vld [vmem:[%s8752_s3 + $0x8] sm:$0xff] }
 0x1e8   :  { %v2375_v21 = vsel %vm2373_vm6, %v2374_v59, %v2366_v17  ;;  %v2530_v36 = vsel %vm2528_vm11, %v2374_v59, %v2366_v17 }
 0x1e9   :  { %v2669_v32 = vmul.f32 -0.00019511016, %v2661_v42  ;;  %v2662_v0 = vmul.f32 -0.001358992, %v2661_v42  ;;  %vm2834_vm7 = vcmp.eq.s32.totalorder %v2832_v9, 0  ;;  %vm2837_vm8 = vcmp.eq.s32.totalorder %v2832_v9, 2 }
 0x1ea   :  { %vm2833_vm14 = vcmp.lt.s32.totalorder %v2832_v9, 2  ;;  %8810 = vst [vmem:[#allocation3_spill] sm:$0xff] %v7514_v26 }
 0x1eb   :  { %v2670_v14 = vadd.f32 0.008332121, %v2669_v32  ;;  %v2663_v30 = vadd.f32 0.041655596, %v2662_v0  ;;  %v2371_v32 = vxor.u32 2147483648, %v2366_v17  ;;  %v62_v0 = vand.u32 1, %v6565_v11 }
 0x1ed   :  { %v2671_v54 = vmul.f32 %v2670_v14, %v2661_v42  ;;  %v2664_v51 = vmul.f32 %v2663_v30, %v2661_v42  ;;  %v2372_v5 = vsel %vm2370_vm5, %v2358_v29, %v2371_v32  ;;  %v2527_v14 = vsel %vm2525_vm10, %v2358_v29, %v2371_v32 }
 0x1ee   :  { %v2376_v56 = vsel %vm2369_vm9, %v2372_v5, %v2375_v21  ;;  %v2531_v22 = vsel %vm2524_vm1, %v2527_v14, %v2530_v36  ;;  %v64_v43 = vmul.u32 2, %v62_v0 }
 0x1ef   :  { %v2672_v48 = vadd.f32 -0.16666654, %v2671_v54  ;;  %v2665_v37 = vadd.f32 -0.4999988, %v2664_v51  ;;  %v2377_v51 = vsel %vm2367_vm15, nan, %v2376_v56  ;;  %v2532_v3 = vsel %vm2367_vm15, nan, %v2531_v22 }
 0x1f0   :  { %v6079_v57 = vadd.s32 4294967295, %v64_v43 }
 0x1f1   :  { %v2673_v27 = vmul.f32 %v2672_v48, %v2661_v42  ;;  %v2666_v35 = vmul.f32 %v2665_v37, %v2661_v42 }
 0x1f2   :  { %v7516_v39 = vcvt.s32.f32 %v6079_v57  ;;  %v3050_v57 = vld [vmem:[%s8749_s0 + $0xc] sm:$0x1] }
 0x1f3   :  { %v2674_v34 = vadd.f32 1.0, %v2673_v27  ;;  %v2667_v24 = vadd.f32 1.0, %v2666_v35 }
 0x1f4   :  { %8811 = vst [vmem:[#allocation4_spill] sm:$0xff] %v7516_v39 }
 0x1f5   :  { %v2675_v4 = vmul.f32 %v2674_v34, %v2659_v16  ;;  %v2683_v6 = vxor.u32 2147483648, %v2667_v24 }
 0x1f7   :  { %v2680_v13 = vxor.u32 2147483648, %v2675_v4  ;;  %v2839_v42 = vsel %vm2837_vm8, %v2683_v6, %v2675_v4  ;;  %v2684_v54 = vsel %vm2682_vm13, %v2683_v6, %v2675_v4 }
 0x1f9   :  { %v2836_v16 = vsel %vm2834_vm7, %v2667_v24, %v2680_v13  ;;  %v2681_v30 = vsel %vm2679_vm12, %v2667_v24, %v2680_v13 }
 0x1fa   :  { %v2840_v63 = vsel %vm2833_vm14, %v2836_v16, %v2839_v42  ;;  %v2685_v11 = vsel %vm2678_vm3, %v2681_v30, %v2684_v54 }
 0x1fb   :  { %v2841_v48 = vsel %vm2676_vm2, nan, %v2840_v63  ;;  %v2686_v53 = vsel %vm2676_vm2, nan, %v2685_v11 }
 0x1fc   :  { %v2899_v31 = vmul.f32 %v2841_v48, %v2377_v51  ;;  %v2903_v37 = vmul.f32 %v2686_v53, %v2532_v3  ;;  %v2897_v27 = vmul.f32 %v2686_v53, %v2377_v51  ;;  %v2898_v15 = vmul.f32 %v2841_v48, %v2532_v3  ;;  %v2937_v48 = vld [vmem:[%s8752_s3] sm:$0xff]  ;;  %v6150_v3 = vld [vmem:[%s8752_s3 + $0x10] sm:$0xff]  ;;  %v6151_v53 = vld [vmem:[%s8752_s3 + $0x18] sm:$0xff] }
 0x1fe   :  { %v2900_v28 = vperm.slane %v2899_v31, 0  ;;  %v2904_v10 = vperm.slane %v2903_v37, 0  ;;  %v2907_v35 = vperm.slane %v2897_v27, 0  ;;  %v2918_v8 = vperm.slane %v2898_v15, 0  ;;  %v3048_v31 = vld [vmem:[%s8749_s0 + $0x8] sm:$0x1] }
 0x1ff   :  { %v7556_v37 = vmul.f32 0.5, %v3048_v31  ;;  %v7558_v27 = vmul.f32 0.5, %v3050_v57 }
 0x200   :  { %v2901_v55 = vmul.f32 %v2900_v28, %v7514_v26  ;;  %v2902_v12 = vmul.f32 %v2900_v28, %v7516_v39  ;;  %v2905_v23 = vmul.f32 %v2904_v10, %v7514_v26  ;;  %v2908_v29 = vmul.f32 %v2907_v35, %v7385_v61 }
 0x201   :  { %v2923_v17 = vmul.f32 %v2907_v35, %v7424_v19  ;;  %v2909_v60 = vmul.f32 %v2907_v35, %v7410_v33  ;;  %v2906_v40 = vmul.f32 %v2904_v10, %v7516_v39  ;;  %v2924_v32 = vmul.f32 %v2907_v35, %v7412_v46 }
 0x202   :  { %v2910_v24 = vmul.f32 %v2901_v55, %v7424_v19  ;;  %v2925_v4 = vmul.f32 %v2901_v55, %v7385_v61  ;;  %v2911_v9 = vmul.f32 %v2902_v12, %v7412_v46  ;;  %v2926_v59 = vmul.f32 %v2902_v12, %v7410_v33 }
 0x203   :  { %v3052_v28 = vand.u32 2147483647, %v7556_v37  ;;  %v3055_v10 = vand.u32 2139095040, %v7556_v37  ;;  %v3364_v35 = vand.u32 2139095040, %v7558_v27 }
 0x204   :  { %v2912_v5 = vsub.f32 %v2908_v29, %v2910_v24  ;;  %v2927_v21 = vadd.f32 %v2925_v4, %v2923_v17  ;;  %v2913_v42 = vsub.f32 %v2909_v60, %v2911_v9  ;;  %v2928_v0 = vadd.f32 %v2926_v59, %v2924_v32 }
 0x205   :  { %v3059_v55 = vand.u32 8388607, %v3052_v28 }
 0x23b   :  { %v2868_v34 = vpop.f32.mrf.mxu2 }
 0x23c   :  { %v2891_v2 = vpop.f32.mrf.mxu3  ;;  %v2914_v13 = vmul.f32 %v2905_v23, %v2868_v34  ;;  %v2933_v46 = vmul.f32 %v2918_v8, %v2868_v34  ;;  %v3056_v34 = vshrl.u32 %v3055_v10, 23 }
 0x23d   :  { %v2929_v6 = vmul.f32 %v2905_v23, %v2891_v2  ;;  %v2919_v22 = vmul.f32 %v2918_v8, %v2891_v2  ;;  %v3365_v2 = vshrl.u32 %v3364_v35, 23  ;;  %v3060_v23 = vor.u32 8388608, %v3059_v55 }
 0x23e   :  { %v2916_v36 = vadd.f32 %v2914_v13, %v2912_v5  ;;  %v6160_v12 = vadd.s32 4294967169, %v3056_v34 }
 0x23f   :  { %v2931_v56 = vadd.f32 %v2929_v6, %v2927_v21  ;;  %v6166_v29 = vadd.s32 4294967169, %v3365_v2  ;;  %v7565_v4 = vshll.u32 %v3060_v23, 8 }
 0x240   :  { %v2921_v51 = vsub.f32 %v2916_v36, %v2919_v22  ;;  %v3062_v17 = vadd.s32 1, %v6160_v12 }
 0x241   :  { %v2935_v11 = vadd.f32 %v2933_v46, %v2931_v56  ;;  %v3371_v24 = vadd.s32 1, %v6166_v29  ;;  %v3101_v32 = vand.u32 65535, %v7565_v4 }
 0x242   :  { %vm3063_vm4 = vcmp.gt.s32.totalorder %v3062_v17, 0 }
 0x243   :  { %v2871_v16 = vpop.f32.mrf.mxu2  ;;  %vm3372_vm5 = vcmp.gt.s32.totalorder %v3371_v24, 0  ;;  %v3064_v60 = vsel %vm3063_vm4, %v3062_v17, 0 }
 0x244   :  { %v2894_v19 = vpop.f32.mrf.mxu3  ;;  %v2915_v61 = vmul.f32 %v2906_v40, %v2871_v16  ;;  %v2934_v54 = vmul.f32 %v2918_v8, %v2871_v16  ;;  %v3065_v9 = vshrl.u32 %v3064_v60, 5  ;;  %v3066_v15 = vand.u32 31, %v3064_v60 }
 0x245   :  { %v2930_v14 = vmul.f32 %v2906_v40, %v2894_v19  ;;  %v2920_v63 = vmul.f32 %v2918_v8, %v2894_v19  ;;  %v3373_v40 = vsel %vm3372_vm5, %v3371_v24, 0 }
 0x246   :  { %v2917_v30 = vadd.f32 %v2915_v61, %v2913_v42  ;;  %v3067_v59 = vsub.s32 32, %v3066_v15  ;;  %v3069_v13 = vshll.u32 %v8803_v58, %v3066_v15  ;;  %v3072_v6 = vshll.u32 %v8799_v49, %v3066_v15 }
 0x247   :  { %v2932_v47 = vadd.f32 %v2930_v14, %v2928_v0  ;;  %v3075_v5 = vshll.u32 %v8800_v44, %v3066_v15  ;;  %v3078_v21 = vshll.u32 %v8780_v41, %v3066_v15  ;;  %v3081_v16 = vshll.u32 %v8798_v50, %v3066_v15 }
 0x248   :  { %v2922_v33 = vsub.f32 %v2917_v30, %v2920_v63  ;;  %v3102_v42 = vshrl.u32 %v7565_v4, 16  ;;  %v7574_v19 = vand.u32 31, %v3373_v40  ;;  %v3070_v8 = vshrl.u32 %v8799_v49, %v3067_v59 }
 0x249   :  { %v2936_v43 = vadd.f32 %v2934_v54, %v2932_v47  ;;  %v3073_v61 = vshrl.u32 %v8800_v44, %v3067_v59  ;;  %v3076_v0 = vshrl.u32 %v8780_v41, %v3067_v59  ;;  %vm3084_vm6 = vcmp.lt.s32.totalorder %v3065_v9, 1 }
 0x24a   :  { %2962 = vmatpush.msra.mxu0 %v2922_v33  ;;  %3016 = vmatpush.msra.mxu2 %v2922_v33  ;;  %v3068_v14 = vshrl.u32 %v8803_v58, %v3067_v59  ;;  %v3079_v36 = vshrl.u32 %v8798_v50, %v3067_v59  ;;  %v3082_v56 = vshrl.u32 %v8770_v52, %v3067_v59  ;;  %vm3087_vm7 = vcmp.lt.s32.totalorder %v3065_v9, 4 }
 0x24b   :  { %2991 = vmatpush.msra.mxu1 %v2936_v43  ;;  %3039 = vmatpush.msra.mxu3 %v2936_v43  ;;  %v3071_v30 = vor.u32 %v3070_v8, %v3069_v13  ;;  %v3074_v54 = vor.u32 %v3073_v61, %v3072_v6  ;;  %v3077_v63 = vor.u32 %v3076_v0, %v3075_v5  ;;  %v3361_v47 = vand.u32 2147483647, %v7558_v27 }
 0x24c   :  { %2963 = vmatpush.msra.mxu0 %v2921_v51  ;;  %3017 = vmatpush.msra.mxu2 %v2921_v51  ;;  %v3080_v46 = vor.u32 %v3079_v36, %v3078_v21  ;;  %v3083_v22 = vor.u32 %v3082_v56, %v3081_v16  ;;  %vm3085_vm8 = vcmp.lt.s32.totalorder %v3065_v9, 2  ;;  %vm3086_vm9 = vcmp.lt.s32.totalorder %v3065_v9, 3 }
 0x24d   :  { %2992 = vmatpush.msra.mxu1 %v2935_v11  ;;  %3040 = vmatpush.msra.mxu3 %v2935_v11  ;;  %v3089_v33 = vsel %vm3087_vm7, %v3077_v63, 2102212464  ;;  %v3092_v43 = vsel %vm3084_vm6, %v3071_v30, %v3074_v54  ;;  %v3096_v51 = vsel %vm3084_vm6, %v3074_v54, %v3077_v63  ;;  %v7586_v11 = vsub.s32 32, %v7574_v19 }
 0x24e   :  { %6152 = vmatmul.msk.f32.vlgmr.msra.gmra.mxu0 %vm693_vm0, %v2937_v48  ;;  %6154 = vmatmul.msk.f32.vlgmr.msra.gmra.mxu1 %vm693_vm0, %v6150_v3  ;;  %v3090_v31 = vsel %vm3086_vm9, %v3074_v54, %v3089_v33  ;;  %v7595_v55 = vshrl.u32 %v3373_v40, 5  ;;  %v3378_v60 = vshll.u32 %v8803_v58, %v7574_v19  ;;  %v3381_v40 = vshll.u32 %v8799_v49, %v7574_v19 }
 0x24f   :  { %6156 = vmatmul.msk.f32.vlgmr.msra.gmra.mxu2 %vm693_vm0, %v6150_v3  ;;  %6158 = vmatmul.msk.f32.vlgmr.msra.gmra.mxu3 %vm693_vm0, %v2937_v48  ;;  %v3093_v48 = vsel %vm3087_vm7, %v3080_v46, 920167782  ;;  %v3097_v3 = vsel %vm3087_vm7, %v3083_v22, 1326507024  ;;  %v3379_v15 = vshrl.u32 %v8799_v49, %v7586_v11  ;;  %v3382_v9 = vshrl.u32 %v8800_v44, %v7586_v11 }
 0x250   :  { %v3094_v57 = vsel %vm3086_vm9, %v3077_v63, %v3093_v48  ;;  %v3098_v10 = vsel %vm3086_vm9, %v3080_v46, %v3097_v3  ;;  %v3385_v3 = vshrl.u32 %v8780_v41, %v7586_v11  ;;  %vm3393_vm14 = vcmp.lt.s32.totalorder %v7595_v55, 1 }
 0x251   :  { %v3095_v35 = vsel %vm3085_vm8, %v3092_v43, %v3094_v57  ;;  %v3099_v34 = vsel %vm3085_vm8, %v3096_v51, %v3098_v10  ;;  %vm3395_vm15 = vcmp.lt.s32.totalorder %v7595_v55, 3  ;;  %vm3394_vm1 = vcmp.lt.s32.totalorder %v7595_v55, 2 }
 0x252   :  { %v3103_v2 = vand.u32 65535, %v3099_v34  ;;  %v3104_v12 = vshrl.u32 %v3099_v34, 16  ;;  %v3125_v23 = vand.u32 65535, %v3095_v35  ;;  %v3126_v29 = vshrl.u32 %v3095_v35, 16 }
 0x253   :  { %v3380_v35 = vor.u32 %v3379_v15, %v3378_v60  ;;  %v7619_v34 = vor.u32 %v3382_v9, %v3381_v40  ;;  %vm3396_vm2 = vcmp.lt.s32.totalorder %v7595_v55, 4 }
 0x254   :  { %v3105_v59 = vmul.u32 %v3103_v2, %v3101_v32  ;;  %v3106_v13 = vmul.u32 %v3104_v12, %v3101_v32  ;;  %v3107_v6 = vmul.u32 %v3103_v2, %v3102_v42  ;;  %v3127_v5 = vmul.u32 %v3125_v23, %v3101_v32 }
 0x255   :  { %v3128_v21 = vmul.u32 %v3126_v29, %v3101_v32  ;;  %v3129_v16 = vmul.u32 %v3125_v23, %v3102_v42  ;;  %v3108_v8 = vmul.u32 %v3104_v12, %v3102_v42  ;;  %v3130_v56 = vmul.u32 %v3126_v29, %v3102_v42 }
 0x256   :  { %6153 = vmatmul.msk.f32.gmra.mxu0 %vm693_vm0, %v2938_v25  ;;  %6155 = vmatmul.msk.f32.gmra.mxu1 %vm693_vm0, %v6151_v53  ;;  %v3109_v61 = vshll.u32 %v3106_v13, 16  ;;  %v3111_v0 = vshll.u32 %v3107_v6, 16  ;;  %v3110_v36 = vshrl.u32 %v3106_v13, 16  ;;  %v3112_v63 = vshrl.u32 %v3107_v6, 16 }
 0x257   :  { %6157 = vmatmul.msk.f32.gmra.mxu2 %vm693_vm0, %v6151_v53  ;;  %6159 = vmatmul.msk.f32.gmra.mxu3 %vm693_vm0, %v2938_v25  ;;  %v7590_v25 = vand.u32 8388607, %v3361_v47  ;;  %v3088_v53 = vsel %vm3084_vm6, %v3068_v14, %v3071_v30  ;;  %v3384_v14 = vshll.u32 %v8800_v44, %v7574_v19  ;;  %v3131_v30 = vshll.u32 %v3128_v21, 16 }
 0x258   :  { %v7598_v17 = vsel %vm3085_vm8, %v3088_v53, %v3090_v31  ;;  %v3133_v54 = vshll.u32 %v3129_v16, 16  ;;  %vm3113_vm10 = vc.u32 %v3105_v59, %v3109_v61  ;;  %v3115_v46 = vadd.s32 %v3109_v61, %v3105_v59 }
 0x259   :  { %v3369_v24 = vor.u32 8388608, %v7590_v25  ;;  %v3132_v22 = vshrl.u32 %v3128_v21, 16  ;;  %v3114_v32 = vsel %vm3113_vm10, 1, %v8772_v62  ;;  %v3134_v33 = vshrl.u32 %v3129_v16, 16 }
 0x25a   :  { %vm3135_vm11 = vc.u32 %v3127_v5, %v3131_v30  ;;  %v3137_v43 = vadd.s32 %v3131_v30, %v3127_v5  ;;  %v3116_v51 = vadd.s32 %v3114_v32, %v3108_v8  ;;  %vm3117_vm12 = vc.u32 %v3115_v46, %v3111_v0 }
 0x25b   :  { %v3136_v48 = vsel %vm3135_vm11, 1, %v8772_v62  ;;  %v3118_v42 = vsel %vm3117_vm12, 1, %v8772_v62  ;;  %v3387_v31 = vshll.u32 %v8780_v41, %v7574_v19  ;;  %v3388_v12 = vshrl.u32 %v8798_v50, %v7586_v11 }
 0x25c   :  { %v3138_v53 = vadd.s32 %v3136_v48, %v3130_v56  ;;  %vm3139_vm13 = vc.u32 %v3137_v43, %v3133_v54  ;;  %v3120_v57 = vadd.s32 %v3118_v42, %v3116_v51  ;;  %v3390_v23 = vshll.u32 %v8798_v50, %v7574_v19 }
 0x25d   :  { %v3140_v10 = vsel %vm3139_vm13, 1, %v8772_v62  ;;  %v3391_v29 = vshrl.u32 %v8770_v52, %v7586_v11  ;;  %v7627_v13 = vadd.s32 %v3137_v43, %v3133_v54  ;;  %v3386_v6 = vor.u32 %v3385_v3, %v3384_v14 }
 0x25e   :  { %v3142_v2 = vadd.s32 %v3140_v10, %v3138_v53  ;;  %v3121_v59 = vadd.s32 %v3120_v57, %v3110_v36  ;;  %v3389_v60 = vor.u32 %v3388_v12, %v3387_v31  ;;  %v3401_v19 = vsel %vm3393_vm14, %v3380_v35, %v7619_v34 }
 0x25f   :  { %v3392_v15 = vor.u32 %v3391_v29, %v3390_v23  ;;  %v3145_v9 = vmul.u32 %v7565_v4, %v7598_v17  ;;  %v3405_v61 = vsel %vm3393_vm14, %v7619_v34, %v3386_v6  ;;  %v7657_v17 = vshll.u32 %v3369_v24, 8 }
 0x260   :  { %v3143_v5 = vadd.s32 %v3142_v2, %v3132_v22  ;;  %v7631_v40 = vadd.s32 %v3121_v59, %v3112_v63  ;;  %v3402_v16 = vsel %vm3396_vm2, %v3389_v60, 920167782  ;;  %v3377_v48 = vshrl.u32 %v8803_v58, %v7586_v11 }
 0x261   :  { %v3403_v8 = vsel %vm3395_vm15, %v3386_v6, %v3402_v16  ;;  %v3406_v36 = vsel %vm3396_vm2, %v3392_v15, 1326507024  ;;  %v3410_v22 = vand.u32 65535, %v7657_v17  ;;  %v3411_v32 = vshrl.u32 %v7657_v17, 16 }
 0x262   :  { %v3144_v21 = vadd.s32 %v3143_v5, %v3134_v33  ;;  %vm3147_vm3 = vc.u32 %v7631_v40, %v7627_v13  ;;  %v3404_v14 = vsel %vm3394_vm1, %v3401_v19, %v3403_v8  ;;  %v3407_v4 = vsel %vm3395_vm15, %v3389_v60, %v3406_v36 }
 0x263   :  { %v3408_v30 = vsel %vm3394_vm1, %v3405_v61, %v3407_v4  ;;  %v3434_v54 = vand.u32 65535, %v3404_v14  ;;  %v3435_v63 = vshrl.u32 %v3404_v14, 16  ;;  %v3397_v5 = vsel %vm3393_vm14, %v3377_v48, %v3380_v35 }
 0x264   :  { %v3148_v0 = vadd.s32 1, %v3144_v21  ;;  %v3412_v33 = vand.u32 65535, %v3408_v30  ;;  %v3413_v43 = vshrl.u32 %v3408_v30, 16  ;;  %v3398_v11 = vsel %vm3396_vm2, %v3386_v6, 2102212464 }
 0x265   :  { %v3436_v42 = vmul.u32 %v3434_v54, %v3410_v22  ;;  %v3437_v53 = vmul.u32 %v3435_v63, %v3410_v22  ;;  %v3438_v31 = vmul.u32 %v3434_v54, %v3411_v32  ;;  %v3439_v23 = vmul.u32 %v3435_v63, %v3411_v32 }
 0x266   :  { %v3149_v56 = vsel %vm3147_vm3, %v3148_v0, %v3144_v21  ;;  %v3414_v25 = vmul.u32 %v3412_v33, %v3410_v22  ;;  %v3416_v24 = vmul.u32 %v3412_v33, %v3411_v32  ;;  %v3415_v3 = vmul.u32 %v3413_v43, %v3410_v22 }
 0x267   :  { %v3150_v46 = vadd.s32 %v3149_v56, %v3145_v9  ;;  %v3417_v10 = vmul.u32 %v3413_v43, %v3411_v32  ;;  %v3440_v29 = vshll.u32 %v3437_v53, 16  ;;  %v3442_v60 = vshll.u32 %v3438_v31, 16 }
 0x268   :  { %v3418_v2 = vshll.u32 %v3415_v3, 16  ;;  %v3420_v12 = vshll.u32 %v3416_v24, 16  ;;  %v3419_v16 = vshrl.u32 %v3415_v3, 16  ;;  %v3441_v0 = vshrl.u32 %v3437_v53, 16 }
 0x269   :  { %v3151_v51 = vadd.s32 536870912, %v3150_v46  ;;  %vm3444_vm5 = vc.u32 %v3436_v42, %v3440_v29  ;;  %v3446_v19 = vadd.s32 %v3440_v29, %v3436_v42  ;;  %v3399_v6 = vsel %vm3395_vm15, %v7619_v34, %v3398_v11 }
 0x26a   :  { %vm3422_vm4 = vc.u32 %v3414_v25, %v3418_v2  ;;  %v3424_v15 = vadd.s32 %v3418_v2, %v3414_v25  ;;  %v3445_v8 = vsel %vm3444_vm5, 1, %v8772_v62  ;;  %v3421_v4 = vshrl.u32 %v3416_v24, 16 }
 0x26b   :  { %v7665_v57 = vshrl.u32 %v3151_v51, 30  ;;  %v3423_v9 = vsel %vm3422_vm4, 1, %v8772_v62  ;;  %v3447_v14 = vadd.s32 %v3445_v8, %v3439_v23  ;;  %vm3448_vm8 = vc.u32 %v3446_v19, %v3442_v60 }
 0x26c   :  { %v3425_v61 = vadd.s32 %v3423_v9, %v3417_v10  ;;  %vm3426_vm6 = vc.u32 %v3424_v15, %v3420_v12  ;;  %v3449_v30 = vsel %vm3448_vm8, 1, %v8772_v62  ;;  %v3443_v63 = vshrl.u32 %v3438_v31, 16 }
 0x26d   :  { %v3153_v59 = vshll.u32 %v7665_v57, 30  ;;  %v3427_v36 = vsel %vm3426_vm6, 1, %v8772_v62  ;;  %v3450_v33 = vadd.s32 %v3446_v19, %v3442_v60  ;;  %v3400_v43 = vsel %vm3394_vm1, %v3397_v5, %v3399_v6 }
 0x26e   :  { %v3429_v56 = vadd.s32 %v3427_v36, %v3425_v61  ;;  %v3146_v34 = vadd.s32 %v7627_v13, %v7631_v40  ;;  %v3454_v24 = vmul.u32 %v7657_v17, %v3400_v43  ;;  %vm3054_vm11 = vcmp.lt.s32.totalorder %v7556_v37, 0 }
 0x26f   :  { %v3154_v21 = vsub.s32 %v3150_v46, %v3153_v59  ;;  %v3451_v46 = vadd.s32 %v3449_v30, %v3447_v14  ;;  %vm7687_vm12 = vcmp.le.f32.partialorder %v3052_v28, 0.7853982  ;;  %vm3363_vm15 = vcmp.lt.s32.totalorder %v7558_v27, 0 }
 0x270   :  { %v3430_v32 = vadd.s32 %v3429_v56, %v3419_v16  ;;  %vm7700_vm1 = vcmp.le.f32.partialorder %v3361_v47, 0.7853982 }
 0x271   :  { %vm3155_vm7 = vcmp.lt.s32.totalorder %v3154_v21, 0  ;;  %v3156_v35 = vsub.s32 0, %v3154_v21  ;;  %v3452_v51 = vadd.s32 %v3451_v46, %v3441_v0 }
 0x272   :  { %v3431_v25 = vadd.s32 %v3430_v32, %v3421_v4 }
 0x273   :  { %v3157_v54 = vsel %vm3155_vm7, %v3156_v35, %v3154_v21  ;;  %v3453_v3 = vadd.s32 %v3452_v51, %v3443_v63  ;;  %vm3195_vm7 = vweird.f32 %v7556_v37 }
 0x274   :  { %v3158_v22 = vclz %v3157_v54  ;;  %vm3456_vm10 = vc.u32 %v3431_v25, %v3450_v33  ;;  %v3455_v56 = vadd.s32 %v3450_v33, %v3431_v25 }
 0x275   :  { %v3457_v53 = vadd.s32 1, %v3453_v3 }
 0x276   :  { %v6161_v48 = vadd.s32 4294967294, %v3158_v22 }
 0x277   :  { %v3458_v12 = vsel %vm3456_vm10, %v3457_v53, %v3453_v3 }
 0x278   :  { %vm6162_vm9 = vcmp.lt.s32.totalorder %v6161_v48, 0  ;;  %v3459_v29 = vadd.s32 %v3458_v12, %v3454_v24  ;;  %v3176_v12 = vsub.s32 4, %v7665_v57 }
 0x279   :  { %v3161_v42 = vsel %vm6162_vm9, 0, %v6161_v48 }
 0x27a   :  { %v3162_v31 = vsub.s32 32, %v3161_v42  ;;  %v3163_v10 = vshll.u32 %v3154_v21, %v3161_v42  ;;  %v3166_v2 = vsub.s32 4294967266, %v3161_v42  ;;  %v3460_v11 = vadd.s32 536870912, %v3459_v29 }
 0x27c   :  { %v3164_v23 = vshrl.u32 %v3146_v34, %v3162_v31  ;;  %v3167_v55 = vadd.s32 127, %v3166_v2  ;;  %v3461_v19 = vshrl.u32 %v3460_v11, 30 }
 0x27e   :  { %v3165_v59 = vor.u32 %v3164_v23, %v3163_v10  ;;  %v3168_v5 = vshll.u32 %v3167_v55, 23  ;;  %v3462_v40 = vshll.u32 %v3461_v19, 30  ;;  %v3485_v55 = vsub.s32 4, %v3461_v19 }
 0x280   :  { %v3169_v60 = vor.u32 4788187, %v3168_v5  ;;  %v3172_v15 = vcvt.s32.f32 %v3165_v59  ;;  %v3463_v17 = vsub.s32 %v3459_v29, %v3462_v40 }
 0x282   :  { %v3170_v13 = vand.u32 2147483647, %v3169_v60  ;;  %vm3464_vm13 = vcmp.lt.s32.totalorder %v3463_v17, 0  ;;  %v3465_v8 = vsub.s32 0, %v3463_v17 }
 0x284   :  { %v3173_v16 = vmul.f32 %v3172_v15, %v3170_v13  ;;  %v3466_v14 = vsel %vm3464_vm13, %v3465_v8, %v3463_v17 }
 0x285   :  { %v3467_v36 = vclz %v3466_v14 }
 0x286   :  { %v3174_v9 = vxor.u32 2147483648, %v3173_v16 }
 0x287   :  { %v6167_v6 = vadd.s32 4294967294, %v3467_v36 }
 0x288   :  { %v3175_v61 = vsel %vm3054_vm11, %v3174_v9, %v3173_v16  ;;  %v3177_v9 = vsel %vm3054_vm11, %v3176_v12, %v7665_v57 }
 0x289   :  { %v3178_v0 = vsel %vm7687_vm12, %v7556_v37, %v3175_v61  ;;  %vm6168_vm14 = vcmp.lt.s32.totalorder %v6167_v6, 0  ;;  %v3486_v61 = vsel %vm3363_vm15, %v3485_v55, %v3461_v19  ;;  %v6252_v19 = vld [vmem:[%s8751_s4] sm:$0xff] }
 0x28a   :  { %v3180_v35 = vmul.f32 %v3178_v0, %v3178_v0  ;;  %v3470_v28 = vsel %vm6168_vm14, 0, %v6167_v6  ;;  %v7718_v6 = vsel %vm7687_vm12, 0, %v3177_v9  ;;  %vm3504_vm12 = vweird.f32 %v7558_v27 }
 0x28b   :  { %v3471_v54 = vsub.s32 32, %v3470_v28  ;;  %v3472_v63 = vshll.u32 %v3463_v17, %v3470_v28  ;;  %v3475_v22 = vsub.s32 4294967266, %v3470_v28 }
 0x28c   :  { %v3188_v4 = vmul.f32 -0.00019511016, %v3180_v35  ;;  %v3181_v30 = vmul.f32 -0.001358992, %v3180_v35 }
 0x28d   :  { %v3473_v32 = vshrl.u32 %v3455_v56, %v3471_v54  ;;  %v3476_v48 = vadd.s32 127, %v3475_v22  ;;  %v3196_v22 = vand.u32 3, %v7718_v6 }
 0x28e   :  { %v3189_v46 = vadd.f32 0.008332121, %v3188_v4  ;;  %v3182_v3 = vadd.f32 0.041655596, %v3181_v30  ;;  %v3488_v4 = vsel %vm7700_vm1, 0, %v3486_v61 }
 0x28f   :  { %v3474_v34 = vor.u32 %v3473_v32, %v3472_v63  ;;  %v3477_v42 = vshll.u32 %v3476_v48, 23  ;;  %v3659_v32 = vadd.s32 3, %v3488_v4  ;;  %vm3198_vm2 = vcmp.eq.s32.totalorder %v3196_v22, 0 }
 0x290   :  { %v3190_v24 = vmul.f32 %v3189_v46, %v3180_v35  ;;  %v3183_v10 = vmul.f32 %v3182_v3, %v3180_v35  ;;  %vm3201_vm3 = vcmp.eq.s32.totalorder %v3196_v22, 2  ;;  %vm3197_vm4 = vcmp.lt.s32.totalorder %v3196_v22, 2 }
 0x291   :  { %v3478_v53 = vor.u32 4788187, %v3477_v42  ;;  %v3481_v31 = vcvt.s32.f32 %v3474_v34 }
 0x292   :  { %v3191_v2 = vadd.f32 -0.16666654, %v3190_v24  ;;  %v3184_v23 = vadd.f32 -0.4999988, %v3183_v10 }
 0x293   :  { %v3479_v33 = vand.u32 2147483647, %v3478_v53  ;;  %v3660_v53 = vand.u32 3, %v3659_v32 }
 0x294   :  { %v3192_v5 = vmul.f32 %v3191_v2, %v3180_v35  ;;  %v3185_v8 = vmul.f32 %v3184_v23, %v3180_v35  ;;  %v6253_v2 = vld [vmem:[%s8751_s4 + $0x8] sm:$0xff] }
 0x295   :  { %v3482_v25 = vmul.f32 %v3481_v31, %v3479_v33  ;;  %vm3665_vm6 = vcmp.eq.s32.totalorder %v3660_v53, 2  ;;  %vm3662_vm10 = vcmp.eq.s32.totalorder %v3660_v53, 0  ;;  %vm3661_vm11 = vcmp.lt.s32.totalorder %v3660_v53, 2 }
 0x296   :  { %v3193_v14 = vadd.f32 1.0, %v3192_v5  ;;  %v7726_v56 = vadd.f32 1.0, %v3185_v8 }
 0x297   :  { %v3483_v60 = vxor.u32 2147483648, %v3482_v25 }
 0x298   :  { %v7728_v54 = vmul.f32 %v3193_v14, %v3178_v0  ;;  %v8767_v34 = vxor.u32 2147483648, %v7726_v56  ;;  %v3505_v0 = vand.u32 3, %v3488_v4 }
 0x299   :  { %v3484_v17 = vsel %vm3363_vm15, %v3483_v60, %v3482_v25 }
 0x29a   :  { %v3487_v47 = vsel %vm7700_vm1, %v7558_v27, %v3484_v17  ;;  %v8768_v3 = vxor.u32 2147483648, %v7728_v54  ;;  %v3203_v25 = vsel %vm3201_vm3, %v8767_v34, %v7728_v54  ;;  %vm3510_vm5 = vcmp.eq.s32.totalorder %v3505_v0, 2 }
 0x29b   :  { %v3489_v36 = vmul.f32 %v3487_v47, %v3487_v47  ;;  %vm3506_vm8 = vcmp.lt.s32.totalorder %v3505_v0, 2  ;;  %vm3507_vm9 = vcmp.eq.s32.totalorder %v3505_v0, 0 }
 0x29c   :  { %v3200_v33 = vsel %vm3198_vm2, %v7726_v56, %v8768_v3 }
 0x29d   :  { %v3490_v57 = vmul.f32 -0.001358992, %v3489_v36  ;;  %v3497_v35 = vmul.f32 -0.00019511016, %v3489_v36 }
 0x29f   :  { %v3491_v21 = vadd.f32 0.041655596, %v3490_v57  ;;  %v3498_v63 = vadd.f32 0.008332121, %v3497_v35 }
 0x2cb   :  { %v2965_v43 = vpop.f32.mrf.mxu0  ;;  %v2994_v51 = vpop.f32.mrf.mxu1 }
 0x2cc   :  { %v7706_v16 = vsub.f32 %v2965_v43, %v2994_v51  ;;  %v3492_v43 = vmul.f32 %v3491_v21, %v3489_v36  ;;  %v3499_v51 = vmul.f32 %v3498_v63, %v3489_v36 }
 0x2ce   :  { %v3493_v24 = vadd.f32 -0.4999988, %v3492_v43  ;;  %v3500_v42 = vadd.f32 -0.16666654, %v3499_v51 }
 0x2d0   :  { %v3494_v31 = vmul.f32 %v3493_v24, %v3489_v36  ;;  %v3501_v10 = vmul.f32 %v3500_v42, %v3489_v36 }
 0x2d2   :  { %v3019_v29 = vpop.f32.mrf.mxu2  ;;  %v3042_v59 = vpop.f32.mrf.mxu3  ;;  %v3495_v12 = vadd.f32 1.0, %v3494_v31  ;;  %v3502_v23 = vadd.f32 1.0, %v3501_v10 }
 0x2d3   :  { %v2968_v15 = vpop.f32.mrf.mxu0  ;;  %v2997_v13 = vpop.f32.mrf.mxu1  ;;  %v3043_v48 = vadd.f32 %v3042_v59, %v3019_v29  ;;  %v3204_v59 = vsel %vm3197_vm4, %v3200_v33, %v3203_v25 }
 0x2d4   :  { %v7704_v40 = vsub.f32 %v2968_v15, %v2997_v13  ;;  %v3503_v55 = vmul.f32 %v3502_v23, %v3487_v47  ;;  %v3511_v29 = vxor.u32 2147483648, %v3495_v12  ;;  %v3205_v15 = vsel %vm3195_vm7, nan, %v3204_v59 }
 0x2d6   :  { %3684 = vmatpush.msrb.mxu0 %v7704_v40  ;;  %v3508_v5 = vxor.u32 2147483648, %v3503_v55  ;;  %v3512_v11 = vsel %vm3510_vm5, %v3511_v29, %v3503_v55  ;;  %v3667_v60 = vsel %vm3665_vm6, %v3511_v29, %v3503_v55 }
 0x2d8   :  { %3685 = vmatpush.msrb.mxu0 %v7706_v16  ;;  %v3509_v13 = vsel %vm3507_vm9, %v3495_v12, %v3508_v5  ;;  %v3664_v17 = vsel %vm3662_vm10, %v3495_v12, %v3508_v5 }
 0x2d9   :  { %6172 = vmatmul.msk.f32.vlgmr.msrb.gmra.mxu0 %vm693_vm0, %v6252_v19  ;;  %v3513_v9 = vsel %vm3506_vm8, %v3509_v13, %v3512_v11  ;;  %v3668_v8 = vsel %vm3661_vm11, %v3664_v17, %v3667_v60 }
 0x2da   :  { %v3022_v28 = vpop.f32.mrf.mxu2  ;;  %v3045_v30 = vpop.f32.mrf.mxu3  ;;  %v7749_v61 = vsel %vm3504_vm12, nan, %v3513_v9  ;;  %v7751_v47 = vsel %vm3504_vm12, nan, %v3668_v8 }
 0x2db   :  { %v3046_v46 = vadd.f32 %v3045_v30, %v3022_v28  ;;  %v3716_v14 = vmul.f32 %v7749_v61, %v3205_v15  ;;  %v3718_v36 = vmul.f32 %v7751_v47, %v3205_v15 }
 0x2dd   :  { %3707 = vmatpush.msrb.mxu1 %v3046_v46  ;;  %v3719_v4 = vperm.slane %v3718_v36, 0  ;;  %v3726_v57 = vperm.slane %v3716_v14, 0 }
 0x2df   :  { %3708 = vmatpush.msrb.mxu1 %v3043_v48  ;;  %v3720_v27 = vmul.f32 %v3719_v4, %v6718_v45  ;;  %v7757_v35 = vmul.f32 %v3726_v57, %v7706_v16  ;;  %v3721_v28 = vmul.f32 %v3719_v4, %v6716_v20  ;;  %v7761_v30 = vmul.f32 %v3726_v57, %v7704_v40 }
 0x2e0   :  { %6174 = vmatmul.msk.f32.vlgmr.msrb.gmra.mxu1 %vm693_vm0, %v6252_v19  ;;  %v3742_v19 = vmul.f32 %v3726_v57, %v3043_v48  ;;  %v3743_v21 = vmul.f32 %v3726_v57, %v3046_v46 }
 0x2e1   :  { %6173 = vmatmul.msk.f32.gmra.mxu0 %vm693_vm0, %v6253_v2  ;;  %v3744_v63 = vmul.f32 %v3720_v27, %v7706_v16  ;;  %v7764_v22 = vmul.f32 %v3720_v27, %v3043_v48  ;;  %v3745_v32 = vmul.f32 %v3721_v28, %v7704_v40  ;;  %v7767_v43 = vmul.f32 %v3721_v28, %v3046_v46  ;;  %v3756_v16 = vld [vmem:[%s8749_s0 + $0x9] sm:$0x1]  ;;  %v3758_v40 = vld [vmem:[%s8749_s0 + $0xd] sm:$0x1] }
 0x2e2   :  { %v7783_v46 = vmul.f32 0.5, %v3756_v16  ;;  %v7785_v48 = vmul.f32 0.5, %v3758_v40 }
 0x2e3   :  { %v7771_v24 = vadd.f32 %v3744_v63, %v3742_v19  ;;  %v7775_v0 = vadd.f32 %v3745_v32, %v3743_v21 }
 0x2e4   :  { %v3763_v53 = vand.u32 2139095040, %v7783_v46  ;;  %v4072_v31 = vand.u32 2139095040, %v7785_v48  ;;  %v8769_v60 = vand.u32 2147483647, %v7783_v46  ;;  %v8766_v17 = vand.u32 2147483647, %v7785_v48 }
 0x2e6   :  { %v3764_v10 = vshrl.u32 %v3763_v53, 23  ;;  %v3767_v8 = vand.u32 8388607, %v8769_v60 }
 0x2e8   :  { %6175 = vmatmul.msk.f32.gmra.mxu1 %vm693_vm0, %v6253_v2  ;;  %v4073_v2 = vshrl.u32 %v4072_v31, 23  ;;  %v6176_v33 = vadd.s32 4294967169, %v3764_v10  ;;  %v3768_v21 = vor.u32 8388608, %v3767_v8  ;;  %v7851_v8 = vand.u32 8388607, %v8766_v17 }
 0x2ea   :  { %v6182_v25 = vadd.s32 4294967169, %v4073_v2  ;;  %v3770_v12 = vadd.s32 1, %v6176_v33  ;;  %v7827_v10 = vshll.u32 %v3768_v21, 8 }
 0x2ec   :  { %v4079_v23 = vadd.s32 1, %v6182_v25  ;;  %vm3771_vm13 = vcmp.gt.s32.totalorder %v3770_v12, 0 }
 0x2ed   :  { %v3772_v55 = vsel %vm3771_vm13, %v3770_v12, 0 }
 0x2ee   :  { %vm4080_vm14 = vcmp.gt.s32.totalorder %v4079_v23, 0  ;;  %v3774_v59 = vand.u32 31, %v3772_v55  ;;  %v7803_v14 = vshrl.u32 %v3772_v55, 5  ;;  %v3809_v55 = vand.u32 65535, %v7827_v10 }
 0x2ef   :  { %v4081_v29 = vsel %vm4080_vm14, %v4079_v23, 0 }
 0x2f0   :  { %v7789_v5 = vand.u32 31, %v4081_v29  ;;  %v7791_v11 = vsub.s32 32, %v3774_v59  ;;  %v3786_v15 = vshll.u32 %v8780_v41, %v3774_v59  ;;  %v3777_v36 = vshll.u32 %v8803_v58, %v3774_v59 }
 0x2f1   :  { %v3780_v57 = vshll.u32 %v8799_v49, %v3774_v59  ;;  %v3783_v19 = vshll.u32 %v8800_v44, %v3774_v59  ;;  %v3789_v16 = vshll.u32 %v8798_v50, %v3774_v59  ;;  %vm3792_vm15 = vcmp.lt.s32.totalorder %v7803_v14, 1 }
 0x2f2   :  { %v3787_v13 = vshrl.u32 %v8798_v50, %v7791_v11  ;;  %v7799_v9 = vsub.s32 32, %v7789_v5  ;;  %v3778_v4 = vshrl.u32 %v8799_v49, %v7791_v11  ;;  %v3781_v27 = vshrl.u32 %v8800_v44, %v7791_v11 }
 0x2f3   :  { %v3784_v28 = vshrl.u32 %v8780_v41, %v7791_v11  ;;  %v3790_v31 = vshrl.u32 %v8770_v52, %v7791_v11  ;;  %vm3793_vm1 = vcmp.lt.s32.totalorder %v7803_v14, 2  ;;  %vm3794_vm2 = vcmp.lt.s32.totalorder %v7803_v14, 3 }
 0x2f4   :  { %v7814_v63 = vor.u32 %v3778_v4, %v3777_v36  ;;  %v3788_v32 = vor.u32 %v3787_v13, %v3786_v15  ;;  %v7817_v40 = vor.u32 %v3781_v27, %v3780_v57  ;;  %vm3795_vm3 = vcmp.lt.s32.totalorder %v7803_v14, 4 }
 0x2f5   :  { %v7819_v53 = vor.u32 %v3784_v28, %v3783_v19  ;;  %v3791_v2 = vor.u32 %v3790_v31, %v3789_v16  ;;  %v4095_v59 = vshll.u32 %v8780_v41, %v7789_v5  ;;  %v4096_v36 = vshrl.u32 %v8798_v50, %v7799_v9 }
 0x2f6   :  { %v3800_v33 = vsel %vm3792_vm15, %v7814_v63, %v7817_v40  ;;  %v3801_v25 = vsel %vm3795_vm3, %v3788_v32, 920167782  ;;  %v3810_v57 = vshrl.u32 %v7827_v10, 16  ;;  %v4086_v21 = vshll.u32 %v8803_v58, %v7789_v5 }
 0x2f7   :  { %v3802_v12 = vsel %vm3794_vm2, %v7819_v53, %v3801_v25  ;;  %v3804_v23 = vsel %vm3792_vm15, %v7817_v40, %v7819_v53  ;;  %v3805_v13 = vsel %vm3795_vm3, %v3791_v2, 1326507024  ;;  %v4087_v16 = vshrl.u32 %v8799_v49, %v7799_v9 }
 0x2f8   :  { %v3803_v15 = vsel %vm3793_vm1, %v3800_v33, %v3802_v12  ;;  %v3806_v4 = vsel %vm3794_vm2, %v3788_v32, %v3805_v13  ;;  %v4089_v31 = vshll.u32 %v8799_v49, %v7789_v5  ;;  %v4093_v13 = vshrl.u32 %v8780_v41, %v7799_v9 }
 0x2f9   :  { %v3833_v27 = vand.u32 65535, %v3803_v15  ;;  %v3834_v19 = vshrl.u32 %v3803_v15, 16  ;;  %v3807_v28 = vsel %vm3793_vm1, %v3804_v23, %v3806_v4  ;;  %v4090_v15 = vshrl.u32 %v8800_v44, %v7799_v9 }
 0x2fa   :  { %v3811_v2 = vand.u32 65535, %v3807_v28  ;;  %v3812_v33 = vshrl.u32 %v3807_v28, 16  ;;  %v4092_v23 = vshll.u32 %v8800_v44, %v7789_v5  ;;  %v7872_v17 = vshrl.u32 %v4081_v29, 5 }
 0x2fb   :  { %v3835_v25 = vmul.u32 %v3833_v27, %v3809_v55  ;;  %v3836_v32 = vmul.u32 %v3834_v19, %v3809_v55  ;;  %v3837_v12 = vmul.u32 %v3833_v27, %v3810_v57  ;;  %v3838_v34 = vmul.u32 %v3834_v19, %v3810_v57 }
 0x2fc   :  { %v3813_v4 = vmul.u32 %v3811_v2, %v3809_v55  ;;  %v3814_v51 = vmul.u32 %v3812_v33, %v3809_v55  ;;  %v3815_v42 = vmul.u32 %v3811_v2, %v3810_v57  ;;  %v7874_v60 = vor.u32 %v4087_v16, %v4086_v21 }
 0x2fd   :  { %v3839_v3 = vshll.u32 %v3836_v32, 16  ;;  %v3841_v28 = vshll.u32 %v3837_v12, 16  ;;  %v3816_v27 = vmul.u32 %v3812_v33, %v3810_v57  ;;  %v7876_v39 = vor.u32 %v4090_v15, %v4089_v31 }
 0x2fe   :  { %v3817_v52 = vshll.u32 %v3814_v51, 16  ;;  %v3819_v62 = vshll.u32 %v3815_v42, 16  ;;  %v7878_v1 = vor.u32 %v4093_v13, %v4092_v23  ;;  %v4098_v55 = vshll.u32 %v8798_v50, %v7789_v5 }
 0x2ff   :  { %vm3843_vm4 = vc.u32 %v3835_v25, %v3839_v3  ;;  %v3845_v26 = vadd.s32 %v3839_v3, %v3835_v25  ;;  %v8816_v2 = vmov 0   ;;  %v8817_v41 = vmov 1326507024  }
 0x300   :  { %vm3821_vm5 = vc.u32 %v3813_v4, %v3817_v52  ;;  %v3823_v29 = vadd.s32 %v3817_v52, %v3813_v4  ;;  %v3844_v19 = vsel %vm3843_vm4, 1, %v8816_v2  ;;  %v4099_v21 = vshrl.u32 %v8817_v41, %v7799_v9 }
 0x301   :  { %v3822_v57 = vsel %vm3821_vm5, 1, %v8816_v2  ;;  %v3840_v16 = vshrl.u32 %v3836_v32, 16  ;;  %v3846_v33 = vadd.s32 %v3844_v19, %v3838_v34  ;;  %vm3847_vm6 = vc.u32 %v3845_v26, %v3841_v28 }
 0x302   :  { %v3818_v31 = vshrl.u32 %v3814_v51, 16  ;;  %v3824_v15 = vadd.s32 %v3822_v57, %v3816_v27  ;;  %vm3825_vm8 = vc.u32 %v3823_v29, %v3819_v62  ;;  %v3848_v3 = vsel %vm3847_vm6, 1, %v8816_v2 }
 0x303   :  { %v3776_v5 = vshrl.u32 %v8803_v58, %v7791_v11  ;;  %v3826_v52 = vsel %vm3825_vm8, 1, %v8816_v2  ;;  %v3842_v25 = vshrl.u32 %v3837_v12, 16  ;;  %v3850_v23 = vadd.s32 %v3848_v3, %v3846_v33 }
 0x304   :  { %v3797_v13 = vsel %vm3795_vm3, %v7819_v53, 2102212464  ;;  %v3820_v4 = vshrl.u32 %v3815_v42, 16  ;;  %v3828_v32 = vadd.s32 %v3826_v52, %v3824_v15  ;;  %v4097_v34 = vor.u32 %v4096_v36, %v4095_v59 }
 0x305   :  { %v3796_v62 = vsel %vm3792_vm15, %v3776_v5, %v7814_v63  ;;  %v3798_v51 = vsel %vm3794_vm2, %v7817_v40, %v3797_v13  ;;  %v3851_v11 = vadd.s32 %v3850_v23, %v3840_v16  ;;  %v4100_v27 = vor.u32 %v4099_v21, %v4098_v55 }
 0x306   :  { %v3799_v12 = vsel %vm3793_vm1, %v3796_v62, %v3798_v51  ;;  %v3829_v29 = vadd.s32 %v3828_v32, %v3818_v31  ;;  %v7901_v19 = vadd.s32 %v3845_v26, %v3841_v28  ;;  %vm4101_vm9 = vcmp.lt.s32.totalorder %v7872_v17, 1 }
 0x307   :  { %v3852_v42 = vadd.s32 %v3851_v11, %v3842_v25  ;;  %v4077_v53 = vor.u32 8388608, %v7851_v8  ;;  %vm4103_vm10 = vcmp.lt.s32.totalorder %v7872_v17, 3  ;;  %vm4104_vm11 = vcmp.lt.s32.totalorder %v7872_v17, 4 }
 0x308   :  { %v7907_v63 = vadd.s32 %v3829_v29, %v3820_v4  ;;  %v3853_v40 = vmul.u32 %v7827_v10, %v3799_v12  ;;  %vm4102_vm12 = vcmp.lt.s32.totalorder %v7872_v17, 2  ;;  %v4109_v26 = vsel %vm4101_vm9, %v7874_v60, %v7876_v39 }
 0x309   :  { %v3856_v14 = vadd.s32 1, %v3852_v42  ;;  %v4110_v59 = vsel %vm4104_vm11, %v4097_v34, 920167782  ;;  %v4113_v8 = vsel %vm4101_vm9, %v7876_v39, %v7878_v1  ;;  %v4114_v36 = vsel %vm4104_vm11, %v4100_v27, 1326507024 }
 0x30a   :  { %vm3855_vm13 = vc.u32 %v7907_v63, %v7901_v19  ;;  %v4111_v10 = vsel %vm4103_vm10, %v7878_v1, %v4110_v59  ;;  %v4115_v21 = vsel %vm4103_vm10, %v4097_v34, %v4114_v36  ;;  %v7932_v57 = vshll.u32 %v4077_v53, 8 }
 0x30b   :  { %v3857_v28 = vsel %vm3855_vm13, %v3856_v14, %v3852_v42  ;;  %v4112_v55 = vsel %vm4102_vm12, %v4109_v26, %v4111_v10  ;;  %v4116_v33 = vsel %vm4102_vm12, %v4113_v8, %v4115_v21  ;;  %v4085_v53 = vshrl.u32 %v8803_v58, %v7799_v9 }
 0x30c   :  { %v3858_v16 = vadd.s32 %v3857_v28, %v3853_v40  ;;  %v4142_v31 = vand.u32 65535, %v4112_v55  ;;  %v4143_v15 = vshrl.u32 %v4112_v55, 16  ;;  %v4118_v3 = vand.u32 65535, %v7932_v57 }
 0x30d   :  { %v4119_v5 = vshrl.u32 %v7932_v57, 16  ;;  %v4120_v52 = vand.u32 65535, %v4116_v33  ;;  %v4121_v25 = vshrl.u32 %v4116_v33, 16  ;;  %v4106_v14 = vsel %vm4104_vm11, %v7878_v1, 2102212464 }
 0x30e   :  { %v3859_v23 = vadd.s32 536870912, %v3858_v16  ;;  %v4144_v34 = vmul.u32 %v4142_v31, %v4118_v3  ;;  %v4145_v51 = vmul.u32 %v4143_v15, %v4118_v3  ;;  %vm3762_vm6 = vcmp.lt.s32.totalorder %v7783_v46, 0 }
 0x30f   :  { %v4122_v13 = vmul.u32 %v4120_v52, %v4118_v3  ;;  %v4123_v4 = vmul.u32 %v4121_v25, %v4118_v3  ;;  %v4124_v32 = vmul.u32 %v4120_v52, %v4119_v5  ;;  %v4146_v11 = vmul.u32 %v4142_v31, %v4119_v5 }
 0x310   :  { %v7938_v62 = vshrl.u32 %v3859_v23, 30  ;;  %v4125_v27 = vmul.u32 %v4121_v25, %v4119_v5  ;;  %v4147_v40 = vmul.u32 %v4143_v15, %v4119_v5  ;;  %v4148_v26 = vshll.u32 %v4145_v51, 16 }
 0x311   :  { %v4126_v12 = vshll.u32 %v4123_v4, 16  ;;  %v4128_v29 = vshll.u32 %v4124_v32, 16  ;;  %v4150_v8 = vshll.u32 %v4146_v11, 16  ;;  %v4127_v55 = vshrl.u32 %v4123_v4, 16 }
 0x312   :  { %v3861_v42 = vshll.u32 %v7938_v62, 30  ;;  %vm4152_vm15 = vc.u32 %v4144_v34, %v4148_v26  ;;  %v4154_v28 = vadd.s32 %v4148_v26, %v4144_v34  ;;  %v4129_v3 = vshrl.u32 %v4124_v32, 16 }
 0x313   :  { %vm4130_vm14 = vc.u32 %v4122_v13, %v4126_v12  ;;  %v4132_v59 = vadd.s32 %v4126_v12, %v4122_v13  ;;  %v4153_v33 = vsel %vm4152_vm15, 1, %v8816_v2  ;;  %v4149_v5 = vshrl.u32 %v4145_v51, 16 }
 0x314   :  { %v3862_v10 = vsub.s32 %v3858_v16, %v3861_v42  ;;  %v4131_v36 = vsel %vm4130_vm14, 1, %v8816_v2  ;;  %v4155_v15 = vadd.s32 %v4153_v33, %v4147_v40  ;;  %vm4156_vm3 = vc.u32 %v4154_v28, %v4150_v8 }
 0x315   :  { %v4133_v21 = vadd.s32 %v4131_v36, %v4125_v27  ;;  %vm4134_vm1 = vc.u32 %v4132_v59, %v4128_v29  ;;  %v4105_v16 = vsel %vm4101_vm9, %v4085_v53, %v7874_v60  ;;  %v4107_v25 = vsel %vm4103_vm10, %v7876_v39, %v4106_v14 }
 0x316   :  { %vm3863_vm2 = vcmp.lt.s32.totalorder %v3862_v10, 0  ;;  %v3864_v9 = vsub.s32 0, %v3862_v10  ;;  %v4135_v31 = vsel %vm4134_vm1, 1, %v8816_v2  ;;  %v4157_v23 = vsel %vm4156_vm3, 1, %v8816_v2 }
 0x317   :  { %v4137_v1 = vadd.s32 %v4135_v31, %v4133_v21  ;;  %v4151_v34 = vshrl.u32 %v4146_v11, 16  ;;  %v4159_v27 = vadd.s32 %v4157_v23, %v4155_v15  ;;  %v4158_v12 = vadd.s32 %v4154_v28, %v4150_v8 }
 0x318   :  { %v3865_v52 = vsel %vm3863_vm2, %v3864_v9, %v3862_v10  ;;  %v4108_v51 = vsel %vm4102_vm12, %v4105_v16, %v4107_v25  ;;  %v3854_v60 = vadd.s32 %v7901_v19, %v7907_v63  ;;  %v3350_v33 = vadd.s32 3, %v7718_v6 }
 0x319   :  { %v3866_v13 = vclz %v3865_v52  ;;  %v4138_v4 = vadd.s32 %v4137_v1, %v4127_v55  ;;  %v4160_v42 = vadd.s32 %v4159_v27, %v4149_v5  ;;  %v4162_v39 = vmul.u32 %v7932_v57, %v4108_v51 }
 0x31a   :  { %v3351_v57 = vand.u32 3, %v3350_v33  ;;  %v8818_v5 = vand.u32 2147483647, %v7783_v46  ;;  %v8822_v27 = vxor.u32 2147483648, %v7726_v56 }
 0x31b   :  { %v6177_v32 = vadd.s32 4294967294, %v3866_v13  ;;  %v4139_v29 = vadd.s32 %v4138_v4, %v4129_v3  ;;  %v4161_v40 = vadd.s32 %v4160_v42, %v4151_v34  ;;  %v8821_v4 = vxor.u32 2147483648, %v7728_v54 }
 0x31c   :  { %vm7968_vm8 = vcmp.le.f32.partialorder %v8818_v5, 0.7853982  ;;  %vm3353_vm9 = vcmp.eq.s32.totalorder %v3351_v57, 0  ;;  %vm3356_vm10 = vcmp.eq.s32.totalorder %v3351_v57, 2  ;;  %vm3352_vm12 = vcmp.lt.s32.totalorder %v3351_v57, 2 }
 0x31d   :  { %vm6178_vm4 = vcmp.lt.s32.totalorder %v6177_v32, 0  ;;  %vm4164_vm5 = vc.u32 %v4139_v29, %v4158_v12  ;;  %v4165_v11 = vadd.s32 1, %v4161_v40  ;;  %v3355_v34 = vsel %vm3353_vm9, %v7726_v56, %v8821_v4 }
 0x31e   :  { %v3869_v53 = vsel %vm6178_vm4, 0, %v6177_v32  ;;  %v3358_v32 = vsel %vm3356_vm10, %v8822_v27, %v7728_v54 }
 0x31f   :  { %v3870_v26 = vsub.s32 32, %v3869_v53  ;;  %v3874_v14 = vsub.s32 4294967266, %v3869_v53  ;;  %v3871_v59 = vshll.u32 %v3862_v10, %v3869_v53  ;;  %v4166_v28 = vsel %vm4164_vm5, %v4165_v11, %v4161_v40 }
 0x320   :  { %v4167_v17 = vadd.s32 %v4166_v28, %v4162_v39  ;;  %v4163_v53 = vadd.s32 %v4158_v12, %v4139_v29  ;;  %vm3903_vm5 = vweird.f32 %v7783_v46 }
 0x321   :  { %v3872_v8 = vshrl.u32 %v3854_v60, %v3870_v26  ;;  %v3875_v36 = vadd.s32 127, %v3874_v14  ;;  %v3359_v60 = vsel %vm3352_vm12, %v3355_v34, %v3358_v32 }
 0x322   :  { %v4168_v9 = vadd.s32 536870912, %v4167_v17  ;;  %v3360_v14 = vsel %vm3195_vm7, nan, %v3359_v60  ;;  %vm4071_vm7 = vcmp.lt.s32.totalorder %v7785_v48, 0 }
 0x323   :  { %v3873_v55 = vor.u32 %v3872_v8, %v3871_v59  ;;  %v3876_v21 = vshll.u32 %v3875_v36, 23  ;;  %v3722_v54 = vmul.f32 %v7749_v61, %v3360_v14 }
 0x324   :  { %v7962_v19 = vshrl.u32 %v4168_v9, 30 }
 0x325   :  { %v3877_v31 = vor.u32 4788187, %v3876_v21  ;;  %v3880_v15 = vcvt.s32.f32 %v3873_v55  ;;  %v3723_v12 = vperm.slane %v3722_v54, 0 }
 0x326   :  { %v4170_v3 = vshll.u32 %v7962_v19, 30 }
 0x327   :  { %v3878_v63 = vand.u32 2147483647, %v3877_v31  ;;  %v3725_v57 = vmul.f32 %v3723_v12, %v6716_v20  ;;  %v8823_v20 = vand.u32 2147483647, %v7785_v48 }
 0x328   :  { %v4171_v10 = vsub.s32 %v4167_v17, %v4170_v3 }
 0x329   :  { %v3881_v1 = vmul.f32 %v3880_v15, %v3878_v63  ;;  %v3717_v15 = vmul.f32 %v7751_v47, %v3360_v14  ;;  %vm7998_vm14 = vcmp.le.f32.partialorder %v8823_v20, 0.7853982  ;;  %v8826_v14 = vsub.f32 %v7761_v30, %v7767_v43 }
 0x32a   :  { %vm4172_vm11 = vcmp.lt.s32.totalorder %v4171_v10, 0  ;;  %v4173_v16 = vsub.s32 0, %v4171_v10 }
 0x32b   :  { %v3882_v6 = vxor.u32 2147483648, %v3881_v1 }
 0x32c   :  { %v4174_v13 = vsel %vm4172_vm11, %v4173_v16, %v4171_v10  ;;  %v3884_v16 = vsub.s32 4, %v7938_v62  ;;  %vm4212_vm11 = vweird.f32 %v7785_v48 }
 0x32d   :  { %v3883_v25 = vsel %vm3762_vm6, %v3882_v6, %v3881_v1  ;;  %v4175_v51 = vclz %v4174_v13  ;;  %v3737_v6 = vperm.slane %v3717_v15, 0  ;;  %v4193_v13 = vsub.s32 4, %v7962_v19  ;;  %v6254_v15 = vld [vmem:[%s8751_s4 + $0x10] sm:$0xff] }
 0x32e   :  { %v7977_v23 = vsel %vm7968_vm8, %v7783_v46, %v3883_v25 }
 0x32f   :  { %v3888_v42 = vmul.f32 %v7977_v23, %v7977_v23  ;;  %v6183_v40 = vadd.s32 4294967294, %v4175_v51 }
 0x331   :  { %vm6184_vm13 = vcmp.lt.s32.totalorder %v6183_v40, 0  ;;  %v3896_v39 = vmul.f32 -0.00019511016, %v3888_v42  ;;  %v3889_v59 = vmul.f32 -0.001358992, %v3888_v42 }
 0x332   :  { %v4178_v26 = vsel %vm6184_vm13, 0, %v6183_v40 }
 0x333   :  { %v4179_v11 = vsub.s32 32, %v4178_v26  ;;  %v4183_v8 = vsub.s32 4294967266, %v4178_v26  ;;  %v4180_v28 = vshll.u32 %v4171_v10, %v4178_v26  ;;  %v3897_v17 = vadd.f32 0.008332121, %v3896_v39 }
 0x334   :  { %v3890_v21 = vadd.f32 0.041655596, %v3889_v59  ;;  %v3724_v10 = vmul.f32 %v3723_v12, %v6718_v45  ;;  %v4194_v26 = vsel %vm4071_vm7, %v4193_v13, %v7962_v19 }
 0x335   :  { %v4181_v56 = vshrl.u32 %v4163_v53, %v4179_v11  ;;  %v4184_v55 = vadd.s32 127, %v4183_v8  ;;  %v3898_v29 = vmul.f32 %v3897_v17, %v3888_v42  ;;  %v3885_v53 = vsel %vm3762_vm6, %v3884_v16, %v7938_v62 }
 0x336   :  { %v3891_v63 = vmul.f32 %v3890_v21, %v3888_v42 }
 0x337   :  { %v4185_v33 = vshll.u32 %v4184_v55, 23  ;;  %v4182_v9 = vor.u32 %v4181_v56, %v4180_v28  ;;  %v3899_v61 = vadd.f32 -0.16666654, %v3898_v29  ;;  %v8827_v56 = vsub.f32 %v7757_v35, %v7764_v22 }
 0x338   :  { %v3892_v25 = vadd.f32 -0.4999988, %v3891_v63  ;;  %v4196_v35 = vsel %vm7998_vm14, 0, %v4194_v26 }
 0x339   :  { %v4186_v31 = vor.u32 4788187, %v4185_v33  ;;  %v4189_v1 = vcvt.s32.f32 %v4182_v9  ;;  %v3900_v47 = vmul.f32 %v3899_v61, %v3888_v42  ;;  %v8021_v33 = vsel %vm7968_vm8, 0, %v3885_v53 }
 0x33a   :  { %v3893_v39 = vmul.f32 %v3892_v25, %v3888_v42  ;;  %v4367_v63 = vadd.s32 3, %v4196_v35  ;;  %v4213_v61 = vand.u32 3, %v4196_v35 }
 0x33b   :  { %v4187_v3 = vand.u32 2147483647, %v4186_v31  ;;  %v3901_v55 = vadd.f32 1.0, %v3900_v47  ;;  %v6255_v47 = vld [vmem:[%s8751_s4 + $0x18] sm:$0xff] }
 0x33c   :  { %v8030_v29 = vadd.f32 1.0, %v3893_v39  ;;  %vm4218_vm3 = vcmp.eq.s32.totalorder %v4213_v61, 2  ;;  %vm4214_vm6 = vcmp.lt.s32.totalorder %v4213_v61, 2  ;;  %vm4215_vm8 = vcmp.eq.s32.totalorder %v4213_v61, 0 }
 0x33d   :  { %v4190_v34 = vmul.f32 %v4189_v1, %v4187_v3  ;;  %v8035_v52 = vmul.f32 %v3901_v55, %v7977_v23 }
 0x33e   :  { %v8783_v23 = vxor.u32 2147483648, %v8030_v29 }
 0x33f   :  { %v4191_v45 = vxor.u32 2147483648, %v4190_v34  ;;  %v8784_v1 = vxor.u32 2147483648, %v8035_v52 }
 0x341   :  { %v4192_v28 = vsel %vm4071_vm7, %v4191_v45, %v4190_v34 }
 0x342   :  { %v4195_v62 = vsel %vm7998_vm14, %v7785_v48, %v4192_v28 }
 0x343   :  { %v4197_v43 = vmul.f32 %v4195_v62, %v4195_v62 }
 0x345   :  { %v4205_v12 = vmul.f32 -0.00019511016, %v4197_v43 }
 0x347   :  { %v4206_v31 = vadd.f32 0.008332121, %v4205_v12 }
 0x349   :  { %v4207_v3 = vmul.f32 %v4206_v31, %v4197_v43 }
 0x356   :  { %v3687_v36 = vpop.f32.mrf.mxu0 }
 0x357   :  { %v3733_v27 = vmul.f32 %v3724_v10, %v3687_v36  ;;  %v3752_v21 = vmul.f32 %v3737_v6, %v3687_v36 }
 0x359   :  { %v3735_v54 = vadd.f32 %v3733_v27, %v8827_v56 }
 0x35d   :  { %v3710_v37 = vpop.f32.mrf.mxu1 }
 0x35e   :  { %v3690_v5 = vpop.f32.mrf.mxu0  ;;  %v3748_v32 = vmul.f32 %v3724_v10, %v3710_v37  ;;  %v3738_v40 = vmul.f32 %v3737_v6, %v3710_v37  ;;  %v3904_v37 = vand.u32 3, %v8021_v33 }
 0x35f   :  { %v3734_v4 = vmul.f32 %v3725_v57, %v3690_v5  ;;  %v3753_v17 = vmul.f32 %v3737_v6, %v3690_v5  ;;  %v4208_v5 = vadd.f32 -0.16666654, %v4207_v3 }
 0x360   :  { %v3750_v42 = vadd.f32 %v3748_v32, %v7771_v24  ;;  %v8025_v22 = vsub.f32 %v3735_v54, %v3738_v40  ;;  %v4198_v24 = vmul.f32 -0.001358992, %v4197_v43  ;;  %vm3906_vm15 = vcmp.eq.s32.totalorder %v3904_v37, 0 }
 0x361   :  { %v3736_v11 = vadd.f32 %v3734_v4, %v8826_v14  ;;  %vm3909_vm1 = vcmp.eq.s32.totalorder %v3904_v37, 2  ;;  %v4209_v25 = vmul.f32 %v4208_v5, %v4197_v43  ;;  %vm3905_vm2 = vcmp.lt.s32.totalorder %v3904_v37, 2 }
 0x362   :  { %v4199_v36 = vadd.f32 0.041655596, %v4198_v24  ;;  %v3908_v13 = vsel %vm3906_vm15, %v8030_v29, %v8784_v1  ;;  %v3911_v4 = vsel %vm3909_vm1, %v8783_v23, %v8035_v52 }
 0x363   :  { %v4210_v27 = vadd.f32 1.0, %v4209_v25  ;;  %v3912_v51 = vsel %vm3905_vm2, %v3908_v13, %v3911_v4 }
 0x364   :  { %v3913_v53 = vsel %vm3903_vm5, nan, %v3912_v51 }
 0x365   :  { %v3713_v60 = vpop.f32.mrf.mxu1  ;;  %v4211_v32 = vmul.f32 %v4210_v27, %v4195_v62 }
 0x366   :  { %v3739_v59 = vmul.f32 %v3737_v6, %v3713_v60  ;;  %v3749_v8 = vmul.f32 %v3725_v57, %v3713_v60  ;;  %v4200_v57 = vmul.f32 %v4199_v36, %v4197_v43  ;;  %v4368_v6 = vand.u32 3, %v4367_v63 }
 0x367   :  { %v4216_v45 = vxor.u32 2147483648, %v4211_v32 }
 0x368   :  { %v8016_v19 = vsub.f32 %v3736_v11, %v3739_v59  ;;  %v3751_v30 = vadd.f32 %v3749_v8, %v7775_v0  ;;  %v3754_v0 = vadd.f32 %v3752_v21, %v3750_v42  ;;  %v4201_v10 = vadd.f32 -0.4999988, %v4200_v57 }
 0x369   :  { %vm4373_vm4 = vcmp.eq.s32.totalorder %v4368_v6, 2  ;;  %vm4370_vm9 = vcmp.eq.s32.totalorder %v4368_v6, 0  ;;  %vm4369_vm10 = vcmp.lt.s32.totalorder %v4368_v6, 2 }
 0x36a   :  { %v8027_v9 = vadd.f32 %v3753_v17, %v3751_v30  ;;  %4392 = vmatpush.msrb.mxu2 %v8016_v19  ;;  %v4202_v16 = vmul.f32 %v4201_v10, %v4197_v43 }
 0x36c   :  { %4393 = vmatpush.msrb.mxu2 %v8025_v22  ;;  %4415 = vmatpush.msrb.mxu3 %v8027_v9  ;;  %v4203_v34 = vadd.f32 1.0, %v4202_v16 }
 0x36d   :  { %6188 = vmatmul.msk.f32.vlgmr.msrb.gmra.mxu2 %vm693_vm0, %v6254_v15 }
 0x36e   :  { %4416 = vmatpush.msrb.mxu3 %v3754_v0  ;;  %v4219_v20 = vxor.u32 2147483648, %v4203_v34  ;;  %v4217_v39 = vsel %vm4215_vm8, %v4203_v34, %v4216_v45  ;;  %v4372_v26 = vsel %vm4370_vm9, %v4203_v34, %v4216_v45 }
 0x36f   :  { %6190 = vmatmul.msk.f32.vlgmr.msrb.gmra.mxu3 %vm693_vm0, %v6254_v15 }
 0x370   :  { %v4220_v40 = vsel %vm4218_vm3, %v4219_v20, %v4211_v32  ;;  %v4375_v60 = vsel %vm4373_vm4, %v4219_v20, %v4211_v32  ;;  %v8828_v32 = vmov 2102212464  }
 0x371   :  { %v4221_v14 = vsel %vm4214_vm6, %v4217_v39, %v4220_v40  ;;  %v4376_v11 = vsel %vm4369_vm10, %v4372_v26, %v4375_v60 }
 0x372   :  { %v8060_v59 = vsel %vm4212_vm11, nan, %v4221_v14  ;;  %v8062_v8 = vsel %vm4212_vm11, nan, %v4376_v11 }
 0x373   :  { %v4424_v28 = vmul.f32 %v8060_v59, %v3913_v53  ;;  %v4426_v56 = vmul.f32 %v8062_v8, %v3913_v53 }
 0x375   :  { %6189 = vmatmul.msk.f32.gmra.mxu2 %vm693_vm0, %v6255_v47  ;;  %v4427_v54 = vperm.slane %v4426_v56, 0  ;;  %v4434_v17 = vperm.slane %v4424_v28, 0 }
 0x377   :  { %6191 = vmatmul.msk.f32.gmra.mxu3 %vm693_vm0, %v6255_v47  ;;  %v4428_v55 = vmul.f32 %v4427_v54, %v6898_v18  ;;  %v4450_v48 = vmul.f32 %v4434_v17, %v3754_v0  ;;  %v4429_v62 = vmul.f32 %v4427_v54, %v6901_v38  ;;  %v8069_v42 = vmul.f32 %v4434_v17, %v8025_v22 }
 0x378   :  { %v8072_v30 = vmul.f32 %v4434_v17, %v8016_v19  ;;  %v4451_v43 = vmul.f32 %v4434_v17, %v8027_v9 }
 0x379   :  { %v8075_v21 = vmul.f32 %v4428_v55, %v3754_v0  ;;  %v4452_v35 = vmul.f32 %v4428_v55, %v8025_v22  ;;  %v8079_v24 = vmul.f32 %v4429_v62, %v8027_v9  ;;  %v4453_v12 = vmul.f32 %v4429_v62, %v8016_v19  ;;  %v4464_v0 = vld [vmem:[%s8749_s0 + $0xa] sm:$0x1]  ;;  %v4466_v22 = vld [vmem:[%s8749_s0 + $0xe] sm:$0x1] }
 0x37a   :  { %v8096_v9 = vmul.f32 0.5, %v4464_v0  ;;  %v8098_v19 = vmul.f32 0.5, %v4466_v22 }
 0x37b   :  { %v8084_v31 = vadd.f32 %v4452_v35, %v4450_v48  ;;  %v8088_v37 = vadd.f32 %v4453_v12, %v4451_v43 }
 0x37c   :  { %v4471_v63 = vand.u32 2139095040, %v8096_v9  ;;  %v4780_v57 = vand.u32 2139095040, %v8098_v19  ;;  %v8785_v47 = vand.u32 2147483647, %v8096_v9  ;;  %v8782_v45 = vand.u32 2147483647, %v8098_v19 }
 0x37e   :  { %v4472_v3 = vshrl.u32 %v4471_v63, 23  ;;  %v4781_v10 = vshrl.u32 %v4780_v57, 23  ;;  %v4475_v60 = vand.u32 8388607, %v8785_v47 }
 0x380   :  { %v6192_v5 = vadd.s32 4294967169, %v4472_v3  ;;  %v6198_v61 = vadd.s32 4294967169, %v4781_v10  ;;  %v4476_v54 = vor.u32 8388608, %v4475_v60 }
 0x382   :  { %v4478_v6 = vadd.s32 1, %v6192_v5  ;;  %v4787_v16 = vadd.s32 1, %v6198_v61  ;;  %v8140_v12 = vshll.u32 %v4476_v54, 8 }
 0x384   :  { %vm4479_vm12 = vcmp.gt.s32.totalorder %v4478_v6, 0  ;;  %vm4788_vm13 = vcmp.gt.s32.totalorder %v4787_v16, 0  ;;  %v4517_v10 = vand.u32 65535, %v8140_v12 }
 0x385   :  { %v4480_v25 = vsel %vm4479_vm12, %v4478_v6, 0  ;;  %v4789_v13 = vsel %vm4788_vm13, %v4787_v16, 0  ;;  %v8164_v16 = vand.u32 8388607, %v8782_v45 }
 0x386   :  { %v4482_v4 = vand.u32 31, %v4480_v25  ;;  %v8102_v34 = vand.u32 31, %v4789_v13  ;;  %v8116_v53 = vshrl.u32 %v4480_v25, 5 }
 0x388   :  { %v8104_v27 = vsub.s32 32, %v4482_v4  ;;  %v4494_v20 = vshll.u32 %v8828_v32, %v4482_v4  ;;  %v8112_v40 = vsub.s32 32, %v8102_v34  ;;  %v4485_v39 = vshll.u32 %v8803_v58, %v4482_v4 }
 0x389   :  { %v4488_v14 = vshll.u32 %v8799_v49, %v4482_v4  ;;  %v4491_v28 = vshll.u32 %v8800_v44, %v4482_v4  ;;  %v4497_v48 = vshll.u32 %v8798_v50, %v4482_v4  ;;  %vm4500_vm7 = vcmp.lt.s32.totalorder %v8116_v53, 1 }
 0x38a   :  { %v4495_v51 = vshrl.u32 %v8798_v50, %v8104_v27  ;;  %v4486_v26 = vshrl.u32 %v8799_v49, %v8104_v27  ;;  %v4489_v11 = vshrl.u32 %v8800_v44, %v8104_v27  ;;  %v4492_v56 = vshrl.u32 %v8828_v32, %v8104_v27 }
 0x38b   :  { %v4498_v35 = vshrl.u32 %v8817_v41, %v8104_v27  ;;  %vm4501_vm14 = vcmp.lt.s32.totalorder %v8116_v53, 2  ;;  %vm4502_vm15 = vcmp.lt.s32.totalorder %v8116_v53, 3  ;;  %vm4503_vm1 = vcmp.lt.s32.totalorder %v8116_v53, 4 }
 0x38c   :  { %v8127_v17 = vor.u32 %v4486_v26, %v4485_v39  ;;  %v4496_v55 = vor.u32 %v4495_v51, %v4494_v20  ;;  %v8130_v62 = vor.u32 %v4489_v11, %v4488_v14  ;;  %v8132_v43 = vor.u32 %v4492_v56, %v4491_v28 }
 0x38d   :  { %v4499_v0 = vor.u32 %v4498_v35, %v4497_v48  ;;  %v4803_v5 = vshll.u32 %v8828_v32, %v8102_v34  ;;  %v4804_v25 = vshrl.u32 %v8798_v50, %v8112_v40  ;;  %v4518_v20 = vshrl.u32 %v8140_v12, 16 }
 0x38e   :  { %v4508_v22 = vsel %vm4500_vm7, %v8127_v17, %v8130_v62  ;;  %v4509_v63 = vsel %vm4503_vm1, %v4496_v55, 920167782  ;;  %v4512_v3 = vsel %vm4500_vm7, %v8130_v62, %v8132_v43  ;;  %v4794_v26 = vshll.u32 %v8803_v58, %v8102_v34 }
 0x38f   :  { %v4510_v57 = vsel %vm4502_vm15, %v8132_v43, %v4509_v63  ;;  %v4513_v6 = vsel %vm4503_vm1, %v4499_v0, 1326507024  ;;  %v4795_v14 = vshrl.u32 %v8799_v49, %v8112_v40  ;;  %v4797_v11 = vshll.u32 %v8799_v49, %v8102_v34 }
 0x390   :  { %v4511_v61 = vsel %vm4501_vm14, %v4508_v22, %v4510_v57  ;;  %v4514_v4 = vsel %vm4502_vm15, %v4496_v55, %v4513_v6  ;;  %v4798_v35 = vshrl.u32 %v8800_v44, %v8112_v40  ;;  %v4800_v0 = vshll.u32 %v8800_v44, %v8102_v34 }
 0x391   :  { %v4541_v51 = vand.u32 65535, %v4511_v61  ;;  %v4542_v60 = vshrl.u32 %v4511_v61, 16  ;;  %v4515_v39 = vsel %vm4501_vm14, %v4512_v3, %v4514_v4  ;;  %v4801_v22 = vshrl.u32 %v8828_v32, %v8112_v40 }
 0x392   :  { %v4519_v28 = vand.u32 65535, %v4515_v39  ;;  %v4520_v56 = vshrl.u32 %v4515_v39, 16  ;;  %v8185_v61 = vshrl.u32 %v4789_v13, 5  ;;  %v8187_v15 = vor.u32 %v4795_v14, %v4794_v26 }
 0x393   :  { %v4543_v54 = vmul.u32 %v4541_v51, %v4517_v10  ;;  %v4544_v55 = vmul.u32 %v4542_v60, %v4517_v10  ;;  %v4545_v48 = vmul.u32 %v4541_v51, %v4518_v20  ;;  %v4546_v6 = vmul.u32 %v4542_v60, %v4518_v20 }
 0x394   :  { %v4521_v63 = vmul.u32 %v4519_v28, %v4517_v10  ;;  %v4522_v57 = vmul.u32 %v4520_v56, %v4517_v10  ;;  %v4523_v3 = vmul.u32 %v4519_v28, %v4518_v20  ;;  %v4524_v51 = vmul.u32 %v4520_v56, %v4518_v20 }
 0x395   :  { %v4547_v4 = vshll.u32 %v4544_v55, 16  ;;  %v4549_v39 = vshll.u32 %v4545_v48, 16  ;;  %v8189_v23 = vor.u32 %v4798_v35, %v4797_v11  ;;  %v8191_v47 = vor.u32 %v4801_v22, %v4800_v0 }
 0x396   :  { %v4525_v36 = vshll.u32 %v4522_v57, 16  ;;  %v4527_v45 = vshll.u32 %v4523_v3, 16  ;;  %v4806_v10 = vshll.u32 %v8798_v50, %v8102_v34  ;;  %v4807_v26 = vshrl.u32 %v8817_v41, %v8112_v40 }
 0x397   :  { %vm4551_vm2 = vc.u32 %v4543_v54, %v4547_v4  ;;  %v4553_v1 = vadd.s32 %v4547_v4, %v4543_v54  ;;  %v4548_v14 = vshrl.u32 %v4544_v55, 16  ;;  %v4526_v11 = vshrl.u32 %v4522_v57, 16 }
 0x398   :  { %vm4529_vm3 = vc.u32 %v4521_v63, %v4525_v36  ;;  %v4531_v13 = vadd.s32 %v4525_v36, %v4521_v63  ;;  %v4552_v60 = vsel %vm4551_vm2, 1, %v8816_v2  ;;  %v4484_v34 = vshrl.u32 %v8803_v58, %v8104_v27 }
 0x399   :  { %v4530_v20 = vsel %vm4529_vm3, 1, %v8816_v2  ;;  %v4554_v28 = vadd.s32 %v4552_v60, %v4546_v6  ;;  %vm4555_vm4 = vc.u32 %v4553_v1, %v4549_v39  ;;  %v4550_v35 = vshrl.u32 %v4545_v48, 16 }
 0x39a   :  { %v4532_v56 = vadd.s32 %v4530_v20, %v4524_v51  ;;  %vm4533_vm6 = vc.u32 %v4531_v13, %v4527_v45  ;;  %v4556_v54 = vsel %vm4555_vm4, 1, %v8816_v2  ;;  %v4505_v22 = vsel %vm4503_vm1, %v8132_v43, 2102212464 }
 0x39b   :  { %v4534_v36 = vsel %vm4533_vm6, 1, %v8816_v2  ;;  %v4558_v0 = vadd.s32 %v4556_v54, %v4554_v28  ;;  %v4528_v63 = vshrl.u32 %v4523_v3, 16  ;;  %v4805_v6 = vor.u32 %v4804_v25, %v4803_v5 }
 0x39c   :  { %v4536_v55 = vadd.s32 %v4534_v36, %v4532_v56  ;;  %v4504_v45 = vsel %vm4500_vm7, %v4484_v34, %v8127_v17  ;;  %v4506_v57 = vsel %vm4502_vm15, %v8130_v62, %v4505_v22  ;;  %v4808_v4 = vor.u32 %v4807_v26, %v4806_v10 }
 0x39d   :  { %v4559_v27 = vadd.s32 %v4558_v0, %v4548_v14  ;;  %v4507_v48 = vsel %vm4501_vm14, %v4504_v45, %v4506_v57  ;;  %v8214_v13 = vadd.s32 %v4553_v1, %v4549_v39  ;;  %vm4809_vm8 = vcmp.lt.s32.totalorder %v8185_v61, 1 }
 0x39e   :  { %v4537_v51 = vadd.s32 %v4536_v55, %v4526_v11  ;;  %v4785_v5 = vor.u32 8388608, %v8164_v16  ;;  %vm4811_vm9 = vcmp.lt.s32.totalorder %v8185_v61, 3  ;;  %vm4812_vm10 = vcmp.lt.s32.totalorder %v8185_v61, 4 }
 0x39f   :  { %v4560_v43 = vadd.s32 %v4559_v27, %v4550_v35  ;;  %v4561_v62 = vmul.u32 %v8140_v12, %v4507_v48  ;;  %vm4810_vm11 = vcmp.lt.s32.totalorder %v8185_v61, 2  ;;  %v4817_v1 = vsel %vm4809_vm8, %v8187_v15, %v8189_v23 }
 0x3a0   :  { %v8220_v17 = vadd.s32 %v4537_v51, %v4528_v63  ;;  %v4818_v25 = vsel %vm4812_vm10, %v4805_v6, 920167782  ;;  %v4821_v16 = vsel %vm4809_vm8, %v8189_v23, %v8191_v47  ;;  %v4822_v3 = vsel %vm4812_vm10, %v4808_v4, 1326507024 }
 0x3a1   :  { %v4564_v53 = vadd.s32 1, %v4560_v43  ;;  %v4819_v12 = vsel %vm4811_vm9, %v8191_v47, %v4818_v25  ;;  %v4823_v60 = vsel %vm4811_vm9, %v4805_v6, %v4822_v3  ;;  %v8245_v26 = vshll.u32 %v4785_v5, 8 }
 0x3a2   :  { %vm4563_vm12 = vc.u32 %v8220_v17, %v8214_v13  ;;  %v4820_v10 = vsel %vm4810_vm11, %v4817_v1, %v4819_v12  ;;  %v4824_v14 = vsel %vm4810_vm11, %v4821_v16, %v4823_v60  ;;  %v4814_v1 = vsel %vm4812_vm10, %v8191_v47, 2102212464 }
 0x3a3   :  { %v4565_v39 = vsel %vm4563_vm12, %v4564_v53, %v4560_v43  ;;  %v4850_v28 = vand.u32 65535, %v4820_v10  ;;  %v4851_v11 = vshrl.u32 %v4820_v10, 16  ;;  %v4826_v56 = vand.u32 65535, %v8245_v26 }
 0x3a4   :  { %v4566_v20 = vadd.s32 %v4565_v39, %v4561_v62  ;;  %v4827_v54 = vshrl.u32 %v8245_v26, 16  ;;  %v4828_v34 = vand.u32 65535, %v4824_v14  ;;  %v4829_v36 = vshrl.u32 %v4824_v14, 16 }
 0x3a5   :  { %v4852_v6 = vmul.u32 %v4850_v28, %v4826_v56  ;;  %v4853_v45 = vmul.u32 %v4851_v11, %v4826_v56  ;;  %v4793_v43 = vshrl.u32 %v8803_v58, %v8112_v40  ;;  %v4058_v61 = vadd.s32 3, %v8021_v33 }
 0x3a6   :  { %v4567_v35 = vadd.s32 536870912, %v4566_v20  ;;  %v4830_v0 = vmul.u32 %v4828_v34, %v4826_v56  ;;  %v4831_v22 = vmul.u32 %v4829_v36, %v4826_v56  ;;  %v4832_v63 = vmul.u32 %v4828_v34, %v4827_v54 }
 0x3a7   :  { %v4854_v57 = vmul.u32 %v4850_v28, %v4827_v54  ;;  %v4833_v27 = vmul.u32 %v4829_v36, %v4827_v54  ;;  %v4855_v5 = vmul.u32 %v4851_v11, %v4827_v54  ;;  %v4856_v62 = vshll.u32 %v4853_v45, 16 }
 0x3a8   :  { %v8251_v55 = vshrl.u32 %v4567_v35, 30  ;;  %v4834_v4 = vshll.u32 %v4831_v22, 16  ;;  %v4836_v48 = vshll.u32 %v4832_v63, 16  ;;  %v4835_v39 = vshrl.u32 %v4831_v22, 16 }
 0x3a9   :  { %v4858_v25 = vshll.u32 %v4854_v57, 16  ;;  %vm4860_vm7 = vc.u32 %v4852_v6, %v4856_v62  ;;  %v4862_v3 = vadd.s32 %v4856_v62, %v4852_v6  ;;  %v4837_v11 = vshrl.u32 %v4832_v63, 16 }
 0x3aa   :  { %v4569_v51 = vshll.u32 %v8251_v55, 30  ;;  %vm4838_vm13 = vc.u32 %v4830_v0, %v4834_v4  ;;  %v4840_v53 = vadd.s32 %v4834_v4, %v4830_v0  ;;  %v4861_v60 = vsel %vm4860_vm7, 1, %v8816_v2 }
 0x3ab   :  { %v4839_v12 = vsel %vm4838_vm13, 1, %v8816_v2  ;;  %v4863_v28 = vadd.s32 %v4861_v60, %v4855_v5  ;;  %v4857_v56 = vshrl.u32 %v4853_v45, 16  ;;  %vm4864_vm1 = vc.u32 %v4862_v3, %v4858_v25 }
 0x3ac   :  { %v4570_v16 = vsub.s32 %v4566_v20, %v4569_v51  ;;  %v4841_v10 = vadd.s32 %v4839_v12, %v4833_v27  ;;  %vm4842_vm14 = vc.u32 %v4840_v53, %v4836_v48  ;;  %v4813_v20 = vsel %vm4809_vm8, %v4793_v43, %v8187_v15 }
 0x3ad   :  { %v4843_v14 = vsel %vm4842_vm14, 1, %v8816_v2  ;;  %v4815_v34 = vsel %vm4811_vm9, %v8189_v23, %v4814_v1  ;;  %v4865_v36 = vsel %vm4864_vm1, 1, %v8816_v2  ;;  %v4859_v22 = vshrl.u32 %v4854_v57, 16 }
 0x3ae   :  { %vm4571_vm15 = vcmp.lt.s32.totalorder %v4570_v16, 0  ;;  %v4572_v40 = vsub.s32 0, %v4570_v16  ;;  %v4845_v47 = vadd.s32 %v4843_v14, %v4841_v10  ;;  %v4867_v6 = vadd.s32 %v4865_v36, %v4863_v28 }
 0x3af   :  { %v4866_v27 = vadd.s32 %v4862_v3, %v4858_v25  ;;  %v4816_v45 = vsel %vm4810_vm11, %v4813_v20, %v4815_v34  ;;  %v4562_v15 = vadd.s32 %v8214_v13, %v8220_v17  ;;  %v4059_v13 = vand.u32 3, %v4058_v61 }
 0x3b0   :  { %v4573_v54 = vsel %vm4571_vm15, %v4572_v40, %v4570_v16  ;;  %v4846_v0 = vadd.s32 %v4845_v47, %v4835_v39  ;;  %v4868_v48 = vadd.s32 %v4867_v6, %v4857_v56  ;;  %v4870_v23 = vmul.u32 %v8245_v26, %v4816_v45 }
 0x3b1   :  { %v4574_v35 = vclz %v4573_v54  ;;  %vm4061_vm4 = vcmp.eq.s32.totalorder %v4059_v13, 0  ;;  %vm4064_vm6 = vcmp.eq.s32.totalorder %v4059_v13, 2  ;;  %vm4470_vm8 = vcmp.lt.s32.totalorder %v8096_v9, 0 }
 0x3b2   :  { %v4847_v4 = vadd.s32 %v4846_v0, %v4837_v11  ;;  %v4869_v51 = vadd.s32 %v4868_v48, %v4859_v22  ;;  %v8829_v33 = vand.u32 2147483647, %v8096_v9  ;;  %vm4060_vm11 = vcmp.lt.s32.totalorder %v4059_v13, 2 }
 0x3b3   :  { %v6193_v63 = vadd.s32 4294967294, %v4574_v35  ;;  %v8832_v20 = vxor.u32 2147483648, %v8035_v52  ;;  %v8833_v36 = vxor.u32 2147483648, %v8030_v29  ;;  %vm4779_vm13 = vcmp.lt.s32.totalorder %v8098_v19, 0 }
 0x3b4   :  { %vm4872_vm3 = vc.u32 %v4847_v4, %v4866_v27  ;;  %v4873_v57 = vadd.s32 1, %v4869_v51  ;;  %vm8281_vm9 = vcmp.le.f32.partialorder %v8829_v33, 0.7853982 }
 0x3b5   :  { %vm6194_vm2 = vcmp.lt.s32.totalorder %v6193_v63, 0  ;;  %v4063_v34 = vsel %vm4061_vm4, %v8030_v29, %v8832_v20  ;;  %v4066_v35 = vsel %vm4064_vm6, %v8833_v36, %v8035_v52  ;;  %v4871_v29 = vadd.s32 %v4866_v27, %v4847_v4 }
 0x3b6   :  { %v4577_v43 = vsel %vm6194_vm2, 0, %v6193_v63  ;;  %v4874_v12 = vsel %vm4872_vm3, %v4873_v57, %v4869_v51  ;;  %v4067_v45 = vsel %vm4060_vm11, %v4063_v34, %v4066_v35  ;;  %v4592_v20 = vsub.s32 4, %v8251_v55 }
 0x3b7   :  { %v4578_v5 = vsub.s32 32, %v4577_v43  ;;  %v4582_v62 = vsub.s32 4294967266, %v4577_v43  ;;  %v4579_v1 = vshll.u32 %v4570_v16, %v4577_v43  ;;  %v4875_v3 = vadd.s32 %v4874_v12, %v4870_v23 }
 0x3b8   :  { %v8834_v35 = vand.u32 2147483647, %v8098_v19  ;;  %vm4611_vm3 = vweird.f32 %v8096_v9 }
 0x3b9   :  { %v4580_v53 = vshrl.u32 %v4562_v15, %v4578_v5  ;;  %v4583_v25 = vadd.s32 127, %v4582_v62  ;;  %v4876_v60 = vadd.s32 536870912, %v4875_v3  ;;  %v4068_v15 = vsel %vm3903_vm5, nan, %v4067_v45 }
 0x3ba   :  { %v4430_v23 = vmul.f32 %v8060_v59, %v4068_v15  ;;  %vm8310_vm5 = vcmp.le.f32.partialorder %v8834_v35, 0.7853982 }
 0x3bb   :  { %v4581_v39 = vor.u32 %v4580_v53, %v4579_v1  ;;  %v4584_v10 = vshll.u32 %v4583_v25, 23  ;;  %v8275_v17 = vshrl.u32 %v4876_v60, 30 }
 0x3bc   :  { %v4431_v25 = vperm.slane %v4430_v23, 0 }
 0x3bd   :  { %v4585_v40 = vor.u32 4788187, %v4584_v10  ;;  %v4588_v14 = vcvt.s32.f32 %v4581_v39  ;;  %v4878_v28 = vshll.u32 %v8275_v17, 30 }
 0x3be   :  { %v4432_v46 = vmul.f32 %v4431_v25, %v6898_v18  ;;  %v4433_v13 = vmul.f32 %v4431_v25, %v6901_v38  ;;  %v4901_v18 = vsub.s32 4, %v8275_v17  ;;  %v8837_v38 = vsub.f32 %v8069_v42, %v8075_v21 }
 0x3bf   :  { %v4586_v26 = vand.u32 2147483647, %v4585_v40  ;;  %v4879_v16 = vsub.s32 %v4875_v3, %v4878_v28 }
 0x3c0   :  { %v4902_v42 = vsel %vm4779_vm13, %v4901_v18, %v8275_v17 }
 0x3c1   :  { %v4589_v11 = vmul.f32 %v4588_v14, %v4586_v26  ;;  %vm4880_vm10 = vcmp.lt.s32.totalorder %v4879_v16, 0  ;;  %v4881_v54 = vsub.s32 0, %v4879_v16  ;;  %v4425_v14 = vmul.f32 %v8062_v8, %v4068_v15 }
 0x3c3   :  { %v4590_v47 = vxor.u32 2147483648, %v4589_v11  ;;  %v4882_v22 = vsel %vm4880_vm10, %v4881_v54, %v4879_v16  ;;  %vm4920_vm10 = vweird.f32 %v8098_v19 }
 0x3c4   :  { %v4883_v63 = vclz %v4882_v22 }
 0x3c5   :  { %v4591_v0 = vsel %vm4470_vm8, %v4590_v47, %v4589_v11  ;;  %v4445_v47 = vperm.slane %v4425_v14, 0 }
 0x3c6   :  { %v8296_v6 = vsel %vm8281_vm9, %v8096_v9, %v4591_v0  ;;  %v6199_v48 = vadd.s32 4294967294, %v4883_v63 }
 0x3c7   :  { %v4596_v51 = vmul.f32 %v8296_v6, %v8296_v6 }
 0x3c8   :  { %vm6200_vm12 = vcmp.lt.s32.totalorder %v6199_v48, 0 }
 0x3c9   :  { %v4886_v52 = vsel %vm6200_vm12, 0, %v6199_v48  ;;  %v4604_v5 = vmul.f32 -0.00019511016, %v4596_v51  ;;  %v4597_v12 = vmul.f32 -0.001358992, %v4596_v51 }
 0x3ca   :  { %v4887_v43 = vsub.s32 32, %v4886_v52  ;;  %v4891_v62 = vsub.s32 4294967266, %v4886_v52  ;;  %v4888_v57 = vshll.u32 %v4879_v16, %v4886_v52 }
 0x3cb   :  { %v4605_v61 = vadd.f32 0.008332121, %v4604_v5  ;;  %v4598_v40 = vadd.f32 0.041655596, %v4597_v12 }
 0x3cc   :  { %v4889_v1 = vshrl.u32 %v4871_v29, %v4887_v43  ;;  %v4892_v53 = vadd.s32 127, %v4891_v62  ;;  %v8838_v29 = vsub.f32 %v8072_v30, %v8079_v24  ;;  %v4593_v62 = vsel %vm4470_vm8, %v4592_v20, %v8251_v55 }
 0x3cd   :  { %v4606_v27 = vmul.f32 %v4605_v61, %v4596_v51  ;;  %v4599_v28 = vmul.f32 %v4598_v40, %v4596_v51  ;;  %v8339_v55 = vsel %vm8281_vm9, 0, %v4593_v62 }
 0x3ce   :  { %v4893_v3 = vshll.u32 %v4892_v53, 23  ;;  %v4890_v10 = vor.u32 %v4889_v1, %v4888_v57 }
 0x3cf   :  { %v4607_v11 = vadd.f32 -0.16666654, %v4606_v27  ;;  %v4600_v63 = vadd.f32 -0.4999988, %v4599_v28  ;;  %v4612_v27 = vand.u32 3, %v8339_v55 }
 0x3d0   :  { %v4894_v4 = vor.u32 4788187, %v4893_v3  ;;  %v4897_v59 = vcvt.s32.f32 %v4890_v10 }
 0x3d1   :  { %v4608_v45 = vmul.f32 %v4607_v11, %v4596_v51  ;;  %v4601_v24 = vmul.f32 %v4600_v63, %v4596_v51  ;;  %vm4614_vm7 = vcmp.eq.s32.totalorder %v4612_v27, 0  ;;  %vm4617_vm14 = vcmp.eq.s32.totalorder %v4612_v27, 2 }
 0x3d2   :  { %v4895_v16 = vand.u32 2147483647, %v4894_v4  ;;  %vm4613_vm15 = vcmp.lt.s32.totalorder %v4612_v27, 2 }
 0x3d3   :  { %v4609_v25 = vadd.f32 1.0, %v4608_v45 }
 0x3d4   :  { %v4898_v34 = vmul.f32 %v4897_v59, %v4895_v16 }
 0x3d5   :  { %v8352_v56 = vmul.f32 %v4609_v25, %v8296_v6 }
 0x3d6   :  { %v4899_v48 = vxor.u32 2147483648, %v4898_v34 }
 0x3d8   :  { %v4900_v57 = vsel %vm4779_vm13, %v4899_v48, %v4898_v34 }
 0x3d9   :  { %v4903_v30 = vsel %vm8310_vm5, %v8098_v19, %v4900_v57 }
 0x3da   :  { %v4905_v12 = vmul.f32 %v4903_v30, %v4903_v30 }
 0x3dc   :  { %v4906_v17 = vmul.f32 -0.001358992, %v4905_v12  ;;  %v4913_v10 = vmul.f32 -0.00019511016, %v4905_v12 }
 0x3de   :  { %v4914_v40 = vadd.f32 0.008332121, %v4913_v10 }
 0x3e0   :  { %v4915_v59 = vmul.f32 %v4914_v40, %v4905_v12 }
 0x3e2   :  { %v4916_v11 = vadd.f32 -0.16666654, %v4915_v59 }
 0x3f0   :  { %v4395_v39 = vpop.f32.mrf.mxu2 }
 0x3f1   :  { %v4441_v26 = vmul.f32 %v4432_v46, %v4395_v39 }
 0x3f2   :  { %v4418_v60 = vpop.f32.mrf.mxu3 }
 0x3f3   :  { %v4456_v33 = vmul.f32 %v4432_v46, %v4418_v60  ;;  %v4443_v0 = vadd.f32 %v4441_v26, %v8837_v38  ;;  %v4446_v15 = vmul.f32 %v4445_v47, %v4418_v60  ;;  %v8349_v46 = vadd.f32 1.0, %v4601_v24 }
 0x3f4   :  { %v4907_v60 = vadd.f32 0.041655596, %v4906_v17 }
 0x3f5   :  { %v4458_v5 = vadd.f32 %v4456_v33, %v8084_v31  ;;  %v4460_v31 = vmul.f32 %v4445_v47, %v4395_v39  ;;  %v8332_v61 = vsub.f32 %v4443_v0, %v4446_v15  ;;  %v6256_v39 = vld [vmem:[%s8751_s4 + $0x20] sm:$0xff]  ;;  %v4618_v26 = vxor.u32 2147483648, %v8349_v46 }
 0x3f6   :  { %v4908_v14 = vmul.f32 %v4907_v60, %v4905_v12  ;;  %v4917_v33 = vmul.f32 %v4916_v11, %v4905_v12 }
 0x3f7   :  { %v4462_v51 = vadd.f32 %v4460_v31, %v4458_v5  ;;  %v4619_v34 = vsel %vm4617_vm14, %v4618_v26, %v8352_v56 }
 0x3f8   :  { %v4398_v54 = vpop.f32.mrf.mxu2  ;;  %v4909_v28 = vadd.f32 -0.4999988, %v4908_v14 }
 0x3f9   :  { %v4442_v36 = vmul.f32 %v4433_v13, %v4398_v54  ;;  %v4461_v21 = vmul.f32 %v4445_v47, %v4398_v54  ;;  %v6257_v54 = vld [vmem:[%s8751_s4 + $0x28] sm:$0xff] }
 0x3fa   :  { %v4421_v22 = vpop.f32.mrf.mxu3 }
 0x3fb   :  { %v4444_v52 = vadd.f32 %v4442_v36, %v8838_v29  ;;  %v4447_v43 = vmul.f32 %v4445_v47, %v4421_v22  ;;  %v4457_v23 = vmul.f32 %v4433_v13, %v4421_v22  ;;  %v4615_v13 = vxor.u32 2147483648, %v8352_v56 }
 0x3fc   :  { %v4910_v47 = vmul.f32 %v4909_v28, %v4905_v12  ;;  %v4918_v36 = vadd.f32 1.0, %v4917_v33 }
 0x3fd   :  { %v8326_v1 = vsub.f32 %v4444_v52, %v4447_v43  ;;  %v4459_v53 = vadd.f32 %v4457_v23, %v8088_v37  ;;  %v4904_v37 = vsel %vm8310_vm5, 0, %v4902_v42  ;;  %v4616_v20 = vsel %vm4614_vm7, %v8349_v46, %v4615_v13 }
 0x3fe   :  { %v5075_v4 = vadd.s32 3, %v4904_v37  ;;  %v4921_v6 = vand.u32 3, %v4904_v37  ;;  %v4911_v18 = vadd.f32 1.0, %v4910_v47  ;;  %v4919_v35 = vmul.f32 %v4918_v36, %v4903_v30 }
 0x3ff   :  { %v8334_v3 = vadd.f32 %v4461_v21, %v4459_v53  ;;  %5100 = vmatpush.msra.mxu0 %v8326_v1  ;;  %v4620_v38 = vsel %vm4613_vm15, %v4616_v20, %v4619_v34  ;;  %v8839_v53 = vld [vmem:[#allocation2_spill] sm:$0xff] }
 0x400   :  { %v5076_v16 = vand.u32 3, %v5075_v4  ;;  %vm4926_vm1 = vcmp.eq.s32.totalorder %v4921_v6, 2  ;;  %v4927_v8 = vxor.u32 2147483648, %v4911_v18  ;;  %vm4922_vm4 = vcmp.lt.s32.totalorder %v4921_v6, 2 }
 0x401   :  { %5101 = vmatpush.msra.mxu0 %v8332_v61  ;;  %5123 = vmatpush.msra.mxu1 %v8334_v3  ;;  %vm4923_vm6 = vcmp.eq.s32.totalorder %v4921_v6, 0  ;;  %v4924_v0 = vxor.u32 2147483648, %v4919_v35  ;;  %v4621_v45 = vsel %vm4611_vm3, nan, %v4620_v38 }
 0x402   :  { %6204 = vmatmul.msk.f32.vlgmr.msra.gmra.mxu0 %vm693_vm0, %v6256_v39  ;;  %vm5081_vm2 = vcmp.eq.s32.totalorder %v5076_v16, 2  ;;  %vm5078_vm8 = vcmp.eq.s32.totalorder %v5076_v16, 0  ;;  %v4928_v22 = vsel %vm4926_vm1, %v4927_v8, %v4919_v35  ;;  %vm5077_vm9 = vcmp.lt.s32.totalorder %v5076_v16, 2 }
 0x403   :  { %5124 = vmatpush.msra.mxu1 %v4462_v51  ;;  %v5083_v63 = vsel %vm5081_vm2, %v4927_v8, %v4919_v35  ;;  %v4925_v48 = vsel %vm4923_vm6, %v4911_v18, %v4924_v0  ;;  %v5080_v15 = vsel %vm5078_vm8, %v4911_v18, %v4924_v0 }
 0x404   :  { %6206 = vmatmul.msk.f32.vlgmr.msra.gmra.mxu1 %vm693_vm0, %v6256_v39  ;;  %v4929_v29 = vsel %vm4922_vm4, %v4925_v48, %v4928_v22  ;;  %v5084_v52 = vsel %vm5077_vm9, %v5080_v15, %v5083_v63 }
 0x405   :  { %v8373_v43 = vsel %vm4920_vm10, nan, %v4929_v29  ;;  %v8375_v23 = vsel %vm4920_vm10, nan, %v5084_v52 }
 0x406   :  { %v5132_v5 = vmul.f32 %v8373_v43, %v4621_v45  ;;  %v5134_v62 = vmul.f32 %v8375_v23, %v4621_v45 }
 0x408   :  { %v5135_v57 = vperm.slane %v5134_v62, 0  ;;  %v5142_v42 = vperm.slane %v5132_v5, 0 }
 0x40a   :  { %6205 = vmatmul.msk.f32.gmra.mxu0 %vm693_vm0, %v6257_v54  ;;  %v5136_v21 = vmul.f32 %v5135_v57, %v7208_v7  ;;  %v5158_v19 = vmul.f32 %v5142_v42, %v4462_v51  ;;  %v5137_v30 = vmul.f32 %v5135_v57, %v8839_v53  ;;  %v8382_v24 = vmul.f32 %v5142_v42, %v8332_v61 }
 0x40b   :  { %v8385_v25 = vmul.f32 %v5142_v42, %v8326_v1  ;;  %v5159_v12 = vmul.f32 %v5142_v42, %v8334_v3 }
 0x40c   :  { %6207 = vmatmul.msk.f32.gmra.mxu1 %vm693_vm0, %v6257_v54  ;;  %v8388_v31 = vmul.f32 %v5136_v21, %v4462_v51  ;;  %v5160_v37 = vmul.f32 %v5136_v21, %v8332_v61  ;;  %v8392_v17 = vmul.f32 %v5137_v30, %v8334_v3  ;;  %v5161_v10 = vmul.f32 %v5137_v30, %v8326_v1  ;;  %v5172_v51 = vld [vmem:[%s8749_s0 + $0xb] sm:$0x1]  ;;  %v5174_v61 = vld [vmem:[%s8749_s0 + $0xf] sm:$0x1] }
 0x40d   :  { %v8409_v3 = vmul.f32 0.5, %v5172_v51  ;;  %v8411_v1 = vmul.f32 0.5, %v5174_v61 }
 0x40e   :  { %v8397_v60 = vadd.f32 %v5160_v37, %v5158_v19  ;;  %v8401_v27 = vadd.f32 %v5161_v10, %v5159_v12 }
 0x40f   :  { %v5179_v4 = vand.u32 2139095040, %v8409_v3  ;;  %v5488_v14 = vand.u32 2139095040, %v8411_v1  ;;  %v5176_v36 = vand.u32 2147483647, %v8409_v3  ;;  %v8786_v38 = vand.u32 2147483647, %v8411_v1 }
 0x411   :  { %v5180_v59 = vshrl.u32 %v5179_v4, 23  ;;  %v5489_v28 = vshrl.u32 %v5488_v14, 23  ;;  %v5183_v22 = vand.u32 8388607, %v5176_v36 }
 0x413   :  { %v6208_v11 = vadd.s32 4294967169, %v5180_v59  ;;  %v6214_v6 = vadd.s32 4294967169, %v5489_v28  ;;  %v5184_v62 = vor.u32 8388608, %v5183_v22 }
 0x415   :  { %v5186_v16 = vadd.s32 1, %v6208_v11  ;;  %v5495_v47 = vadd.s32 1, %v6214_v6  ;;  %v8453_v37 = vshll.u32 %v5184_v62, 8 }
 0x417   :  { %vm5187_vm11 = vcmp.gt.s32.totalorder %v5186_v16, 0  ;;  %vm5496_vm12 = vcmp.gt.s32.totalorder %v5495_v47, 0  ;;  %v5225_v59 = vand.u32 65535, %v8453_v37 }
 0x418   :  { %v5188_v33 = vsel %vm5187_vm11, %v5186_v16, 0  ;;  %v5497_v54 = vsel %vm5496_vm12, %v5495_v47, 0  ;;  %v8477_v16 = vand.u32 8388607, %v8786_v38 }
 0x419   :  { %v5190_v20 = vand.u32 31, %v5188_v33  ;;  %v8415_v34 = vand.u32 31, %v5497_v54  ;;  %v8429_v63 = vshrl.u32 %v5188_v33, 5 }
 0x41b   :  { %v8417_v18 = vsub.s32 32, %v5190_v20  ;;  %v5202_v35 = vshll.u32 %v8828_v32, %v5190_v20  ;;  %v8425_v0 = vsub.s32 32, %v8415_v34  ;;  %v5193_v45 = vshll.u32 %v8803_v58, %v5190_v20 }
 0x41c   :  { %v5196_v15 = vshll.u32 %v8799_v49, %v5190_v20  ;;  %v5199_v52 = vshll.u32 %v8800_v44, %v5190_v20  ;;  %v5205_v21 = vshll.u32 %v8798_v50, %v5190_v20  ;;  %vm5208_vm5 = vcmp.lt.s32.totalorder %v8429_v63, 1 }
 0x41d   :  { %v5203_v8 = vshrl.u32 %v8798_v50, %v8417_v18  ;;  %v5194_v48 = vshrl.u32 %v8799_v49, %v8417_v18  ;;  %v5197_v29 = vshrl.u32 %v8800_v44, %v8417_v18  ;;  %v5200_v5 = vshrl.u32 %v8828_v32, %v8417_v18 }
 0x41e   :  { %v5206_v12 = vshrl.u32 %v8817_v41, %v8417_v18  ;;  %vm5209_vm13 = vcmp.lt.s32.totalorder %v8429_v63, 2  ;;  %vm5210_vm7 = vcmp.lt.s32.totalorder %v8429_v63, 3  ;;  %vm5211_vm14 = vcmp.lt.s32.totalorder %v8429_v63, 4 }
 0x41f   :  { %v8440_v57 = vor.u32 %v5194_v48, %v5193_v45  ;;  %v5204_v42 = vor.u32 %v5203_v8, %v5202_v35  ;;  %v8443_v19 = vor.u32 %v5197_v29, %v5196_v15  ;;  %v8445_v30 = vor.u32 %v5200_v5, %v5199_v52 }
 0x420   :  { %v5207_v10 = vor.u32 %v5206_v12, %v5205_v21  ;;  %v5511_v28 = vshll.u32 %v8828_v32, %v8415_v34  ;;  %v5512_v47 = vshrl.u32 %v8798_v50, %v8425_v0  ;;  %v5226_v20 = vshrl.u32 %v8453_v37, 16 }
 0x421   :  { %v5216_v51 = vsel %vm5208_vm5, %v8440_v57, %v8443_v19  ;;  %v5217_v61 = vsel %vm5211_vm14, %v5204_v42, 920167782  ;;  %v5220_v14 = vsel %vm5208_vm5, %v8443_v19, %v8445_v30  ;;  %v5502_v45 = vshll.u32 %v8803_v58, %v8415_v34 }
 0x422   :  { %v5218_v4 = vsel %vm5210_vm7, %v8445_v30, %v5217_v61  ;;  %v5221_v6 = vsel %vm5211_vm14, %v5207_v10, 1326507024  ;;  %v5503_v48 = vshrl.u32 %v8799_v49, %v8425_v0  ;;  %v5505_v15 = vshll.u32 %v8799_v49, %v8415_v34 }
 0x423   :  { %v5219_v11 = vsel %vm5209_vm13, %v5216_v51, %v5218_v4  ;;  %v5222_v33 = vsel %vm5210_vm7, %v5204_v42, %v5221_v6  ;;  %v5506_v21 = vshrl.u32 %v8800_v44, %v8425_v0  ;;  %v5508_v12 = vshll.u32 %v8800_v44, %v8415_v34 }
 0x424   :  { %v5249_v35 = vand.u32 65535, %v5219_v11  ;;  %v5250_v8 = vshrl.u32 %v5219_v11, 16  ;;  %v5223_v22 = vsel %vm5209_vm13, %v5220_v14, %v5222_v33  ;;  %v5509_v10 = vshrl.u32 %v8828_v32, %v8425_v0 }
 0x425   :  { %v5227_v29 = vand.u32 65535, %v5223_v22  ;;  %v5228_v52 = vshrl.u32 %v5223_v22, 16  ;;  %v8498_v14 = vshrl.u32 %v5497_v54, 5  ;;  %v8500_v33 = vor.u32 %v5503_v48, %v5502_v45 }
 0x426   :  { %v5251_v5 = vmul.u32 %v5249_v35, %v5225_v59  ;;  %v5252_v62 = vmul.u32 %v5250_v8, %v5225_v59  ;;  %v5253_v42 = vmul.u32 %v5249_v35, %v5226_v20  ;;  %v5254_v49 = vmul.u32 %v5250_v8, %v5226_v20 }
 0x427   :  { %v5229_v51 = vmul.u32 %v5227_v29, %v5225_v59  ;;  %v5230_v61 = vmul.u32 %v5228_v52, %v5225_v59  ;;  %v5231_v4 = vmul.u32 %v5227_v29, %v5226_v20  ;;  %v5232_v35 = vmul.u32 %v5228_v52, %v5226_v20 }
 0x428   :  { %v5255_v11 = vshll.u32 %v5252_v62, 16  ;;  %v5257_v6 = vshll.u32 %v5253_v42, 16  ;;  %v8502_v39 = vor.u32 %v5506_v21, %v5505_v15  ;;  %v8504_v38 = vor.u32 %v5509_v10, %v5508_v12 }
 0x429   :  { %v5233_v22 = vshll.u32 %v5230_v61, 16  ;;  %v5235_v40 = vshll.u32 %v5231_v4, 16  ;;  %v5514_v32 = vshll.u32 %v8798_v50, %v8415_v34  ;;  %v5515_v8 = vshrl.u32 %v8817_v41, %v8425_v0 }
 0x42a   :  { %vm5259_vm15 = vc.u32 %v5251_v5, %v5255_v11  ;;  %v5261_v44 = vadd.s32 %v5255_v11, %v5251_v5  ;;  %v5256_v45 = vshrl.u32 %v5252_v62, 16  ;;  %v5234_v15 = vshrl.u32 %v5230_v61, 16 }
 0x42b   :  { %vm5237_vm1 = vc.u32 %v5229_v51, %v5233_v22  ;;  %v5239_v54 = vadd.s32 %v5233_v22, %v5229_v51  ;;  %v5260_v59 = vsel %vm5259_vm15, 1, %v8816_v2  ;;  %v5192_v50 = vshrl.u32 %v8803_v58, %v8417_v18 }
 0x42c   :  { %v5238_v20 = vsel %vm5237_vm1, 1, %v8816_v2  ;;  %v5262_v48 = vadd.s32 %v5260_v59, %v5254_v49  ;;  %vm5263_vm2 = vc.u32 %v5261_v44, %v5257_v6  ;;  %v5258_v5 = vshrl.u32 %v5253_v42, 16 }
 0x42d   :  { %v5240_v29 = vadd.s32 %v5238_v20, %v5232_v35  ;;  %vm5241_vm4 = vc.u32 %v5239_v54, %v5235_v40  ;;  %v5264_v52 = vsel %vm5263_vm2, 1, %v8816_v2  ;;  %v5213_v41 = vsel %vm5211_vm14, %v8445_v30, 2102212464 }
 0x42e   :  { %v5242_v34 = vsel %vm5241_vm4, 1, %v8816_v2  ;;  %v5266_v21 = vadd.s32 %v5264_v52, %v5262_v48  ;;  %v5236_v12 = vshrl.u32 %v5231_v4, 16  ;;  %v5513_v10 = vor.u32 %v5512_v47, %v5511_v28 }
 0x42f   :  { %v5244_v62 = vadd.s32 %v5242_v34, %v5240_v29  ;;  %v5212_v40 = vsel %vm5208_vm5, %v5192_v50, %v8440_v57  ;;  %v5214_v51 = vsel %vm5210_vm7, %v8443_v19, %v5213_v41  ;;  %v5516_v61 = vor.u32 %v5515_v8, %v5514_v32 }
 0x430   :  { %v5267_v18 = vadd.s32 %v5266_v21, %v5256_v45  ;;  %v5215_v42 = vsel %vm5209_vm13, %v5212_v40, %v5214_v51  ;;  %v8527_v11 = vadd.s32 %v5261_v44, %v5257_v6  ;;  %vm5517_vm6 = vcmp.lt.s32.totalorder %v8498_v14, 1 }
 0x431   :  { %v5245_v49 = vadd.s32 %v5244_v62, %v5234_v15  ;;  %v5493_v28 = vor.u32 8388608, %v8477_v16  ;;  %vm5519_vm8 = vcmp.lt.s32.totalorder %v8498_v14, 3  ;;  %vm5520_vm9 = vcmp.lt.s32.totalorder %v8498_v14, 4 }
 0x432   :  { %v5268_v30 = vadd.s32 %v5267_v18, %v5258_v5  ;;  %v5269_v19 = vmul.u32 %v8453_v37, %v5215_v42  ;;  %vm5518_vm10 = vcmp.lt.s32.totalorder %v8498_v14, 2  ;;  %v5525_v63 = vsel %vm5517_vm6, %v8500_v33, %v8502_v39 }
 0x433   :  { %v8533_v57 = vadd.s32 %v5245_v49, %v5236_v12  ;;  %v5526_v4 = vsel %vm5520_vm9, %v5513_v10, 920167782  ;;  %v5529_v16 = vsel %vm5517_vm6, %v8502_v39, %v8504_v38  ;;  %v5530_v6 = vsel %vm5520_vm9, %v5516_v61, 1326507024 }
 0x434   :  { %v5272_v47 = vadd.s32 1, %v5268_v30  ;;  %v5527_v37 = vsel %vm5519_vm8, %v8504_v38, %v5526_v4  ;;  %v5531_v44 = vsel %vm5519_vm8, %v5513_v10, %v5530_v6  ;;  %v8558_v32 = vshll.u32 %v5493_v28, 8 }
 0x435   :  { %vm5271_vm11 = vc.u32 %v8533_v57, %v8527_v11  ;;  %v5528_v22 = vsel %vm5518_vm10, %v5525_v63, %v5527_v37  ;;  %v5532_v59 = vsel %vm5518_vm10, %v5529_v16, %v5531_v44  ;;  %v5501_v61 = vshrl.u32 %v8803_v58, %v8425_v0 }
 0x436   :  { %v5273_v35 = vsel %vm5271_vm11, %v5272_v47, %v5268_v30  ;;  %v5558_v8 = vand.u32 65535, %v5528_v22  ;;  %v5559_v20 = vshrl.u32 %v5528_v22, 16  ;;  %v5534_v45 = vand.u32 65535, %v8558_v32 }
 0x437   :  { %v5274_v54 = vadd.s32 %v5273_v35, %v5269_v19  ;;  %v5535_v48 = vshrl.u32 %v8558_v32, 16  ;;  %v5536_v15 = vand.u32 65535, %v5532_v59  ;;  %v5537_v29 = vshrl.u32 %v5532_v59, 16 }
 0x438   :  { %v5560_v41 = vmul.u32 %v5558_v8, %v5534_v45  ;;  %v5561_v12 = vmul.u32 %v5559_v20, %v5534_v45  ;;  %v5522_v30 = vsel %vm5520_vm9, %v8504_v38, 2102212464  ;;  %v4766_v14 = vadd.s32 3, %v8339_v55 }
 0x439   :  { %v5275_v52 = vadd.s32 536870912, %v5274_v54  ;;  %v5538_v50 = vmul.u32 %v5536_v15, %v5534_v45  ;;  %v5539_v34 = vmul.u32 %v5537_v29, %v5534_v45  ;;  %v5540_v5 = vmul.u32 %v5536_v15, %v5535_v48 }
 0x43a   :  { %v5562_v62 = vmul.u32 %v5558_v8, %v5535_v48  ;;  %v5541_v10 = vmul.u32 %v5537_v29, %v5535_v48  ;;  %v5563_v42 = vmul.u32 %v5559_v20, %v5535_v48  ;;  %v5564_v49 = vshll.u32 %v5561_v12, 16 }
 0x43b   :  { %v8564_v21 = vshrl.u32 %v5275_v52, 30  ;;  %v5542_v40 = vshll.u32 %v5539_v34, 16  ;;  %v5544_v51 = vshll.u32 %v5540_v5, 16  ;;  %v5543_v16 = vshrl.u32 %v5539_v34, 16 }
 0x43c   :  { %v5566_v19 = vshll.u32 %v5562_v62, 16  ;;  %vm5568_vm5 = vc.u32 %v5560_v41, %v5564_v49  ;;  %v5570_v4 = vadd.s32 %v5564_v49, %v5560_v41  ;;  %v5545_v22 = vshrl.u32 %v5540_v5, 16 }
 0x43d   :  { %v5277_v18 = vshll.u32 %v8564_v21, 30  ;;  %vm5546_vm12 = vc.u32 %v5538_v50, %v5542_v40  ;;  %v5548_v28 = vadd.s32 %v5542_v40, %v5538_v50  ;;  %v5569_v6 = vsel %vm5568_vm5, 1, %v8816_v2 }
 0x43e   :  { %v5547_v47 = vsel %vm5546_vm12, 1, %v8816_v2  ;;  %v5571_v35 = vadd.s32 %v5569_v6, %v5563_v42  ;;  %v5565_v44 = vshrl.u32 %v5561_v12, 16  ;;  %vm5572_vm14 = vc.u32 %v5570_v4, %v5566_v19 }
 0x43f   :  { %v5278_v63 = vsub.s32 %v5274_v54, %v5277_v18  ;;  %v5549_v37 = vadd.s32 %v5547_v47, %v5541_v10  ;;  %vm5550_vm13 = vc.u32 %v5548_v28, %v5544_v51  ;;  %v5521_v54 = vsel %vm5517_vm6, %v5501_v61, %v8500_v33 }
 0x440   :  { %v5551_v0 = vsel %vm5550_vm13, 1, %v8816_v2  ;;  %v5523_v8 = vsel %vm5519_vm8, %v8502_v39, %v5522_v30  ;;  %v5573_v20 = vsel %vm5572_vm14, 1, %v8816_v2  ;;  %v5567_v15 = vshrl.u32 %v5562_v62, 16 }
 0x441   :  { %vm5279_vm7 = vcmp.lt.s32.totalorder %v5278_v63, 0  ;;  %v5280_v58 = vsub.s32 0, %v5278_v63  ;;  %v5553_v38 = vadd.s32 %v5551_v0, %v5549_v37  ;;  %v5575_v29 = vadd.s32 %v5573_v20, %v5571_v35 }
 0x442   :  { %v5574_v52 = vadd.s32 %v5570_v4, %v5566_v19  ;;  %v5524_v34 = vsel %vm5518_vm10, %v5521_v54, %v5523_v8  ;;  %v5270_v33 = vadd.s32 %v8527_v11, %v8533_v57  ;;  %v4767_v11 = vand.u32 3, %v4766_v14 }
 0x443   :  { %v5281_v59 = vsel %vm5279_vm7, %v5280_v58, %v5278_v63  ;;  %v5554_v48 = vadd.s32 %v5553_v38, %v5543_v16  ;;  %v5576_v41 = vadd.s32 %v5575_v29, %v5565_v44  ;;  %v5578_v39 = vmul.u32 %v8558_v32, %v5524_v34 }
 0x444   :  { %v5282_v45 = vclz %v5281_v59  ;;  %vm4769_vm2 = vcmp.eq.s32.totalorder %v4767_v11, 0  ;;  %vm4772_vm4 = vcmp.eq.s32.totalorder %v4767_v11, 2  ;;  %vm5178_vm6 = vcmp.lt.s32.totalorder %v8409_v3, 0 }
 0x445   :  { %v5555_v5 = vadd.s32 %v5554_v48, %v5545_v22  ;;  %v5577_v12 = vadd.s32 %v5576_v41, %v5567_v15  ;;  %vm8594_vm8 = vcmp.le.f32.partialorder %v5176_v36, 0.7853982  ;;  %vm4768_vm10 = vcmp.lt.s32.totalorder %v4767_v11, 2 }
 0x446   :  { %v6209_v50 = vadd.s32 4294967294, %v5282_v45  ;;  %v4771_v0 = vsel %vm4769_vm2, %v8349_v46, %v4615_v13  ;;  %v4774_v35 = vsel %vm4772_vm4, %v4618_v26, %v8352_v56  ;;  %v8842_v11 = vand.u32 2147483647, %v8411_v1 }
 0x447   :  { %vm5580_vm1 = vc.u32 %v5555_v5, %v5574_v52  ;;  %v5581_v62 = vadd.s32 1, %v5577_v12  ;;  %v4775_v59 = vsel %vm4768_vm10, %v4771_v0, %v4774_v35  ;;  %v5579_v46 = vadd.s32 %v5574_v52, %v5555_v5 }
 0x448   :  { %vm6210_vm15 = vcmp.lt.s32.totalorder %v6209_v50, 0  ;;  %v4776_v13 = vsel %vm4611_vm3, nan, %v4775_v59  ;;  %vm8623_vm3 = vcmp.le.f32.partialorder %v8842_v11, 0.7853982  ;;  %vm5487_vm12 = vcmp.lt.s32.totalorder %v8411_v1, 0 }
 0x449   :  { %v5285_v10 = vsel %vm6210_vm15, 0, %v6209_v50  ;;  %v5582_v42 = vsel %vm5580_vm1, %v5581_v62, %v5577_v12  ;;  %v5138_v20 = vmul.f32 %v8373_v43, %v4776_v13  ;;  %v5133_v62 = vmul.f32 %v8375_v23, %v4776_v13 }
 0x44a   :  { %v5286_v2 = vsub.s32 32, %v5285_v10  ;;  %v5290_v40 = vsub.s32 4294967266, %v5285_v10  ;;  %v5287_v51 = vshll.u32 %v5278_v63, %v5285_v10  ;;  %v5583_v49 = vadd.s32 %v5582_v42, %v5578_v39 }
 0x44b   :  { %v5139_v34 = vperm.slane %v5138_v20, 0  ;;  %v8846_v0 = vsub.f32 %v8385_v25, %v8392_v17  ;;  %vm5319_vm1 = vweird.f32 %v8409_v3 }
 0x44c   :  { %v5288_v18 = vshrl.u32 %v5270_v33, %v5286_v2  ;;  %v5291_v61 = vadd.s32 127, %v5290_v40  ;;  %v5584_v19 = vadd.s32 536870912, %v5583_v49 }
 0x44d   :  { %v5140_v9 = vmul.f32 %v5139_v34, %v7208_v7 }
 0x44e   :  { %v5289_v30 = vor.u32 %v5288_v18, %v5287_v51  ;;  %v5292_v28 = vshll.u32 %v5291_v61, 23  ;;  %v8588_v57 = vshrl.u32 %v5584_v19, 30  ;;  %v5141_v51 = vmul.f32 %v5139_v34, %v8839_v53 }
 0x44f   :  { %v5300_v19 = vsub.s32 4, %v8564_v21  ;;  %v8845_v53 = vsub.f32 %v8382_v24, %v8388_v31 }
 0x450   :  { %v5293_v47 = vor.u32 4788187, %v5292_v28  ;;  %v5296_v4 = vcvt.s32.f32 %v5289_v30  ;;  %v5586_v16 = vshll.u32 %v8588_v57, 30  ;;  %v5609_v7 = vsub.s32 4, %v8588_v57 }
 0x451   :  { %v5301_v59 = vsel %vm5178_vm6, %v5300_v19, %v8564_v21 }
 0x452   :  { %v5294_v32 = vand.u32 2147483647, %v5293_v47  ;;  %v5587_v63 = vsub.s32 %v5583_v49, %v5586_v16  ;;  %v5153_v49 = vperm.slane %v5133_v62, 0  ;;  %v5610_v24 = vsel %vm5487_vm12, %v5609_v7, %v8588_v57 }
 0x453   :  { %v8652_v21 = vsel %vm8594_vm8, 0, %v5301_v59 }
 0x454   :  { %v5297_v37 = vmul.f32 %v5296_v4, %v5294_v32  ;;  %vm5588_vm9 = vcmp.lt.s32.totalorder %v5587_v63, 0  ;;  %v5589_v58 = vsub.s32 0, %v5587_v63 }
 0x456   :  { %v5298_v6 = vxor.u32 2147483648, %v5297_v37  ;;  %v5590_v38 = vsel %vm5588_vm9, %v5589_v58, %v5587_v63  ;;  %vm5628_vm9 = vweird.f32 %v8411_v1 }
 0x457   :  { %v5591_v44 = vclz %v5590_v38 }
 0x458   :  { %v5299_v22 = vsel %vm5178_vm6, %v5298_v6, %v5297_v37 }
 0x459   :  { %v8609_v36 = vsel %vm8594_vm8, %v8409_v3, %v5299_v22  ;;  %v6215_v54 = vadd.s32 4294967294, %v5591_v44 }
 0x45a   :  { %v5304_v8 = vmul.f32 %v8609_v36, %v8609_v36 }
 0x45b   :  { %vm6216_vm11 = vcmp.lt.s32.totalorder %v6215_v54, 0 }
 0x45c   :  { %v5594_v56 = vsel %vm6216_vm11, 0, %v6215_v54  ;;  %v5312_v45 = vmul.f32 -0.00019511016, %v5304_v8  ;;  %v5305_v41 = vmul.f32 -0.001358992, %v5304_v8 }
 0x45d   :  { %v5595_v26 = vsub.s32 32, %v5594_v56  ;;  %v5599_v48 = vsub.s32 4294967266, %v5594_v56  ;;  %v5596_v15 = vshll.u32 %v5587_v63, %v5594_v56 }
 0x45e   :  { %v5313_v12 = vadd.f32 0.008332121, %v5312_v45  ;;  %v5306_v40 = vadd.f32 0.041655596, %v5305_v41  ;;  %v5320_v41 = vand.u32 3, %v8652_v21 }
 0x45f   :  { %v5597_v29 = vshrl.u32 %v5579_v46, %v5595_v26  ;;  %v5600_v50 = vadd.s32 127, %v5599_v48 }
 0x460   :  { %v5314_v52 = vmul.f32 %v5313_v12, %v5304_v8  ;;  %v5307_v61 = vmul.f32 %v5306_v40, %v5304_v8  ;;  %vm5322_vm5 = vcmp.eq.s32.totalorder %v5320_v41, 0  ;;  %vm5325_vm13 = vcmp.eq.s32.totalorder %v5320_v41, 2 }
 0x461   :  { %v5601_v33 = vshll.u32 %v5600_v50, 23  ;;  %v5598_v39 = vor.u32 %v5597_v29, %v5596_v15  ;;  %v6258_v15 = vld [vmem:[%s8751_s4 + $0x30] sm:$0xff]  ;;  %vm5321_vm7 = vcmp.lt.s32.totalorder %v5320_v41, 2 }
 0x462   :  { %v5315_v42 = vadd.f32 -0.16666654, %v5314_v52  ;;  %v5308_v37 = vadd.f32 -0.4999988, %v5307_v61 }
 0x463   :  { %v5602_v5 = vor.u32 4788187, %v5601_v33  ;;  %v5605_v43 = vcvt.s32.f32 %v5598_v39 }
 0x464   :  { %v5316_v63 = vmul.f32 %v5315_v42, %v5304_v8  ;;  %v5309_v17 = vmul.f32 %v5308_v37, %v5304_v8 }
 0x465   :  { %v5603_v14 = vand.u32 2147483647, %v5602_v5 }
 0x466   :  { %v5317_v56 = vadd.f32 1.0, %v5316_v63  ;;  %v8662_v29 = vadd.f32 1.0, %v5309_v17 }
 0x467   :  { %v5606_v47 = vmul.f32 %v5605_v43, %v5603_v14  ;;  %v6259_v43 = vld [vmem:[%s8751_s4 + $0x38] sm:$0xff] }
 0x468   :  { %v8665_v55 = vmul.f32 %v5317_v56, %v8609_v36 }
 0x469   :  { %v5607_v6 = vxor.u32 2147483648, %v5606_v47 }
 0x46a   :  { %v5323_v39 = vxor.u32 2147483648, %v8665_v55 }
 0x46b   :  { %v5608_v54 = vsel %vm5487_vm12, %v5607_v6, %v5606_v47 }
 0x46c   :  { %v5611_v25 = vsel %vm8623_vm3, %v8411_v1, %v5608_v54 }
 0x46d   :  { %v5613_v26 = vmul.f32 %v5611_v25, %v5611_v25 }
 0x46f   :  { %v5614_v57 = vmul.f32 -0.001358992, %v5613_v26  ;;  %v5621_v48 = vmul.f32 -0.00019511016, %v5613_v26 }
 0x471   :  { %v5615_v50 = vadd.f32 0.041655596, %v5614_v57  ;;  %v5622_v34 = vadd.f32 0.008332121, %v5621_v48 }
 0x473   :  { %v5616_v33 = vmul.f32 %v5615_v50, %v5613_v26 }
 0x47f   :  { %v5103_v10 = vpop.f32.mrf.mxu0 }
 0x480   :  { %v5149_v18 = vmul.f32 %v5140_v9, %v5103_v10 }
 0x481   :  { %v5126_v2 = vpop.f32.mrf.mxu1 }
 0x482   :  { %v5164_v30 = vmul.f32 %v5140_v9, %v5126_v2  ;;  %v5151_v32 = vadd.f32 %v5149_v18, %v8845_v53  ;;  %v5154_v58 = vmul.f32 %v5153_v49, %v5126_v2  ;;  %v5326_v9 = vxor.u32 2147483648, %v8662_v29 }
 0x483   :  { %v5617_v2 = vadd.f32 -0.4999988, %v5616_v33 }
 0x484   :  { %v5166_v44 = vadd.f32 %v5164_v30, %v8397_v60  ;;  %v5168_v60 = vmul.f32 %v5153_v49, %v5103_v10  ;;  %v8645_v20 = vsub.f32 %v5151_v32, %v5154_v58  ;;  %v5623_v10 = vmul.f32 %v5622_v34, %v5613_v26 }
 0x485   :  { %v5618_v5 = vmul.f32 %v5617_v2, %v5613_v26  ;;  %v5327_v18 = vsel %vm5325_vm13, %v5326_v9, %v8665_v55 }
 0x486   :  { %v5170_v8 = vadd.f32 %v5168_v60, %v5166_v44  ;;  %v5624_v40 = vadd.f32 -0.16666654, %v5623_v10 }
 0x487   :  { %v5106_v28 = vpop.f32.mrf.mxu0  ;;  %v5619_v61 = vadd.f32 1.0, %v5618_v5 }
 0x488   :  { %v5150_v4 = vmul.f32 %v5141_v51, %v5106_v28  ;;  %v5169_v31 = vmul.f32 %v5153_v49, %v5106_v28  ;;  %v5625_v62 = vmul.f32 %v5624_v40, %v5613_v26 }
 0x489   :  { %v5129_v16 = vpop.f32.mrf.mxu1 }
 0x48a   :  { %v5152_v35 = vadd.f32 %v5150_v4, %v8846_v0  ;;  %v5155_v22 = vmul.f32 %v5153_v49, %v5129_v16  ;;  %v5165_v38 = vmul.f32 %v5141_v51, %v5129_v16  ;;  %v5324_v51 = vsel %vm5322_vm5, %v8662_v29, %v5323_v39  ;;  %v8847_v0 = vld [vmem:[#allocation3_spill] sm:$0xff] }
 0x48b   :  { %v5626_v42 = vadd.f32 1.0, %v5625_v62  ;;  %v5635_v49 = vxor.u32 2147483648, %v5619_v61  ;;  %v5328_v30 = vsel %vm5321_vm7, %v5324_v51, %v5327_v18 }
 0x48c   :  { %v8639_v13 = vsub.f32 %v5152_v35, %v5155_v22  ;;  %v5167_v46 = vadd.f32 %v5165_v38, %v8401_v27  ;;  %v5612_v27 = vsel %vm8623_vm3, 0, %v5610_v24  ;;  %v5329_v7 = vsel %vm5319_vm1, nan, %v5328_v30  ;;  %v8848_v38 = vld [vmem:[#allocation4_spill] sm:$0xff]  ;;  %v6224_v30 = vld [vmem:[%s8752_s3 + $0x20] sm:$0xff] }
 0x48d   :  { %v5783_v12 = vadd.s32 3, %v5612_v27  ;;  %v5629_v36 = vand.u32 3, %v5612_v27  ;;  %v5627_v14 = vmul.f32 %v5626_v42, %v5611_v25  ;;  %v5474_v27 = vadd.s32 3, %v8652_v21 }
 0x48e   :  { %v8647_v45 = vadd.f32 %v5169_v31, %v5167_v46  ;;  %5808 = vmatpush.msra.mxu2 %v8639_v13 }
 0x48f   :  { %v5784_v52 = vand.u32 3, %v5783_v12  ;;  %vm5634_vm14 = vcmp.eq.s32.totalorder %v5629_v36, 2  ;;  %vm5630_vm2 = vcmp.lt.s32.totalorder %v5629_v36, 2  ;;  %vm5631_vm4 = vcmp.eq.s32.totalorder %v5629_v36, 0 }
 0x490   :  { %5809 = vmatpush.msra.mxu2 %v8645_v20  ;;  %5831 = vmatpush.msra.mxu3 %v8647_v45  ;;  %v5632_v28 = vxor.u32 2147483648, %v5627_v14  ;;  %v5636_v19 = vsel %vm5634_vm14, %v5635_v49, %v5627_v14  ;;  %v5475_v57 = vand.u32 3, %v5474_v27 }
 0x491   :  { %6220 = vmatmul.msk.f32.vlgmr.msra.gmra.mxu2 %vm693_vm0, %v6258_v15  ;;  %vm5789_vm15 = vcmp.eq.s32.totalorder %v5784_v52, 2  ;;  %vm5786_vm6 = vcmp.eq.s32.totalorder %v5784_v52, 0  ;;  %vm5785_vm8 = vcmp.lt.s32.totalorder %v5784_v52, 2 }
 0x492   :  { %5832 = vmatpush.msra.mxu3 %v5170_v8  ;;  %v5791_v47 = vsel %vm5789_vm15, %v5635_v49, %v5627_v14  ;;  %v5633_v4 = vsel %vm5631_vm4, %v5619_v61, %v5632_v28  ;;  %v5788_v11 = vsel %vm5786_vm6, %v5619_v61, %v5632_v28  ;;  %vm5477_vm10 = vcmp.eq.s32.totalorder %v5475_v57, 0  ;;  %v6226_v14 = vld [vmem:[%s8752_s3 + $0x30] sm:$0xff]  ;;  %v6227_v28 = vld [vmem:[%s8752_s3 + $0x38] sm:$0xff] }
 0x493   :  { %6222 = vmatmul.msk.f32.vlgmr.msra.gmra.mxu3 %vm693_vm0, %v6258_v15  ;;  %v5637_v23 = vsel %vm5630_vm2, %v5633_v4, %v5636_v19  ;;  %v5792_v53 = vsel %vm5785_vm8, %v5788_v11, %v5791_v47  ;;  %vm5480_vm11 = vcmp.eq.s32.totalorder %v5475_v57, 2  ;;  %vm5476_vm3 = vcmp.lt.s32.totalorder %v5475_v57, 2  ;;  %v6225_v19 = vld [vmem:[%s8752_s3 + $0x28] sm:$0xff] }
 0x494   :  { %v5638_v32 = vsel %vm5628_vm9, nan, %v5637_v23  ;;  %v5793_v16 = vsel %vm5628_vm9, nan, %v5792_v53  ;;  %v5479_v48 = vsel %vm5477_vm10, %v8662_v29, %v5323_v39 }
 0x495   :  { %v5840_v37 = vmul.f32 %v5638_v32, %v5329_v7  ;;  %v5842_v63 = vmul.f32 %v5793_v16, %v5329_v7 }
 0x497   :  { %v5843_v6 = vperm.slane %v5842_v63, 0  ;;  %v5850_v58 = vperm.slane %v5840_v37, 0 }
 0x499   :  { %6221 = vmatmul.msk.f32.gmra.mxu2 %vm693_vm0, %v6259_v43  ;;  %v5844_v35 = vmul.f32 %v5843_v6, %v8847_v0  ;;  %v5866_v22 = vmul.f32 %v5850_v58, %v5170_v8  ;;  %v5845_v44 = vmul.f32 %v5843_v6, %v8848_v38  ;;  %v5851_v1 = vmul.f32 %v5850_v58, %v8645_v20 }
 0x49a   :  { %v5852_v59 = vmul.f32 %v5850_v58, %v8639_v13  ;;  %v5867_v54 = vmul.f32 %v5850_v58, %v8647_v45 }
 0x49b   :  { %6223 = vmatmul.msk.f32.gmra.mxu3 %vm693_vm0, %v6259_v43  ;;  %v5853_v24 = vmul.f32 %v5844_v35, %v5170_v8  ;;  %v5868_v31 = vmul.f32 %v5844_v35, %v8645_v20  ;;  %v5854_v46 = vmul.f32 %v5845_v44, %v8647_v45  ;;  %v5869_v25 = vmul.f32 %v5845_v44, %v8639_v13 }
 0x49c   :  { %v5482_v20 = vsel %vm5480_vm11, %v5326_v9, %v8665_v55 }
 0x49d   :  { %v5855_v17 = vsub.f32 %v5851_v1, %v5853_v24  ;;  %v5870_v56 = vadd.f32 %v5868_v31, %v5866_v22  ;;  %v5856_v26 = vsub.f32 %v5852_v59, %v5854_v46  ;;  %v5871_v60 = vadd.f32 %v5869_v25, %v5867_v54  ;;  %v5998_v59 = vld [vmem:[%s8753_s5] sm:$0xff] }
 0x49e   :  { %v5483_v45 = vsel %vm5476_vm3, %v5479_v48, %v5482_v20  ;;  %v6267_v48 = vmov 0.0  }
 0x49f   :  { %v5484_v13 = vsel %vm5319_vm1, nan, %v5483_v45  ;;  %6065 = vst [vmem:[%s8754_s6 + $0x4] sm:$0xf] %v6267_v48 }
 0x4a0   :  { %v5846_v8 = vmul.f32 %v5638_v32, %v5484_v13  ;;  %v5841_v41 = vmul.f32 %v5793_v16, %v5484_v13 }
 0x4a2   :  { %v5847_v15 = vperm.slane %v5846_v8, 0  ;;  %v5861_v10 = vperm.slane %v5841_v41, 0  ;;  %v6046_v8 = vld [vmem:[%s8755_s1] sm:$0x1] }
 0x4a4   :  { %v5848_v21 = vmul.f32 %v5847_v15, %v8847_v0  ;;  %v5849_v12 = vmul.f32 %v5847_v15, %v8848_v38 }
 0x514   :  { %v5811_v50 = vpop.f32.mrf.mxu2 }
 0x515   :  { %v5857_v33 = vmul.f32 %v5848_v21, %v5811_v50  ;;  %v5876_v18 = vmul.f32 %v5861_v10, %v5811_v50 }
 0x516   :  { %v5834_v34 = vpop.f32.mrf.mxu3 }
 0x517   :  { %v5872_v2 = vmul.f32 %v5848_v21, %v5834_v34  ;;  %v5859_v29 = vadd.f32 %v5857_v33, %v5855_v17  ;;  %v5862_v9 = vmul.f32 %v5861_v10, %v5834_v34  ;;  %v6268_v34 = vmov 1.0  }
 0x519   :  { %v5874_v5 = vadd.f32 %v5872_v2, %v5870_v56  ;;  %v5864_v61 = vsub.f32 %v5859_v29, %v5862_v9 }
 0x51b   :  { %v5878_v49 = vadd.f32 %v5876_v18, %v5874_v5 }
 0x51c   :  { %v5814_v39 = vpop.f32.mrf.mxu2 }
 0x51d   :  { %v5858_v40 = vmul.f32 %v5849_v12, %v5814_v39  ;;  %v5877_v62 = vmul.f32 %v5861_v10, %v5814_v39 }
 0x51e   :  { %v5837_v55 = vpop.f32.mrf.mxu3 }
 0x51f   :  { %v5860_v36 = vadd.f32 %v5858_v40, %v5856_v26  ;;  %v5863_v3 = vmul.f32 %v5861_v10, %v5837_v55  ;;  %v5873_v52 = vmul.f32 %v5849_v12, %v5837_v55 }
 0x521   :  { %v5865_v43 = vsub.f32 %v5860_v36, %v5863_v3  ;;  %v5875_v51 = vadd.f32 %v5873_v52, %v5871_v60 }
 0x523   :  { %v5879_v42 = vadd.f32 %v5877_v62, %v5875_v51  ;;  %5906 = vmatpush.msrb.mxu0 %v5865_v43  ;;  %5960 = vmatpush.msrb.mxu2 %v5865_v43 }
 0x525   :  { %5907 = vmatpush.msrb.mxu0 %v5864_v61  ;;  %5935 = vmatpush.msrb.mxu1 %v5879_v42 }
 0x526   :  { %5961 = vmatpush.msrb.mxu2 %v5864_v61  ;;  %5983 = vmatpush.msrb.mxu3 %v5879_v42 }
 0x527   :  { %5936 = vmatpush.msrb.mxu1 %v5878_v49  ;;  %6232 = vmatmul.msk.f32.vlgmr.msrb.gmra.mxu2 %vm693_vm0, %v6226_v14 }
 0x528   :  { %5984 = vmatpush.msrb.mxu3 %v5878_v49  ;;  %6228 = vmatmul.msk.f32.vlgmr.msrb.gmra.mxu0 %vm693_vm0, %v6224_v30 }
 0x529   :  { %6234 = vmatmul.msk.f32.vlgmr.msrb.gmra.mxu3 %vm693_vm0, %v6224_v30  ;;  %6230 = vmatmul.msk.f32.vlgmr.msrb.gmra.mxu1 %vm693_vm0, %v6226_v14 }
 0x52f   :  { %6233 = vmatmul.msk.f32.gmra.mxu2 %vm693_vm0, %v6227_v28 }
 0x530   :  { %6229 = vmatmul.msk.f32.gmra.mxu0 %vm693_vm0, %v6225_v19 }
 0x531   :  { %6235 = vmatmul.msk.f32.gmra.mxu3 %vm693_vm0, %v6225_v19  ;;  %6231 = vmatmul.msk.f32.gmra.mxu1 %vm693_vm0, %v6227_v28 }
 0x5a5   :  { %v5909_v47 = vpop.f32.mrf.mxu0 }
 0x5a6   :  { %v5938_v7 = vpop.f32.mrf.mxu1 }
 0x5a7   :  { %v5944_v37 = vsub.f32 %v5909_v47, %v5938_v7 }
 0x5a9   :  { %v5992_v35 = vmul.f32 %v5944_v37, %v5944_v37 }
 0x5aa   :  { %v5963_v4 = vpop.f32.mrf.mxu2 }
 0x5ac   :  { %v5986_v11 = vpop.f32.mrf.mxu3 }
 0x5ad   :  { %v5912_v23 = vpop.f32.mrf.mxu0  ;;  %v5987_v63 = vadd.f32 %v5986_v11, %v5963_v4 }
 0x5ae   :  { %v5941_v53 = vpop.f32.mrf.mxu1 }
 0x5af   :  { %v5945_v32 = vsub.f32 %v5912_v23, %v5941_v53  ;;  %v5994_v22 = vmul.f32 %v5987_v63, %v5987_v63 }
 0x5b1   :  { %v5993_v58 = vmul.f32 %v5945_v32, %v5945_v32  ;;  %v5996_v1 = vadd.f32 %v5994_v22, %v5992_v35 }
 0x5b2   :  { %v5966_v16 = vpop.f32.mrf.mxu2 }
 0x5b4   :  { %v5989_v6 = vpop.f32.mrf.mxu3 }
 0x5b5   :  { %v5990_v0 = vadd.f32 %v5989_v6, %v5966_v16 }
 0x5b7   :  { %v5995_v38 = vmul.f32 %v5990_v0, %v5990_v0 }
 0x5b9   :  { %v5997_v44 = vadd.f32 %v5995_v38, %v5993_v58 }
 0x5bb   :  { %6016 = vmatpush.msra.mxu0 %v5997_v44 }
 0x5bd   :  { %6017 = vmatpush.msra.mxu0 %v5996_v1 }
 0x5be   :  { %6236 = vmatmul.msk.f32.vlgmr.msra.gmra.mxu0 %vm693_vm0, %v5998_v59 }
 0x63b   :  { %v6019_v54 = vpop.f32.mrf.mxu0 }
 0x63c   :  { %v6023_v24 = vrot.slane %v6019_v54, 1  ;;  %v6026_v46 = vrot.slane %v6019_v54, 2  ;;  %v6029_v17 = vrot.slane %v6019_v54, 3 }
 0x63e   :  { %v6025_v31 = vmul.f32 %v6023_v24, %v6019_v54 }
 0x640   :  { %v6028_v25 = vmul.f32 %v6026_v46, %v6025_v31 }
 0x642   :  { %v6031_v56 = vmul.f32 %v6029_v17, %v6028_v25 }
 0x644   :  { %v6033_v26 = vrot.slane %v6031_v56, 4 }
 0x646   :  { %v6035_v60 = vadd.f32 %v6033_v26, %v6031_v56 }
 0x648   :  { %v6036_v27 = vmax.f32 %v6035_v60, 1e-30 }
 0x64a   :  { %6246 = vrcp.f32 %v6036_v27 }
 0x650   :  { %v6247_v57 = vpop.eup %6246 }
 0x651   :  { %v6038_v20 = vmul.f32 %v6247_v57, %v6036_v27 }
 0x653   :  { %v6039_v45 = vsub.f32 2.0, %v6038_v20 }
 0x655   :  { %v6040_v13 = vmul.f32 %v6247_v57, %v6039_v45 }
 0x657   :  { %v6041_v15 = vmul.f32 %v6040_v13, %v6031_v56  ;;  %v6043_v50 = vrot.slane %v6040_v13, 4 }
 0x659   :  { %v6045_v21 = vmul.f32 %v6043_v50, %v6031_v56  ;;  %vm6047_vm0 = vcmp.lt.f32.partialorder %v6046_v8, %v6041_v15  ;;  %6061 = vst [vmem:[%s8754_s6] sm:$0x1] %v6041_v15  ;;  %v6049_v33 = vmax.f32 %v6041_v15, 1e-30 }
 0x65a   :  { %v6048_v41 = vsel %vm6047_vm0, 0.0, %v6268_v34 }
 0x65b   :  { %v6052_v12 = vmax.f32 %v6045_v21, 1e-30  ;;  %6062 = vst [vmem:[%s8754_s6 - $0x3] sm:$0x10] %v6045_v21 }
 0x65c   :  { %6063 = vst [vmem:[%s8754_s6 + $0x2] sm:$0x1] %v6048_v41 }
 0x65d   :  { %6248 = vlog2.f32 %v6052_v12 }
 0x65e   :  { %6250 = vlog2.f32 %v6049_v33 }
 0x663   :  { %v6249_v10 = vpop.eup %6248 }
 0x664   :  { %v6054_v39 = vmul.f32 0.6931472, %v6249_v10  ;;  %v6251_v2 = vpop.eup %6250 }
 0x665   :  { %v6051_v40 = vmul.f32 0.6931472, %v6251_v2 }
 0x666   :  { %6056 = vst [vmem:[#allocation1] sm:$0xff] %v6054_v39 }
 0x66d   :  { %v6058_v29 = vld [vmem:[#allocation1 + $0x4] ss:$9 sm:$0xff] }
 0x66e   :  { %v6060_v55 = vsel %vm6047_vm0, %v6051_v40, %v6058_v29 }
 0x66f   :  { %6064 = vst [vmem:[%s8754_s6 + $0x3] sm:$0x1] %v6060_v55 }

</bundles_post_ra>
